<compile_context>
chip_gen: v6e
topology: v6e:2x2x1
jax: 0.10.0
libtpu: 0.0.40
codegen_flags: <defaults>
</compile_context>

<pallas_src>
import functools

import jax
import jax.numpy as jnp
from jax.experimental import pallas as pl
from jax.experimental.pallas import tpu as pltpu

COMPUTE_DTYPE = jnp.bfloat16
LANE = 128  # lane width: all channel dims are padded to a multiple of this


# ---------------------------------------------------------------------------
# Pallas kernels
# ---------------------------------------------------------------------------
def _conv_bn_relu_kernel(x_ref, w_ref, scale_ref, shift_ref, o_ref,
                         *, k, stride, Ho, Wo, Hq):
    """Fused (im2col-free) conv + folded BatchNorm + ReLU for one image.

    x_ref:     (1, stride*stride*Hq, Wq, Cin)  phase-split, spatially padded input
    w_ref:     (k*k, Cin, CoutP)               per-tap weights, CoutP lane-padded
    scale_ref: (1, CoutP)  folded BN scale (zero in padded lanes)
    shift_ref: (1, CoutP)  folded BN shift (zero in padded lanes)
    o_ref:     (1, Ho, Wo, CoutP)              lane-dense output block
    """
    coutp = o_ref.shape[-1]
    cin = x_ref.shape[-1]
    acc = jnp.zeros((Ho * Wo, coutp), jnp.float32)
    # k*k accumulating (Ho*Wo, Cin) x (Cin, CoutP) matmuls on the MXU.  The
    # patch matrix is formed from static unit-stride slices of the VMEM block.
    # TODO(synk): at ResNet-50 scale add a K grid axis ("arbitrary") with a VMEM
    #             f32 accumulator scratch instead of keeping all taps resident.
    for dy in range(k):
        for dx in range(k):
            base = ((dy % stride) * stride + (dx % stride)) * Hq + dy // stride
            qx = dx // stride
            patch = x_ref[0, base:base + Ho, qx:qx + Wo, :]          # (Ho, Wo, Cin)
            acc += jnp.dot(patch.reshape(Ho * Wo, cin), w_ref[dy * k + dx],
                           preferred_element_type=jnp.float32)
    y = acc * scale_ref[...] + shift_ref[...]
    o_ref[0] = jnp.maximum(y, 0.0).reshape(Ho, Wo, coutp).astype(o_ref.dtype)


def _conv_bn_relu_gap_bnneck_kernel(x_ref, w_ref, scale_ref, shift_ref,
                                    neck_scale_ref, neck_shift_ref, o_ref,
                                    *, k, stride, Ho, Wo, Hq):
    """Last conv + folded BN + ReLU fused with global-average-pool + BNNeck.

    The conv output stays entirely in vregs/VMEM (never written to HBM); only
    the pooled (1, CoutP) embedding row is stored per image.

    x_ref:          (1, stride*stride*Hq, Wq, Cin)
    w_ref:          (k*k, Cin, CoutP)
    scale_ref:      (1, CoutP)   folded conv-BN scale
    shift_ref:      (1, CoutP)   folded conv-BN shift
    neck_scale_ref: (1, CoutP)   folded BNNeck scale
    neck_shift_ref: (1, CoutP)   folded BNNeck shift
    o_ref:          (1, 1, CoutP)
    """
    coutp = o_ref.shape[-1]
    cin = x_ref.shape[-1]
    acc = jnp.zeros((Ho * Wo, coutp), jnp.float32)
    for dy in range(k):
        for dx in range(k):
            base = ((dy % stride) * stride + (dx % stride)) * Hq + dy // stride
            qx = dx // stride
            patch = x_ref[0, base:base + Ho, qx:qx + Wo, :]          # (Ho, Wo, Cin)
            acc += jnp.dot(patch.reshape(Ho * Wo, cin), w_ref[dy * k + dx],
                           preferred_element_type=jnp.float32)
    y = jnp.maximum(acc * scale_ref[...] + shift_ref[...], 0.0)
    y = y.astype(COMPUTE_DTYPE)                  # match inter-layer half cast
    m = jnp.mean(y.astype(jnp.float32), axis=0, keepdims=True)       # (1, CoutP)
    o_ref[0] = (m * neck_scale_ref[...] + neck_shift_ref[...]).astype(o_ref.dtype)


# ---------------------------------------------------------------------------
# Wrappers (layout plumbing in plain JAX, hot path in Pallas)
# ---------------------------------------------------------------------------
def _pad_and_phase_split(x_nhwc, k, stride, pad):
    """Spatial zero-pad + (for stride>1) space-to-depth phase split so the
    kernel only ever takes unit-stride static slices."""
    B, H, W, cin = x_nhwc.shape
    Ho = (H + 2 * pad - k) // stride + 1
    Wo = (W + 2 * pad - k) // stride + 1
    Hq = (k - 1) // stride + Ho
    Wq = (k - 1) // stride + Wo
    xp = jnp.pad(
        x_nhwc.astype(COMPUTE_DTYPE),
        ((0, 0), (pad, Hq * stride - H - pad), (pad, Wq * stride - W - pad), (0, 0)))
    if stride == 1:
        x_ph = xp                                # identity phase split: skip it
    else:
        x_ph = (xp.reshape(B, Hq, stride, Wq, stride, cin)
                  .transpose(0, 2, 4, 1, 3, 5)
                  .reshape(B, stride * stride * Hq, Wq, cin))
    return x_ph, Ho, Wo, Hq, Wq


def _prep_conv_params(w_hwio, scale, shift, cin, coutp):
    """Pad weight in-channels to the (lane-padded) activation channel count and
    out-channels to a full lane width.  Padded lanes get zero scale/shift so
    they stay exactly zero through the ReLU."""
    k, _, wcin, cout = w_hwio.shape
    w = (jnp.zeros((k, k, cin, coutp), jnp.float32)
           .at[:, :, :wcin, :cout].set(w_hwio.astype(jnp.float32))
           .reshape(k * k, cin, coutp).astype(COMPUTE_DTYPE))
    sc = jnp.zeros((1, coutp), jnp.float32).at[0, :cout].set(scale.astype(jnp.float32))
    sh = jnp.zeros((1, coutp), jnp.float32).at[0, :cout].set(shift.astype(jnp.float32))
    return w, sc, sh


def conv_bn_relu(x_nhwc, w_hwio, scale, shift, *, stride, pad):
    """k x k conv (fused in-kernel im2col on the MXU) + folded BN + ReLU.

    Returns NHWC output whose channel dim is zero-padded up to LANE so every
    store is lane-dense; the real channels live in out[..., :cout].
    """
    B, H, W, cin = x_nhwc.shape
    k, _, _, cout = w_hwio.shape
    coutp = pl.cdiv(cout, LANE) * LANE

    x_ph, Ho, Wo, Hq, Wq = _pad_and_phase_split(x_nhwc, k, stride, pad)
    w, sc, sh = _prep_conv_params(w_hwio, scale, shift, cin, coutp)

    kern = functools.partial(_conv_bn_relu_kernel,
                             k=k, stride=stride, Ho=Ho, Wo=Wo, Hq=Hq)

    flops = 2 * B * Ho * Wo * k * k * cin * coutp
    bytes_accessed = (x_ph.size * 2 + w.size * 2
                      + (sc.size + sh.size) * 4 + B * Ho * Wo * coutp * 2)

    return pl.pallas_call(
        kern,
        out_shape=jax.ShapeDtypeStruct((B, Ho, Wo, coutp), COMPUTE_DTYPE),
        grid=(B,),
        in_specs=[
            pl.BlockSpec((1, x_ph.shape[1], Wq, cin), lambda b: (b, 0, 0, 0)),
            pl.BlockSpec((k * k, cin, coutp), lambda b: (0, 0, 0)),
            pl.BlockSpec((1, coutp), lambda b: (0, 0)),
            pl.BlockSpec((1, coutp), lambda b: (0, 0)),
        ],
        out_specs=pl.BlockSpec((1, Ho, Wo, coutp), lambda b: (b, 0, 0, 0)),
        compiler_params=pltpu.CompilerParams(
            dimension_semantics=("parallel",),
            vmem_limit_bytes=32 * 1024 * 1024),
        cost_estimate=pl.CostEstimate(flops=flops, transcendentals=0,
                                      bytes_accessed=bytes_accessed),
    )(x_ph, w, sc, sh)


def conv_bn_relu_gap_bnneck(x_nhwc, w_hwio, scale, shift, neck_scale, neck_shift,
                            *, stride, pad, feat_dim):
    """Final conv + BN + ReLU fused with global average pool + BNNeck affine.

    Returns (B, feat_dim) embeddings; the conv feature map never touches HBM.
    """
    B, H, W, cin = x_nhwc.shape
    k, _, _, cout = w_hwio.shape
    coutp = pl.cdiv(cout, LANE) * LANE

    x_ph, Ho, Wo, Hq, Wq = _pad_and_phase_split(x_nhwc, k, stride, pad)
    w, sc, sh = _prep_conv_params(w_hwio, scale, shift, cin, coutp)
    nsc = jnp.zeros((1, coutp), jnp.float32).at[0, :feat_dim].set(
        neck_scale.astype(jnp.float32))
    nsh = jnp.zeros((1, coutp), jnp.float32).at[0, :feat_dim].set(
        neck_shift.astype(jnp.float32))

    kern = functools.partial(_conv_bn_relu_gap_bnneck_kernel,
                             k=k, stride=stride, Ho=Ho, Wo=Wo, Hq=Hq)

    flops = (2 * B * Ho * Wo * k * k * cin * coutp
             + B * Ho * Wo * coutp + 2 * B * coutp)
    bytes_accessed = (x_ph.size * 2 + w.size * 2
                      + (sc.size + sh.size + nsc.size + nsh.size) * 4
                      + B * coutp * 2)

    out = pl.pallas_call(
        kern,
        out_shape=jax.ShapeDtypeStruct((B, 1, coutp), COMPUTE_DTYPE),
        grid=(B,),
        in_specs=[
            pl.BlockSpec((1, x_ph.shape[1], Wq, cin), lambda b: (b, 0, 0, 0)),
            pl.BlockSpec((k * k, cin, coutp), lambda b: (0, 0, 0)),
            pl.BlockSpec((1, coutp), lambda b: (0, 0)),
            pl.BlockSpec((1, coutp), lambda b: (0, 0)),
            pl.BlockSpec((1, coutp), lambda b: (0, 0)),
            pl.BlockSpec((1, coutp), lambda b: (0, 0)),
        ],
        out_specs=pl.BlockSpec((1, 1, coutp), lambda b: (b, 0, 0)),
        compiler_params=pltpu.CompilerParams(
            dimension_semantics=("parallel",),
            vmem_limit_bytes=32 * 1024 * 1024),
        cost_estimate=pl.CostEstimate(flops=flops, transcendentals=0,
                                      bytes_accessed=bytes_accessed),
    )(x_ph, w, sc, sh, nsc, nsh)
    return out[:, 0, :feat_dim]   # drop padded lanes -> (B, feat_dim)


# ---------------------------------------------------------------------------
# Parameter construction (deterministic, synthetic)
# ---------------------------------------------------------------------------
def _fold_bn(gamma, beta, mean, var, eps=1e-5):
    scale = gamma / jnp.sqrt(var + eps)
    shift = beta - mean * scale
    return scale, shift


def init_params(key, cin=4, c1=32, feat_dim=32):
    ks = jax.random.split(key, 12)
    w1 = jax.random.normal(ks[0], (3, 3, cin, c1), jnp.float32) * 0.1
    g1 = 1.0 + 0.1 * jax.random.normal(ks[1], (c1,), jnp.float32)
    b1 = 0.1 * jax.random.normal(ks[2], (c1,), jnp.float32)
    m1 = 0.1 * jax.random.normal(ks[3], (c1,), jnp.float32)
    v1 = 0.5 + jax.random.uniform(ks[4], (c1,), jnp.float32)

    w2 = jax.random.normal(ks[5], (3, 3, c1, feat_dim), jnp.float32) * 0.1
    g2 = 1.0 + 0.1 * jax.random.normal(ks[6], (feat_dim,), jnp.float32)
    b2 = 0.1 * jax.random.normal(ks[7], (feat_dim,), jnp.float32)
    m2 = 0.1 * jax.random.normal(ks[8], (feat_dim,), jnp.float32)
    v2 = 0.5 + jax.random.uniform(ks[9], (feat_dim,), jnp.float32)

    # BNNeck (bias-free BN in FastReID): gamma/mean/var only, beta = 0
    g3 = 1.0 + 0.1 * jax.random.normal(ks[10], (feat_dim,), jnp.float32)
    b3 = jnp.zeros((feat_dim,), jnp.float32)
    m3 = 0.1 * jax.random.normal(ks[11], (feat_dim,), jnp.float32)
    v3 = jnp.ones((feat_dim,), jnp.float32)

    s1, sh1 = _fold_bn(g1, b1, m1, v1)
    s2, sh2 = _fold_bn(g2, b2, m2, v2)
    s3, sh3 = _fold_bn(g3, b3, m3, v3)
    return dict(w1=w1, s1=s1, sh1=sh1, w2=w2, s2=s2, sh2=sh2, s3=s3, sh3=sh3)


# ---------------------------------------------------------------------------
# FastReID.forward equivalent: batch (NCHW) -> half -> model -> features (B, D)
# ---------------------------------------------------------------------------
def fastreid_forward(params, batch_nchw):
    x = batch_nchw.astype(COMPUTE_DTYPE)        # batch.half()
    x = jnp.transpose(x, (0, 2, 3, 1))          # NCHW -> NHWC (channels on lanes)
    x = conv_bn_relu(x, params["w1"], params["s1"], params["sh1"], stride=1, pad=1)
    return conv_bn_relu_gap_bnneck(
        x, params["w2"], params["s2"], params["sh2"],
        params["s3"], params["sh3"],
        stride=2, pad=1, feat_dim=params["s3"].shape[0])      # (B, feat_dim)


# Pure-JAX reference (same bf16 casts / f32 accumulation) for a sanity check.
def reference_forward(params, batch_nchw):
    def conv(x, w, s, sh, stride, pad):
        y = jax.lax.conv_general_dilated(
            x.astype(COMPUTE_DTYPE), w.astype(COMPUTE_DTYPE),
            window_strides=(stride, stride), padding=[(pad, pad), (pad, pad)],
            dimension_numbers=("NHWC", "HWIO", "NHWC"),
            preferred_element_type=jnp.float32)
        y = y * s.reshape(1, 1, 1, -1) + sh.reshape(1, 1, 1, -1)
        return jnp.maximum(y, 0.0).astype(COMPUTE_DTYPE)

    x = jnp.transpose(batch_nchw.astype(COMPUTE_DTYPE), (0, 2, 3, 1))
    x = conv(x, params["w1"], params["s1"], params["sh1"], 1, 1)
    x = conv(x, params["w2"], params["s2"], params["sh2"], 2, 1)
    m = jnp.mean(x.astype(jnp.float32), axis=(1, 2))
    return (m * params["s3"].reshape(1, -1)
            + params["sh3"].reshape(1, -1)).astype(COMPUTE_DTYPE)


if __name__ == "__main__":
    key = jax.random.PRNGKey(0)
    k_param, k_data = jax.random.split(key)
    params = init_params(k_param, cin=4, c1=32, feat_dim=32)

    batch = jax.random.normal(k_data, (2, 4, 16, 16), jnp.float32)  # NCHW input

    feats = jax.jit(fastreid_forward)(params, batch)
    feats = jax.block_until_ready(feats)

    ref = jax.block_until_ready(jax.jit(reference_forward)(params, batch))

    assert feats.shape == (2, 32) and feats.dtype == COMPUTE_DTYPE
    err = float(jnp.max(jnp.abs(feats.astype(jnp.float32) - ref.astype(jnp.float32))))
    assert err < 5e-2, f"mismatch vs reference: {err}"
    print("KERNEL_OK")
</pallas_src>

<mosaic_0001>
module attributes {stable_mosaic.version = 11 : i64} {
  func.func @_conv_bn_relu_kernel(%arg0: i32, %arg1: memref<1x18x18x4xbf16, #tpu.memory_space<vmem>>, %arg2: memref<9x4x128xbf16, #tpu.memory_space<vmem>>, %arg3: memref<1x128xf32, #tpu.memory_space<vmem>>, %arg4: memref<1x128xf32, #tpu.memory_space<vmem>>, %arg5: memref<1x16x16x128xbf16, #tpu.memory_space<vmem>>) attributes {dimension_semantics = [#tpu.dimension_semantics<parallel>], iteration_bounds = array<i64: 2>, scalar_prefetch = 0 : i64, scratch_operands = 0 : i64, tpu.core_type = #tpu.core_type<tc>, window_params = [{transform_indices = @transform_0, window_bounds = array<i64: 1, 18, 18, 4>}, {pipeline_mode = #tpu.pipeline_mode<synchronous>, transform_indices = @transform_1, window_bounds = array<i64: 9, 4, 128>}, {pipeline_mode = #tpu.pipeline_mode<synchronous>, transform_indices = @transform_2, window_bounds = array<i64: 1, 128>}, {pipeline_mode = #tpu.pipeline_mode<synchronous>, transform_indices = @transform_3, window_bounds = array<i64: 1, 128>}, {transform_indices = @transform_4, window_bounds = array<i64: 1, 16, 16, 128>}]} {
    %cst = arith.constant 0.000000e+00 : f32
    %0 = vector.broadcast %cst : f32 to vector<256x128xf32>
    %c0 = arith.constant 0 : index
    %c0_0 = arith.constant 0 : index
    %c0_1 = arith.constant 0 : index
    %c0_2 = arith.constant 0 : index
    %1 = vector.load %arg1[%c0, %c0_0, %c0_1, %c0_2] : memref<1x18x18x4xbf16, #tpu.memory_space<vmem>>, vector<1x16x16x4xbf16>
    %2 = vector.shape_cast %1 : vector<1x16x16x4xbf16> to vector<16x16x4xbf16>
    %3 = vector.shape_cast %2 : vector<16x16x4xbf16> to vector<256x4xbf16>
    %c0_3 = arith.constant 0 : index
    %c0_4 = arith.constant 0 : index
    %c0_5 = arith.constant 0 : index
    %4 = vector.load %arg2[%c0_3, %c0_4, %c0_5] : memref<9x4x128xbf16, #tpu.memory_space<vmem>>, vector<1x4x128xbf16>
    %5 = vector.shape_cast %4 : vector<1x4x128xbf16> to vector<4x128xbf16>
    %cst_6 = arith.constant dense<0.000000e+00> : vector<256x128xf32>
    %6 = tpu.matmul %3, %5, %cst_6 {dimension_numbers = #tpu.dot_dimension_numbers<[1], [0], [0], [1], [0, 0, 1, 1], [], []>} : vector<256x4xbf16>, vector<4x128xbf16>, vector<256x128xf32> -> vector<256x128xf32>
    %7 = arith.addf %0, %6 : vector<256x128xf32>
    %c0_7 = arith.constant 0 : index
    %c0_8 = arith.constant 0 : index
    %c1 = arith.constant 1 : index
    %c0_9 = arith.constant 0 : index
    %8 = vector.load %arg1[%c0_7, %c0_8, %c1, %c0_9] : memref<1x18x18x4xbf16, #tpu.memory_space<vmem>>, vector<1x16x16x4xbf16>
    %9 = vector.shape_cast %8 : vector<1x16x16x4xbf16> to vector<16x16x4xbf16>
    %10 = vector.shape_cast %9 : vector<16x16x4xbf16> to vector<256x4xbf16>
    %c1_10 = arith.constant 1 : index
    %c0_11 = arith.constant 0 : index
    %c0_12 = arith.constant 0 : index
    %11 = vector.load %arg2[%c1_10, %c0_11, %c0_12] : memref<9x4x128xbf16, #tpu.memory_space<vmem>>, vector<1x4x128xbf16>
    %12 = vector.shape_cast %11 : vector<1x4x128xbf16> to vector<4x128xbf16>
    %cst_13 = arith.constant dense<0.000000e+00> : vector<256x128xf32>
    %13 = tpu.matmul %10, %12, %cst_13 {dimension_numbers = #tpu.dot_dimension_numbers<[1], [0], [0], [1], [0, 0, 1, 1], [], []>} : vector<256x4xbf16>, vector<4x128xbf16>, vector<256x128xf32> -> vector<256x128xf32>
    %14 = arith.addf %7, %13 : vector<256x128xf32>
    %c0_14 = arith.constant 0 : index
    %c0_15 = arith.constant 0 : index
    %c2 = arith.constant 2 : index
    %c0_16 = arith.constant 0 : index
    %15 = vector.load %arg1[%c0_14, %c0_15, %c2, %c0_16] : memref<1x18x18x4xbf16, #tpu.memory_space<vmem>>, vector<1x16x16x4xbf16>
    %16 = vector.shape_cast %15 : vector<1x16x16x4xbf16> to vector<16x16x4xbf16>
    %17 = vector.shape_cast %16 : vector<16x16x4xbf16> to vector<256x4xbf16>
    %c2_17 = arith.constant 2 : index
    %c0_18 = arith.constant 0 : index
    %c0_19 = arith.constant 0 : index
    %18 = vector.load %arg2[%c2_17, %c0_18, %c0_19] : memref<9x4x128xbf16, #tpu.memory_space<vmem>>, vector<1x4x128xbf16>
    %19 = vector.shape_cast %18 : vector<1x4x128xbf16> to vector<4x128xbf16>
    %cst_20 = arith.constant dense<0.000000e+00> : vector<256x128xf32>
    %20 = tpu.matmul %17, %19, %cst_20 {dimension_numbers = #tpu.dot_dimension_numbers<[1], [0], [0], [1], [0, 0, 1, 1], [], []>} : vector<256x4xbf16>, vector<4x128xbf16>, vector<256x128xf32> -> vector<256x128xf32>
    %21 = arith.addf %14, %20 : vector<256x128xf32>
    %c0_21 = arith.constant 0 : index
    %c1_22 = arith.constant 1 : index
    %c0_23 = arith.constant 0 : index
    %c0_24 = arith.constant 0 : index
    %22 = vector.load %arg1[%c0_21, %c1_22, %c0_23, %c0_24] : memref<1x18x18x4xbf16, #tpu.memory_space<vmem>>, vector<1x16x16x4xbf16>
    %23 = vector.shape_cast %22 : vector<1x16x16x4xbf16> to vector<16x16x4xbf16>
    %24 = vector.shape_cast %23 : vector<16x16x4xbf16> to vector<256x4xbf16>
    %c3 = arith.constant 3 : index
    %c0_25 = arith.constant 0 : index
    %c0_26 = arith.constant 0 : index
    %25 = vector.load %arg2[%c3, %c0_25, %c0_26] : memref<9x4x128xbf16, #tpu.memory_space<vmem>>, vector<1x4x128xbf16>
    %26 = vector.shape_cast %25 : vector<1x4x128xbf16> to vector<4x128xbf16>
    %cst_27 = arith.constant dense<0.000000e+00> : vector<256x128xf32>
    %27 = tpu.matmul %24, %26, %cst_27 {dimension_numbers = #tpu.dot_dimension_numbers<[1], [0], [0], [1], [0, 0, 1, 1], [], []>} : vector<256x4xbf16>, vector<4x128xbf16>, vector<256x128xf32> -> vector<256x128xf32>
    %28 = arith.addf %21, %27 : vector<256x128xf32>
    %c0_28 = arith.constant 0 : index
    %c1_29 = arith.constant 1 : index
    %c1_30 = arith.constant 1 : index
    %c0_31 = arith.constant 0 : index
    %29 = vector.load %arg1[%c0_28, %c1_29, %c1_30, %c0_31] : memref<1x18x18x4xbf16, #tpu.memory_space<vmem>>, vector<1x16x16x4xbf16>
    %30 = vector.shape_cast %29 : vector<1x16x16x4xbf16> to vector<16x16x4xbf16>
    %31 = vector.shape_cast %30 : vector<16x16x4xbf16> to vector<256x4xbf16>
    %c4 = arith.constant 4 : index
    %c0_32 = arith.constant 0 : index
    %c0_33 = arith.constant 0 : index
    %32 = vector.load %arg2[%c4, %c0_32, %c0_33] : memref<9x4x128xbf16, #tpu.memory_space<vmem>>, vector<1x4x128xbf16>
    %33 = vector.shape_cast %32 : vector<1x4x128xbf16> to vector<4x128xbf16>
    %cst_34 = arith.constant dense<0.000000e+00> : vector<256x128xf32>
    %34 = tpu.matmul %31, %33, %cst_34 {dimension_numbers = #tpu.dot_dimension_numbers<[1], [0], [0], [1], [0, 0, 1, 1], [], []>} : vector<256x4xbf16>, vector<4x128xbf16>, vector<256x128xf32> -> vector<256x128xf32>
    %35 = arith.addf %28, %34 : vector<256x128xf32>
    %c0_35 = arith.constant 0 : index
    %c1_36 = arith.constant 1 : index
    %c2_37 = arith.constant 2 : index
    %c0_38 = arith.constant 0 : index
    %36 = vector.load %arg1[%c0_35, %c1_36, %c2_37, %c0_38] : memref<1x18x18x4xbf16, #tpu.memory_space<vmem>>, vector<1x16x16x4xbf16>
    %37 = vector.shape_cast %36 : vector<1x16x16x4xbf16> to vector<16x16x4xbf16>
    %38 = vector.shape_cast %37 : vector<16x16x4xbf16> to vector<256x4xbf16>
    %c5 = arith.constant 5 : index
    %c0_39 = arith.constant 0 : index
    %c0_40 = arith.constant 0 : index
    %39 = vector.load %arg2[%c5, %c0_39, %c0_40] : memref<9x4x128xbf16, #tpu.memory_space<vmem>>, vector<1x4x128xbf16>
    %40 = vector.shape_cast %39 : vector<1x4x128xbf16> to vector<4x128xbf16>
    %cst_41 = arith.constant dense<0.000000e+00> : vector<256x128xf32>
    %41 = tpu.matmul %38, %40, %cst_41 {dimension_numbers = #tpu.dot_dimension_numbers<[1], [0], [0], [1], [0, 0, 1, 1], [], []>} : vector<256x4xbf16>, vector<4x128xbf16>, vector<256x128xf32> -> vector<256x128xf32>
    %42 = arith.addf %35, %41 : vector<256x128xf32>
    %c0_42 = arith.constant 0 : index
    %c2_43 = arith.constant 2 : index
    %c0_44 = arith.constant 0 : index
    %c0_45 = arith.constant 0 : index
    %43 = vector.load %arg1[%c0_42, %c2_43, %c0_44, %c0_45] : memref<1x18x18x4xbf16, #tpu.memory_space<vmem>>, vector<1x16x16x4xbf16>
    %44 = vector.shape_cast %43 : vector<1x16x16x4xbf16> to vector<16x16x4xbf16>
    %45 = vector.shape_cast %44 : vector<16x16x4xbf16> to vector<256x4xbf16>
    %c6 = arith.constant 6 : index
    %c0_46 = arith.constant 0 : index
    %c0_47 = arith.constant 0 : index
    %46 = vector.load %arg2[%c6, %c0_46, %c0_47] : memref<9x4x128xbf16, #tpu.memory_space<vmem>>, vector<1x4x128xbf16>
    %47 = vector.shape_cast %46 : vector<1x4x128xbf16> to vector<4x128xbf16>
    %cst_48 = arith.constant dense<0.000000e+00> : vector<256x128xf32>
    %48 = tpu.matmul %45, %47, %cst_48 {dimension_numbers = #tpu.dot_dimension_numbers<[1], [0], [0], [1], [0, 0, 1, 1], [], []>} : vector<256x4xbf16>, vector<4x128xbf16>, vector<256x128xf32> -> vector<256x128xf32>
    %49 = arith.addf %42, %48 : vector<256x128xf32>
    %c0_49 = arith.constant 0 : index
    %c2_50 = arith.constant 2 : index
    %c1_51 = arith.constant 1 : index
    %c0_52 = arith.constant 0 : index
    %50 = vector.load %arg1[%c0_49, %c2_50, %c1_51, %c0_52] : memref<1x18x18x4xbf16, #tpu.memory_space<vmem>>, vector<1x16x16x4xbf16>
    %51 = vector.shape_cast %50 : vector<1x16x16x4xbf16> to vector<16x16x4xbf16>
    %52 = vector.shape_cast %51 : vector<16x16x4xbf16> to vector<256x4xbf16>
    %c7 = arith.constant 7 : index
    %c0_53 = arith.constant 0 : index
    %c0_54 = arith.constant 0 : index
    %53 = vector.load %arg2[%c7, %c0_53, %c0_54] : memref<9x4x128xbf16, #tpu.memory_space<vmem>>, vector<1x4x128xbf16>
    %54 = vector.shape_cast %53 : vector<1x4x128xbf16> to vector<4x128xbf16>
    %cst_55 = arith.constant dense<0.000000e+00> : vector<256x128xf32>
    %55 = tpu.matmul %52, %54, %cst_55 {dimension_numbers = #tpu.dot_dimension_numbers<[1], [0], [0], [1], [0, 0, 1, 1], [], []>} : vector<256x4xbf16>, vector<4x128xbf16>, vector<256x128xf32> -> vector<256x128xf32>
    %56 = arith.addf %49, %55 : vector<256x128xf32>
    %c0_56 = arith.constant 0 : index
    %c2_57 = arith.constant 2 : index
    %c2_58 = arith.constant 2 : index
    %c0_59 = arith.constant 0 : index
    %57 = vector.load %arg1[%c0_56, %c2_57, %c2_58, %c0_59] : memref<1x18x18x4xbf16, #tpu.memory_space<vmem>>, vector<1x16x16x4xbf16>
    %58 = vector.shape_cast %57 : vector<1x16x16x4xbf16> to vector<16x16x4xbf16>
    %59 = vector.shape_cast %58 : vector<16x16x4xbf16> to vector<256x4xbf16>
    %c8 = arith.constant 8 : index
    %c0_60 = arith.constant 0 : index
    %c0_61 = arith.constant 0 : index
    %60 = vector.load %arg2[%c8, %c0_60, %c0_61] : memref<9x4x128xbf16, #tpu.memory_space<vmem>>, vector<1x4x128xbf16>
    %61 = vector.shape_cast %60 : vector<1x4x128xbf16> to vector<4x128xbf16>
    %cst_62 = arith.constant dense<0.000000e+00> : vector<256x128xf32>
    %62 = tpu.matmul %59, %61, %cst_62 {dimension_numbers = #tpu.dot_dimension_numbers<[1], [0], [0], [1], [0, 0, 1, 1], [], []>} : vector<256x4xbf16>, vector<4x128xbf16>, vector<256x128xf32> -> vector<256x128xf32>
    %63 = arith.addf %56, %62 : vector<256x128xf32>
    %c0_63 = arith.constant 0 : index
    %c0_64 = arith.constant 0 : index
    %64 = vector.load %arg3[%c0_63, %c0_64] : memref<1x128xf32, #tpu.memory_space<vmem>>, vector<1x128xf32>
    %65 = vector.broadcast %64 : vector<1x128xf32> to vector<256x128xf32>
    %66 = arith.mulf %63, %65 : vector<256x128xf32>
    %c0_65 = arith.constant 0 : index
    %c0_66 = arith.constant 0 : index
    %67 = vector.load %arg4[%c0_65, %c0_66] : memref<1x128xf32, #tpu.memory_space<vmem>>, vector<1x128xf32>
    %68 = vector.broadcast %67 : vector<1x128xf32> to vector<256x128xf32>
    %69 = arith.addf %66, %68 : vector<256x128xf32>
    %cst_67 = arith.constant 0.000000e+00 : f32
    %70 = vector.broadcast %cst_67 : f32 to vector<256x128xf32>
    %71 = arith.maximumf %69, %70 : vector<256x128xf32>
    %72 = vector.shape_cast %71 : vector<256x128xf32> to vector<16x16x128xf32>
    %73 = arith.truncf %72 : vector<16x16x128xf32> to vector<16x16x128xbf16>
    %c0_68 = arith.constant 0 : index
    %c0_69 = arith.constant 0 : index
    %c0_70 = arith.constant 0 : index
    %c0_71 = arith.constant 0 : index
    %74 = vector.load %arg5[%c0_68, %c0_69, %c0_70, %c0_71] : memref<1x16x16x128xbf16, #tpu.memory_space<vmem>>, vector<1x16x16x128xbf16>
    %75 = vector.shape_cast %74 : vector<1x16x16x128xbf16> to vector<16x16x128xbf16>
    %76 = vector.shape_cast %73 : vector<16x16x128xbf16> to vector<1x16x16x128xbf16>
    tpu.vector_store %arg5[%c0_68, %c0_69, %c0_70, %c0_71], %76 {strides = array<i32>} : memref<1x16x16x128xbf16, #tpu.memory_space<vmem>>, vector<1x16x16x128xbf16>,
    return
  }
  func.func @transform_0(%arg0: i32) -> (i32, i32, i32, i32) {
    %c0_i32 = arith.constant 0 : i32
    %c0_i32_0 = arith.constant 0 : i32
    %c0_i32_1 = arith.constant 0 : i32
    %c0_i32_2 = arith.constant 0 : i32
    return %arg0, %c0_i32, %c0_i32_0, %c0_i32_1 : i32, i32, i32, i32
  }
  func.func @transform_1(%arg0: i32) -> (i32, i32, i32) {
    %c0_i32 = arith.constant 0 : i32
    %c0_i32_0 = arith.constant 0 : i32
    %c0_i32_1 = arith.constant 0 : i32
    %c0_i32_2 = arith.constant 0 : i32
    return %c0_i32, %c0_i32_0, %c0_i32_1 : i32, i32, i32
  }
  func.func @transform_2(%arg0: i32) -> (i32, i32) {
    %c0_i32 = arith.constant 0 : i32
    %c0_i32_0 = arith.constant 0 : i32
    %c0_i32_1 = arith.constant 0 : i32
    return %c0_i32, %c0_i32_0 : i32, i32
  }
  func.func @transform_3(%arg0: i32) -> (i32, i32) {
    %c0_i32 = arith.constant 0 : i32
    %c0_i32_0 = arith.constant 0 : i32
    %c0_i32_1 = arith.constant 0 : i32
    return %c0_i32, %c0_i32_0 : i32, i32
  }
  func.func @transform_4(%arg0: i32) -> (i32, i32, i32, i32) {
    %c0_i32 = arith.constant 0 : i32
    %c0_i32_0 = arith.constant 0 : i32
    %c0_i32_1 = arith.constant 0 : i32
    %c0_i32_2 = arith.constant 0 : i32
    return %arg0, %c0_i32, %c0_i32_0, %c0_i32_1 : i32, i32, i32, i32
  }
}

module attributes {stable_mosaic.version = 11 : i64} {
  func.func @_conv_bn_relu_gap_bnneck_kernel(%arg0: i32, %arg1: memref<1x36x9x128xbf16, #tpu.memory_space<vmem>>, %arg2: memref<9x128x128xbf16, #tpu.memory_space<vmem>>, %arg3: memref<1x128xf32, #tpu.memory_space<vmem>>, %arg4: memref<1x128xf32, #tpu.memory_space<vmem>>, %arg5: memref<1x128xf32, #tpu.memory_space<vmem>>, %arg6: memref<1x128xf32, #tpu.memory_space<vmem>>, %arg7: memref<1x1x128xbf16, #tpu.memory_space<vmem>>) attributes {dimension_semantics = [#tpu.dimension_semantics<parallel>], iteration_bounds = array<i64: 2>, scalar_prefetch = 0 : i64, scratch_operands = 0 : i64, tpu.core_type = #tpu.core_type<tc>, window_params = [{transform_indices = @transform_0, window_bounds = array<i64: 1, 36, 9, 128>}, {pipeline_mode = #tpu.pipeline_mode<synchronous>, transform_indices = @transform_1, window_bounds = array<i64: 9, 128, 128>}, {pipeline_mode = #tpu.pipeline_mode<synchronous>, transform_indices = @transform_2, window_bounds = array<i64: 1, 128>}, {pipeline_mode = #tpu.pipeline_mode<synchronous>, transform_indices = @transform_3, window_bounds = array<i64: 1, 128>}, {pipeline_mode = #tpu.pipeline_mode<synchronous>, transform_indices = @transform_4, window_bounds = array<i64: 1, 128>}, {pipeline_mode = #tpu.pipeline_mode<synchronous>, transform_indices = @transform_5, window_bounds = array<i64: 1, 128>}, {transform_indices = @transform_6, window_bounds = array<i64: 1, 1, 128>}]} {
    %cst = arith.constant 0.000000e+00 : f32
    %0 = vector.broadcast %cst : f32 to vector<64x128xf32>
    %c0 = arith.constant 0 : index
    %c0_0 = arith.constant 0 : index
    %c0_1 = arith.constant 0 : index
    %c0_2 = arith.constant 0 : index
    %1 = vector.load %arg1[%c0, %c0_0, %c0_1, %c0_2] : memref<1x36x9x128xbf16, #tpu.memory_space<vmem>>, vector<1x8x8x128xbf16>
    %2 = vector.shape_cast %1 : vector<1x8x8x128xbf16> to vector<8x8x128xbf16>
    %3 = vector.shape_cast %2 : vector<8x8x128xbf16> to vector<64x128xbf16>
    %c0_3 = arith.constant 0 : index
    %c0_4 = arith.constant 0 : index
    %c0_5 = arith.constant 0 : index
    %4 = vector.load %arg2[%c0_3, %c0_4, %c0_5] : memref<9x128x128xbf16, #tpu.memory_space<vmem>>, vector<1x128x128xbf16>
    %5 = vector.shape_cast %4 : vector<1x128x128xbf16> to vector<128x128xbf16>
    %cst_6 = arith.constant dense<0.000000e+00> : vector<64x128xf32>
    %6 = tpu.matmul %3, %5, %cst_6 {dimension_numbers = #tpu.dot_dimension_numbers<[1], [0], [0], [1], [0, 0, 1, 1], [], []>} : vector<64x128xbf16>, vector<128x128xbf16>, vector<64x128xf32> -> vector<64x128xf32>
    %7 = arith.addf %0, %6 : vector<64x128xf32>
    %c0_7 = arith.constant 0 : index
    %c9 = arith.constant 9 : index
    %c0_8 = arith.constant 0 : index
    %c0_9 = arith.constant 0 : index
    %8 = vector.load %arg1[%c0_7, %c9, %c0_8, %c0_9] : memref<1x36x9x128xbf16, #tpu.memory_space<vmem>>, vector<1x8x8x128xbf16>
    %9 = vector.shape_cast %8 : vector<1x8x8x128xbf16> to vector<8x8x128xbf16>
    %10 = vector.shape_cast %9 : vector<8x8x128xbf16> to vector<64x128xbf16>
    %c1 = arith.constant 1 : index
    %c0_10 = arith.constant 0 : index
    %c0_11 = arith.constant 0 : index
    %11 = vector.load %arg2[%c1, %c0_10, %c0_11] : memref<9x128x128xbf16, #tpu.memory_space<vmem>>, vector<1x128x128xbf16>
    %12 = vector.shape_cast %11 : vector<1x128x128xbf16> to vector<128x128xbf16>
    %cst_12 = arith.constant dense<0.000000e+00> : vector<64x128xf32>
    %13 = tpu.matmul %10, %12, %cst_12 {dimension_numbers = #tpu.dot_dimension_numbers<[1], [0], [0], [1], [0, 0, 1, 1], [], []>} : vector<64x128xbf16>, vector<128x128xbf16>, vector<64x128xf32> -> vector<64x128xf32>
    %14 = arith.addf %7, %13 : vector<64x128xf32>
    %c0_13 = arith.constant 0 : index
    %c0_14 = arith.constant 0 : index
    %c1_15 = arith.constant 1 : index
    %c0_16 = arith.constant 0 : index
    %15 = vector.load %arg1[%c0_13, %c0_14, %c1_15, %c0_16] : memref<1x36x9x128xbf16, #tpu.memory_space<vmem>>, vector<1x8x8x128xbf16>
    %16 = vector.shape_cast %15 : vector<1x8x8x128xbf16> to vector<8x8x128xbf16>
    %17 = vector.shape_cast %16 : vector<8x8x128xbf16> to vector<64x128xbf16>
    %c2 = arith.constant 2 : index
    %c0_17 = arith.constant 0 : index
    %c0_18 = arith.constant 0 : index
    %18 = vector.load %arg2[%c2, %c0_17, %c0_18] : memref<9x128x128xbf16, #tpu.memory_space<vmem>>, vector<1x128x128xbf16>
    %19 = vector.shape_cast %18 : vector<1x128x128xbf16> to vector<128x128xbf16>
    %cst_19 = arith.constant dense<0.000000e+00> : vector<64x128xf32>
    %20 = tpu.matmul %17, %19, %cst_19 {dimension_numbers = #tpu.dot_dimension_numbers<[1], [0], [0], [1], [0, 0, 1, 1], [], []>} : vector<64x128xbf16>, vector<128x128xbf16>, vector<64x128xf32> -> vector<64x128xf32>
    %21 = arith.addf %14, %20 : vector<64x128xf32>
    %c0_20 = arith.constant 0 : index
    %c18 = arith.constant 18 : index
    %c0_21 = arith.constant 0 : index
    %c0_22 = arith.constant 0 : index
    %22 = vector.load %arg1[%c0_20, %c18, %c0_21, %c0_22] : memref<1x36x9x128xbf16, #tpu.memory_space<vmem>>, vector<1x8x8x128xbf16>
    %23 = vector.shape_cast %22 : vector<1x8x8x128xbf16> to vector<8x8x128xbf16>
    %24 = vector.shape_cast %23 : vector<8x8x128xbf16> to vector<64x128xbf16>
    %c3 = arith.constant 3 : index
    %c0_23 = arith.constant 0 : index
    %c0_24 = arith.constant 0 : index
    %25 = vector.load %arg2[%c3, %c0_23, %c0_24] : memref<9x128x128xbf16, #tpu.memory_space<vmem>>, vector<1x128x128xbf16>
    %26 = vector.shape_cast %25 : vector<1x128x128xbf16> to vector<128x128xbf16>
    %cst_25 = arith.constant dense<0.000000e+00> : vector<64x128xf32>
    %27 = tpu.matmul %24, %26, %cst_25 {dimension_numbers = #tpu.dot_dimension_numbers<[1], [0], [0], [1], [0, 0, 1, 1], [], []>} : vector<64x128xbf16>, vector<128x128xbf16>, vector<64x128xf32> -> vector<64x128xf32>
    %28 = arith.addf %21, %27 : vector<64x128xf32>
    %c0_26 = arith.constant 0 : index
    %c27 = arith.constant 27 : index
    %c0_27 = arith.constant 0 : index
    %c0_28 = arith.constant 0 : index
    %29 = vector.load %arg1[%c0_26, %c27, %c0_27, %c0_28] : memref<1x36x9x128xbf16, #tpu.memory_space<vmem>>, vector<1x8x8x128xbf16>
    %30 = vector.shape_cast %29 : vector<1x8x8x128xbf16> to vector<8x8x128xbf16>
    %31 = vector.shape_cast %30 : vector<8x8x128xbf16> to vector<64x128xbf16>
    %c4 = arith.constant 4 : index
    %c0_29 = arith.constant 0 : index
    %c0_30 = arith.constant 0 : index
    %32 = vector.load %arg2[%c4, %c0_29, %c0_30] : memref<9x128x128xbf16, #tpu.memory_space<vmem>>, vector<1x128x128xbf16>
    %33 = vector.shape_cast %32 : vector<1x128x128xbf16> to vector<128x128xbf16>
    %cst_31 = arith.constant dense<0.000000e+00> : vector<64x128xf32>
    %34 = tpu.matmul %31, %33, %cst_31 {dimension_numbers = #tpu.dot_dimension_numbers<[1], [0], [0], [1], [0, 0, 1, 1], [], []>} : vector<64x128xbf16>, vector<128x128xbf16>, vector<64x128xf32> -> vector<64x128xf32>
    %35 = arith.addf %28, %34 : vector<64x128xf32>
    %c0_32 = arith.constant 0 : index
    %c18_33 = arith.constant 18 : index
    %c1_34 = arith.constant 1 : index
    %c0_35 = arith.constant 0 : index
    %36 = vector.load %arg1[%c0_32, %c18_33, %c1_34, %c0_35] : memref<1x36x9x128xbf16, #tpu.memory_space<vmem>>, vector<1x8x8x128xbf16>
    %37 = vector.shape_cast %36 : vector<1x8x8x128xbf16> to vector<8x8x128xbf16>
    %38 = vector.shape_cast %37 : vector<8x8x128xbf16> to vector<64x128xbf16>
    %c5 = arith.constant 5 : index
    %c0_36 = arith.constant 0 : index
    %c0_37 = arith.constant 0 : index
    %39 = vector.load %arg2[%c5, %c0_36, %c0_37] : memref<9x128x128xbf16, #tpu.memory_space<vmem>>, vector<1x128x128xbf16>
    %40 = vector.shape_cast %39 : vector<1x128x128xbf16> to vector<128x128xbf16>
    %cst_38 = arith.constant dense<0.000000e+00> : vector<64x128xf32>
    %41 = tpu.matmul %38, %40, %cst_38 {dimension_numbers = #tpu.dot_dimension_numbers<[1], [0], [0], [1], [0, 0, 1, 1], [], []>} : vector<64x128xbf16>, vector<128x128xbf16>, vector<64x128xf32> -> vector<64x128xf32>
    %42 = arith.addf %35, %41 : vector<64x128xf32>
    %c0_39 = arith.constant 0 : index
    %c1_40 = arith.constant 1 : index
    %c0_41 = arith.constant 0 : index
    %c0_42 = arith.constant 0 : index
    %43 = vector.load %arg1[%c0_39, %c1_40, %c0_41, %c0_42] : memref<1x36x9x128xbf16, #tpu.memory_space<vmem>>, vector<1x8x8x128xbf16>
    %44 = vector.shape_cast %43 : vector<1x8x8x128xbf16> to vector<8x8x128xbf16>
    %45 = vector.shape_cast %44 : vector<8x8x128xbf16> to vector<64x128xbf16>
    %c6 = arith.constant 6 : index
    %c0_43 = arith.constant 0 : index
    %c0_44 = arith.constant 0 : index
    %46 = vector.load %arg2[%c6, %c0_43, %c0_44] : memref<9x128x128xbf16, #tpu.memory_space<vmem>>, vector<1x128x128xbf16>
    %47 = vector.shape_cast %46 : vector<1x128x128xbf16> to vector<128x128xbf16>
    %cst_45 = arith.constant dense<0.000000e+00> : vector<64x128xf32>
    %48 = tpu.matmul %45, %47, %cst_45 {dimension_numbers = #tpu.dot_dimension_numbers<[1], [0], [0], [1], [0, 0, 1, 1], [], []>} : vector<64x128xbf16>, vector<128x128xbf16>, vector<64x128xf32> -> vector<64x128xf32>
    %49 = arith.addf %42, %48 : vector<64x128xf32>
    %c0_46 = arith.constant 0 : index
    %c10 = arith.constant 10 : index
    %c0_47 = arith.constant 0 : index
    %c0_48 = arith.constant 0 : index
    %50 = vector.load %arg1[%c0_46, %c10, %c0_47, %c0_48] : memref<1x36x9x128xbf16, #tpu.memory_space<vmem>>, vector<1x8x8x128xbf16>
    %51 = vector.shape_cast %50 : vector<1x8x8x128xbf16> to vector<8x8x128xbf16>
    %52 = vector.shape_cast %51 : vector<8x8x128xbf16> to vector<64x128xbf16>
    %c7 = arith.constant 7 : index
    %c0_49 = arith.constant 0 : index
    %c0_50 = arith.constant 0 : index
    %53 = vector.load %arg2[%c7, %c0_49, %c0_50] : memref<9x128x128xbf16, #tpu.memory_space<vmem>>, vector<1x128x128xbf16>
    %54 = vector.shape_cast %53 : vector<1x128x128xbf16> to vector<128x128xbf16>
    %cst_51 = arith.constant dense<0.000000e+00> : vector<64x128xf32>
    %55 = tpu.matmul %52, %54, %cst_51 {dimension_numbers = #tpu.dot_dimension_numbers<[1], [0], [0], [1], [0, 0, 1, 1], [], []>} : vector<64x128xbf16>, vector<128x128xbf16>, vector<64x128xf32> -> vector<64x128xf32>
    %56 = arith.addf %49, %55 : vector<64x128xf32>
    %c0_52 = arith.constant 0 : index
    %c1_53 = arith.constant 1 : index
    %c1_54 = arith.constant 1 : index
    %c0_55 = arith.constant 0 : index
    %57 = vector.load %arg1[%c0_52, %c1_53, %c1_54, %c0_55] : memref<1x36x9x128xbf16, #tpu.memory_space<vmem>>, vector<1x8x8x128xbf16>
    %58 = vector.shape_cast %57 : vector<1x8x8x128xbf16> to vector<8x8x128xbf16>
    %59 = vector.shape_cast %58 : vector<8x8x128xbf16> to vector<64x128xbf16>
    %c8 = arith.constant 8 : index
    %c0_56 = arith.constant 0 : index
    %c0_57 = arith.constant 0 : index
    %60 = vector.load %arg2[%c8, %c0_56, %c0_57] : memref<9x128x128xbf16, #tpu.memory_space<vmem>>, vector<1x128x128xbf16>
    %61 = vector.shape_cast %60 : vector<1x128x128xbf16> to vector<128x128xbf16>
    %cst_58 = arith.constant dense<0.000000e+00> : vector<64x128xf32>
    %62 = tpu.matmul %59, %61, %cst_58 {dimension_numbers = #tpu.dot_dimension_numbers<[1], [0], [0], [1], [0, 0, 1, 1], [], []>} : vector<64x128xbf16>, vector<128x128xbf16>, vector<64x128xf32> -> vector<64x128xf32>
    %63 = arith.addf %56, %62 : vector<64x128xf32>
    %c0_59 = arith.constant 0 : index
    %c0_60 = arith.constant 0 : index
    %64 = vector.load %arg3[%c0_59, %c0_60] : memref<1x128xf32, #tpu.memory_space<vmem>>, vector<1x128xf32>
    %65 = vector.broadcast %64 : vector<1x128xf32> to vector<64x128xf32>
    %66 = arith.mulf %63, %65 : vector<64x128xf32>
    %c0_61 = arith.constant 0 : index
    %c0_62 = arith.constant 0 : index
    %67 = vector.load %arg4[%c0_61, %c0_62] : memref<1x128xf32, #tpu.memory_space<vmem>>, vector<1x128xf32>
    %68 = vector.broadcast %67 : vector<1x128xf32> to vector<64x128xf32>
    %69 = arith.addf %66, %68 : vector<64x128xf32>
    %cst_63 = arith.constant 0.000000e+00 : f32
    %70 = vector.broadcast %cst_63 : f32 to vector<64x128xf32>
    %71 = arith.maximumf %69, %70 : vector<64x128xf32>
    %72 = arith.truncf %71 : vector<64x128xf32> to vector<64x128xbf16>
    %73 = arith.extf %72 : vector<64x128xbf16> to vector<64x128xf32>
    %cst_64 = arith.constant dense<0.000000e+00> : vector<128xf32>
    %74 = vector.multi_reduction <add>, %73, %cst_64 [0] : vector<64x128xf32> to vector<128xf32>
    %75 = vector.shape_cast %74 : vector<128xf32> to vector<1x128xf32>
    %cst_65 = arith.constant 6.400000e+01 : f32
    %76 = vector.broadcast %cst_65 : f32 to vector<1x128xf32>
    %77 = arith.divf %75, %76 : vector<1x128xf32>
    %c0_66 = arith.constant 0 : index
    %c0_67 = arith.constant 0 : index
    %78 = vector.load %arg5[%c0_66, %c0_67] : memref<1x128xf32, #tpu.memory_space<vmem>>, vector<1x128xf32>
    %79 = arith.mulf %77, %78 : vector<1x128xf32>
    %c0_68 = arith.constant 0 : index
    %c0_69 = arith.constant 0 : index
    %80 = vector.load %arg6[%c0_68, %c0_69] : memref<1x128xf32, #tpu.memory_space<vmem>>, vector<1x128xf32>
    %81 = arith.addf %79, %80 : vector<1x128xf32>
    %82 = arith.truncf %81 : vector<1x128xf32> to vector<1x128xbf16>
    %c0_70 = arith.constant 0 : index
    %c0_71 = arith.constant 0 : index
    %c0_72 = arith.constant 0 : index
    %83 = vector.load %arg7[%c0_70, %c0_71, %c0_72] : memref<1x1x128xbf16, #tpu.memory_space<vmem>>, vector<1x1x128xbf16>
    %84 = vector.shape_cast %83 : vector<1x1x128xbf16> to vector<1x128xbf16>
    %85 = vector.shape_cast %82 : vector<1x128xbf16> to vector<1x1x128xbf16>
    tpu.vector_store %arg7[%c0_70, %c0_71, %c0_72], %85 {strides = array<i32>} : memref<1x1x128xbf16, #tpu.memory_space<vmem>>, vector<1x1x128xbf16>,
    return
  }
  func.func @transform_0(%arg0: i32) -> (i32, i32, i32, i32) {
    %c0_i32 = arith.constant 0 : i32
    %c0_i32_0 = arith.constant 0 : i32
    %c0_i32_1 = arith.constant 0 : i32
    %c0_i32_2 = arith.constant 0 : i32
    return %arg0, %c0_i32, %c0_i32_0, %c0_i32_1 : i32, i32, i32, i32
  }
  func.func @transform_1(%arg0: i32) -> (i32, i32, i32) {
    %c0_i32 = arith.constant 0 : i32
    %c0_i32_0 = arith.constant 0 : i32
    %c0_i32_1 = arith.constant 0 : i32
    %c0_i32_2 = arith.constant 0 : i32
    return %c0_i32, %c0_i32_0, %c0_i32_1 : i32, i32, i32
  }
  func.func @transform_2(%arg0: i32) -> (i32, i32) {
    %c0_i32 = arith.constant 0 : i32
    %c0_i32_0 = arith.constant 0 : i32
    %c0_i32_1 = arith.constant 0 : i32
    return %c0_i32, %c0_i32_0 : i32, i32
  }
  func.func @transform_3(%arg0: i32) -> (i32, i32) {
    %c0_i32 = arith.constant 0 : i32
    %c0_i32_0 = arith.constant 0 : i32
    %c0_i32_1 = arith.constant 0 : i32
    return %c0_i32, %c0_i32_0 : i32, i32
  }
  func.func @transform_4(%arg0: i32) -> (i32, i32) {
    %c0_i32 = arith.constant 0 : i32
    %c0_i32_0 = arith.constant 0 : i32
    %c0_i32_1 = arith.constant 0 : i32
    return %c0_i32, %c0_i32_0 : i32, i32
  }
  func.func @transform_5(%arg0: i32) -> (i32, i32) {
    %c0_i32 = arith.constant 0 : i32
    %c0_i32_0 = arith.constant 0 : i32
    %c0_i32_1 = arith.constant 0 : i32
    return %c0_i32, %c0_i32_0 : i32, i32
  }
  func.func @transform_6(%arg0: i32) -> (i32, i32, i32) {
    %c0_i32 = arith.constant 0 : i32
    %c0_i32_0 = arith.constant 0 : i32
    %c0_i32_1 = arith.constant 0 : i32
    return %arg0, %c0_i32, %c0_i32_0 : i32, i32, i32
  }
}

</mosaic_0001>

<bundles_post_ra>
// kernel: fastreid_forward.3
= control target key start
LH: loop header
LB: loop body
LE: loop exit
PB: predicated region body
PF: predicated region fallthrough
CT: control target
= control target key end

     0   :  { %s3035_s21 = smov 0   ;;  %s3427_s0 = inlined_call_operand.vmem [shape: bf16[2,36,9,128], index: 0, kind: input, shape index: {}]   ;;  %s3428_s1 = inlined_call_operand.vmem [shape: bf16[9,128,128], index: 1, kind: input, shape index: {}]   ;;  %s3429_s2 = inlined_call_operand.vmem [shape: f32[1,128], index: 2, kind: input, shape index: {}]   ;;  %s3430_s3 = inlined_call_operand.vmem [shape: f32[1,128], index: 3, kind: input, shape index: {}]   ;;  %s3431_s4 = inlined_call_operand.vmem [shape: f32[1,128], index: 4, kind: input, shape index: {}]   ;;  %s3432_s5 = inlined_call_operand.vmem [shape: f32[1,128], index: 5, kind: input, shape index: {}]   ;;  %s3433_s6 = inlined_call_operand.vmem [shape: bf16[2,1,128], index: 6, kind: output, shape index: {}]  }
   0x1 LB: > { %s2229_s22 = sadd.s32 4294967295, %s2998_s21   ;;  %p2233_p0 = scmp.ge.s32.totalorder %s2998_s21, 1  ;;  %s2998_s21 = sphi %s3035_s21, %s16_s21  }
   0x2   : > { %p212_p1 = scmp.lt.s32.totalorder %s2998_s21, 3 }
   0x4   : > { %p213_p2 = pnand %p2233_p0, %p212_p1 }
   0x6   : > { %216 = sbr.rel (%p213_p2) target bundleno = 419 (0x1a3), region = 44 }
   0xb   : > { %v2896_v0 = vld [vmem:[%s3428_s1 + $0x78] sm:$0xff]   ;;  %p240_p3 = scmp.lt.s32.totalorder %s2229_s22, 1  ;;  %v2898_v2 = vld [vmem:[%s3428_s1 + $0x70] sm:$0xff]   ;;  %v2900_v4 = vld [vmem:[%s3428_s1 + $0x68] sm:$0xff]   ;;  %vm589_vm0 = vsmask.f32 3328 }
   0xc   : > { %v2897_v1 = vld [vmem:[%s3428_s1 + $0x38] sm:$0xff]   ;;  %2655 = vmatprep.subr.bf16.mxu0 %v2896_v0  ;;  %v2899_v3 = vld [vmem:[%s3428_s1 + $0x30] sm:$0xff]   ;;  %v2901_v5 = vld [vmem:[%s3428_s1 + $0x28] sm:$0xff]   ;;  %vm590_vm1 = vsmask.f32 7440  ;;  %vm2176_vm3 = vcmask 1040384  }
   0xd   : > { %2679 = vmatprep.subr.bf16.mxu1 %v2897_v1  ;;  %2656 = vmatpush3.bf16.msra.mxu0 %v2896_v0  ;;  %s3443_s22 = smov (!%p240_p3, %s2229_s22), 1  ;;  %v2902_v6 = vld [vmem:[%s3428_s1 + $0x60] sm:$0xff]   ;;  %v2904_v8 = vld [vmem:[%s3428_s1 + $0x58] sm:$0xff]   ;;  %v2906_v10 = vld [vmem:[%s3428_s1 + $0x50] sm:$0xff]   ;;  %vm2177_vm4 = vsmask.f32 256 }
   0xe   : > { %2680 = vmatpush3.bf16.msra.mxu1 %v2897_v1  ;;  %2657 = vmatprep.subr.bf16.mxu0 %v2898_v2  ;;  %v2903_v7 = vld [vmem:[%s3428_s1 + $0x20] sm:$0xff]   ;;  %s2887_s15 = smul.u32 288, %s3443_s22  ;;  %v2905_v9 = vld [vmem:[%s3428_s1 + $0x18] sm:$0xff]   ;;  %v2907_v11 = vld [vmem:[%s3428_s1 + $0x10] sm:$0xff]   ;;  %s247_s8 = scalar_lea.vmem %s3433_s6, %s3443_s22 }
   0xf   : > { %2681 = vmatprep.subr.bf16.mxu1 %v2899_v3  ;;  %v2908_v14 = vld [vmem:[%s3428_s1 + $0x48] sm:$0xff]   ;;  %v2910_v16 = vld [vmem:[%s3428_s1 + $0x40] sm:$0xff]   ;;  %v2916_v19 = vld [vmem:[%s3428_s1 + $0xb8] sm:$0xff]  }
  0x10   : > { %s3079_s24 = scalar_lea.vmem %s3427_s0, %s2887_s15  ;;  %v2909_v15 = vld [vmem:[%s3428_s1 + $0x8] sm:$0xff]   ;;  %v2911_v17 = vld [vmem:[%s3428_s1] sm:$0xff]   ;;  %v2917_v20 = vld [vmem:[%s3428_s1 + $0xf8] sm:$0xff]  }
  0x11   : > { %2658 = vmatpush3.bf16.msra.mxu0 %v2898_v2  ;;  %v2912_v12 = vld [vmem:[%s3079_s24 + $0x48] ss:$8 sps:$4 sm:$0xff]   ;;  %v2914_v18 = vld [vmem:[%s3079_s24 + $0x58] ss:$8 sps:$4 sm:$0xff]   ;;  %v574_v33 = vld [vmem:[%s3079_s24 + $0x4] sm:$0x1] }
  0x12   : > { %2682 = vmatpush3.bf16.msra.mxu1 %v2899_v3  ;;  %2659 = vmatprep.subr.bf16.mxu0 %v2900_v4  ;;  %v2913_v13 = vld [vmem:[%s3079_s24] ss:$8 sps:$4 sm:$0xff]   ;;  %v2915_v21 = vld [vmem:[%s3079_s24 + $0x10] ss:$8 sps:$4 sm:$0xff]   ;;  %v576_v35 = vld [vmem:[%s3079_s24 + $0xc] sm:$0x1] }
  0x13   : > { %2683 = vmatprep.subr.bf16.mxu1 %v2901_v5  ;;  %2671 = vmatprep.mubr.bf16.mxu0 %v2912_v12  ;;  %v2918_v22 = vld [vmem:[%s3428_s1 + $0xb0] sm:$0xff]   ;;  %v2927_v25 = vld [vmem:[%s3079_s24 + $0x20] ss:$8 sps:$4 sm:$0xff]   ;;  %v2924_v36 = vld [vmem:[%s3428_s1 + $0x98] sm:$0xff]   ;;  %v602_v39 = vshll.u32 %v574_v33, 16  ;;  %v616_v44 = vshll.u32 %v576_v35, 16 }
  0x14   : > { %2695 = vmatprep.mubr.bf16.mxu1 %v2913_v13  ;;  %v2919_v23 = vld [vmem:[%s3428_s1 + $0xf0] sm:$0xff]   ;;  %v2920_v26 = vld [vmem:[%s3428_s1 + $0xa8] sm:$0xff]   ;;  %v2922_v28 = vld [vmem:[%s3428_s1 + $0xa0] sm:$0xff]  }
  0x15   : > { %2660 = vmatpush3.bf16.msra.mxu0 %v2900_v4  ;;  %v2926_v24 = vld [vmem:[%s3079_s24 + $0x68] ss:$8 sps:$4 sm:$0xff]   ;;  %v2928_v29 = vld [vmem:[%s3079_s24 + $0x78] ss:$8 sps:$4 sm:$0xff]   ;;  %v578_v45 = vld [vmem:[%s3079_s24 + $0x14] sm:$0x1] }
  0x16   : > { %2684 = vmatpush3.bf16.msra.mxu1 %v2901_v5  ;;  %2661 = vmatprep.subr.bf16.mxu0 %v2902_v6  ;;  %v2921_v27 = vld [vmem:[%s3428_s1 + $0xe8] sm:$0xff]   ;;  %v2923_v30 = vld [vmem:[%s3428_s1 + $0xe0] sm:$0xff]   ;;  %v2929_v31 = vld [vmem:[%s3079_s24 + $0x30] ss:$8 sps:$4 sm:$0xff]   ;;  %v604_v49 = vrot.slane %v602_v39, 5  ;;  %v618_v53 = vrot.slane %v616_v44, 5 }
  0x17   : > { %2685 = vmatprep.subr.bf16.mxu1 %v2903_v7  ;;  %v573_v32 = vld [vmem:[%s3079_s24] sm:$0xf]  ;;  %v575_v34 = vld [vmem:[%s3079_s24 + $0x8] sm:$0xf]  ;;  %v577_v41 = vld [vmem:[%s3079_s24 + $0x10] sm:$0xf] }
  0x18   : > { %v593_v37 = vshrl.u32 %v573_v32, 16  ;;  %v596_v38 = vshll.u32 %v573_v32, 16  ;;  %v607_v40 = vshrl.u32 %v575_v34, 16  ;;  %v2925_v42 = vld [vmem:[%s3428_s1 + $0xd8] sm:$0xff]   ;;  %v610_v43 = vshll.u32 %v575_v34, 16  ;;  %v2930_v60 = vld [vmem:[%s3428_s1 + $0x90] sm:$0xff]   ;;  %vm3150_vm2 = vmor %vm589_vm0, %vm590_vm1 }
  0x19   : > { %2662 = vmatpush3.bf16.msra.mxu0 %v2902_v6  ;;  %v579_v46 = vld [vmem:[%s3079_s24 + $0x18] sm:$0xf]  ;;  %v580_v51 = vld [vmem:[%s3079_s24 + $0x1c] sm:$0x1]  ;;  %v621_v54 = vshrl.u32 %v577_v41, 16  ;;  %v624_v55 = vshll.u32 %v577_v41, 16  ;;  %vm2178_vm5 = vmand %vm2176_vm3, %vm2177_vm4 }
  0x1a   : > { %2686 = vmatpush3.bf16.msra.mxu1 %v2903_v7  ;;  %2663 = vmatprep.subr.bf16.mxu0 %v2904_v8  ;;  %v595_v47 = vrot.slane %v593_v37, 4  ;;  %v598_v48 = vrot.slane %v596_v38, 5  ;;  %v609_v50 = vrot.slane %v607_v40, 4  ;;  %v612_v52 = vrot.slane %v610_v43, 5  ;;  %v2936_v2 = vld [vmem:[%s3079_s24 + $0x90] ss:$8 sps:$4 sm:$0xff]  }
  0x1b   : > { %2687 = vmatprep.subr.bf16.mxu1 %v2905_v9  ;;  %v630_v57 = vshll.u32 %v578_v45, 16  ;;  %v635_v58 = vshrl.u32 %v579_v46, 16  ;;  %v638_v59 = vshll.u32 %v579_v46, 16  ;;  %v623_v63 = vrot.slane %v621_v54, 4  ;;  %v2931_v3 = vld [vmem:[%s3428_s1 + $0xd0] sm:$0xff]   ;;  %v2932_v12 = vld [vmem:[%s3428_s1 + $0x88] sm:$0xff]  }
  0x1c   : > { %v599_v56 = vor.u32 %v598_v48, %v595_v47  ;;  %v613_v62 = vor.u32 %v612_v52, %v609_v50  ;;  %v626_v0 = vrot.slane %v624_v55, 5  ;;  %v644_v1 = vshll.u32 %v580_v51, 16  ;;  %v585_v32 = vld [vmem:[%s3079_s24 + $0x30] sm:$0xf]  ;;  %v587_v41 = vld [vmem:[%s3079_s24 + $0x38] sm:$0xf] }
  0x1d   : > { %2664 = vmatpush3.bf16.msra.mxu0 %v2904_v8  ;;  %v637_v5 = vrot.slane %v635_v58, 4  ;;  %v640_v6 = vrot.slane %v638_v59, 5  ;;  %v677_v37 = vshrl.u32 %v585_v32, 16  ;;  %v588_v45 = vld [vmem:[%s3079_s24 + $0x3c] sm:$0x1]  ;;  %v691_v50 = vshrl.u32 %v587_v41, 16 }
  0x1e   : > { %2688 = vmatpush3.bf16.msra.mxu1 %v2905_v9  ;;  %2665 = vmatprep.subr.bf16.mxu0 %v2906_v10  ;;  %v600_v4 = vrot.slane %v599_v56, 4  ;;  %v614_v7 = vrot.slane %v613_v62, 4  ;;  %v627_v8 = vor.u32 %v626_v0, %v623_v63  ;;  %v3158_v9 = vrot.slane %v630_v57, 5  ;;  %v2937_v52 = vld [vmem:[%s3428_s1 + $0x138] sm:$0xff]   ;;  %v2939_v56 = vld [vmem:[%s3079_s24 + $0xa0] ss:$8 sps:$4 sm:$0xff]  }
  0x1f   : > { %2689 = vmatprep.subr.bf16.mxu1 %v2907_v11  ;;  %v679_v46 = vrot.slane %v677_v37, 4  ;;  %v694_v51 = vshll.u32 %v587_v41, 16  ;;  %v700_v54 = vshll.u32 %v588_v45, 16  ;;  %v2938_v55 = vld [vmem:[%s3428_s1 + $0x178] sm:$0xff]   ;;  %v693_v59 = vrot.slane %v691_v50, 4 }
  0x20   : > { %v619_v13 = vsel %vm3150_vm2, %v614_v7, %v618_v53  ;;  %v2941_v7 = vld [vmem:[%s3428_s1 + $0x170] sm:$0xff]   ;;  %v2388_v41 = vld [vmem:[%s3079_s24 + $0xa4] sm:$0x1] }
  0x21   : > { %2666 = vmatpush3.bf16.msra.mxu0 %v2906_v10  ;;  %v605_v10 = vsel %vm3150_vm2, %v600_v4, %v604_v49 }
  0x22   : > { %2690 = vmatpush3.bf16.msra.mxu1 %v2907_v11  ;;  %2667 = vmatprep.subr.bf16.mxu0 %v2908_v14  ;;  %v641_v11 = vor.u32 %v640_v6, %v637_v5  ;;  %v702_v5 = vrot.slane %v700_v54, 5  ;;  %v2944_v6 = vld [vmem:[%s3079_s24 + $0xb0] ss:$8 sps:$4 sm:$0xff]  }
  0x23   : > { %2691 = vmatprep.subr.bf16.mxu1 %v2909_v15 }
  0x25   : > { %2668 = vmatpush3.bf16.msra.mxu0 %v2908_v14  ;;  %v628_v14 = vrot.slane %v627_v8, 4 }
  0x26   : > { %2692 = vmatpush3.bf16.msra.mxu1 %v2909_v15  ;;  %2669 = vmatprep.subr.bf16.mxu0 %v2910_v16  ;;  %v646_v15 = vrot.slane %v644_v1, 5  ;;  %v2940_v1 = vld [vmem:[%s3428_s1 + $0x130] sm:$0xff]  }
  0x27   : > { %2693 = vmatprep.subr.bf16.mxu1 %v2911_v17 }
  0x29   : > { %2670 = vmatpush3.bf16.msra.mxu0 %v2910_v16  ;;  %v2933_v16 = vld [vmem:[%s3428_s1 + $0xc8] sm:$0xff]  }
  0x2a   : > { %2694 = vmatpush3.bf16.msra.mxu1 %v2911_v17  ;;  %2703 = vmatprep.subr.bf16.mxu0 %v2916_v19  ;;  %v2299_v17 = vcombine.low %v605_v10, %v619_v13  ;;  %v2942_v10 = vld [vmem:[%s3428_s1 + $0x128] sm:$0xff]  }
  0x2b   : > { %2727 = vmatprep.subr.bf16.mxu1 %v2917_v20  ;;  %v2943_v13 = vld [vmem:[%s3428_s1 + $0x168] sm:$0xff]  }
  0x2c   : > { %2672 = vmatmul.mubr.bf16.vlgmr.msra.gmra.mxu0 %v2914_v18  ;;  %v642_v18 = vrot.slane %v641_v11, 4 }
  0x2d   : > { %2696 = vmatmul.mubr.bf16.vlgmr.msra.gmra.mxu1 %v2915_v21  ;;  %2704 = vmatpush3.bf16.msra.mxu0 %v2916_v19  ;;  %v581_v19 = vld [vmem:[%s3079_s24 + $0x20] sm:$0xf] }
  0x2e   : > { %2728 = vmatpush3.bf16.msra.mxu1 %v2917_v20  ;;  %2705 = vmatprep.subr.bf16.mxu0 %v2918_v22  ;;  %v582_v20 = vld [vmem:[%s3079_s24 + $0x24] sm:$0x1] }
  0x2f   : > { %2729 = vmatprep.subr.bf16.mxu1 %v2919_v23  ;;  %2675 = vmatprep.mubr.bf16.mxu0 %v2926_v24  ;;  %v2934_v21 = vld [vmem:[%s3428_s1 + $0x80] sm:$0xff]   ;;  %v584_v24 = vld [vmem:[%s3079_s24 + $0x2c] sm:$0x1] }
  0x30   : > { %2699 = vmatprep.mubr.bf16.mxu1 %v2927_v25  ;;  %v649_v25 = vshrl.u32 %v581_v19, 16  ;;  %v672_v35 = vshll.u32 %v584_v24, 16  ;;  %v2386_v24 = vld [vmem:[%s3079_s24 + $0x9c] sm:$0x1] }
  0x31   : > { %2706 = vmatpush3.bf16.msra.mxu0 %v2918_v22  ;;  %v633_v22 = vsel %vm3150_vm2, %v628_v14, %v3158_v9 }
  0x32   : > { %2730 = vmatpush3.bf16.msra.mxu1 %v2919_v23  ;;  %2707 = vmatprep.subr.bf16.mxu0 %v2920_v26  ;;  %v583_v23 = vld [vmem:[%s3079_s24 + $0x28] sm:$0xf]  ;;  %v651_v33 = vrot.slane %v649_v25, 4  ;;  %v674_v44 = vrot.slane %v672_v35, 5 }
  0x33   : > { %2731 = vmatprep.subr.bf16.mxu1 %v2921_v27 }
  0x34   : > { %2676 = vmatmul.mubr.bf16.gmra.mxu0 %v2928_v29  ;;  %v658_v29 = vshll.u32 %v582_v20, 16  ;;  %v2949_v20 = vld [vmem:[%s3428_s1 + $0x158] sm:$0xff]  }
  0x35   : > { %2708 = vmatpush3.bf16.msra.mxu0 %v2920_v26  ;;  %2700 = vmatmul.mubr.bf16.gmra.mxu1 %v2929_v31  ;;  %v652_v26 = vshll.u32 %v581_v19, 16  ;;  %v666_v31 = vshll.u32 %v583_v23, 16  ;;  %v2956_v19 = vld [vmem:[%s3079_s24 + $0xd8] ss:$8 sps:$4 sm:$0xff]  }
  0x36   : > { %2732 = vmatpush3.bf16.msra.mxu1 %v2921_v27  ;;  %2709 = vmatprep.subr.bf16.mxu0 %v2922_v28  ;;  %v2935_v27 = vld [vmem:[%s3428_s1 + $0xc0] sm:$0xff]   ;;  %v660_v38 = vrot.slane %v658_v29, 5 }
  0x37   : > { %2733 = vmatprep.subr.bf16.mxu1 %v2923_v30  ;;  %2743 = vmatprep.mubr.bf16.mxu1 %v2936_v2  ;;  %v654_v34 = vrot.slane %v652_v26, 5  ;;  %v668_v40 = vrot.slane %v666_v31, 5  ;;  %v2950_v31 = vld [vmem:[%s3428_s1 + $0x110] sm:$0xff]  }
  0x38   : > { %2719 = vmatprep.mubr.bf16.mxu0 %v2299_v17  ;;  %v2947_v17 = vld [vmem:[%s3428_s1 + $0x160] sm:$0xff]  }
  0x39   : > { %2710 = vmatpush3.bf16.msra.mxu0 %v2922_v28  ;;  %v647_v28 = vsel %vm3150_vm2, %v642_v18, %v646_v15  ;;  %v655_v43 = vor.u32 %v654_v34, %v651_v33  ;;  %v2945_v15 = vld [vmem:[%s3079_s24 + $0xc0] ss:$8 sps:$4 sm:$0xff]   ;;  %v2948_v18 = vld [vmem:[%s3428_s1 + $0x118] sm:$0xff]   ;;  %v2951_v34 = vld [vmem:[%s3428_s1 + $0x150] sm:$0xff]  }
  0x3a   : > { %2734 = vmatpush3.bf16.msra.mxu1 %v2923_v30  ;;  %2711 = vmatprep.subr.bf16.mxu0 %v2924_v36  ;;  %v663_v30 = vshrl.u32 %v583_v23, 16  ;;  %v2300_v62 = vcombine.low %v633_v22, %v647_v28  ;;  %v2384_v22 = vld [vmem:[%s3079_s24 + $0x94] sm:$0x1]  ;;  %v2385_v23 = vld [vmem:[%s3079_s24 + $0x98] sm:$0xf] }
  0x3b   : > { %2735 = vmatprep.subr.bf16.mxu1 %v2925_v42  ;;  %v656_v53 = vrot.slane %v655_v43, 4  ;;  %v1231_v28 = vshrl.u32 %v2385_v23, 16  ;;  %v1234_v29 = vshll.u32 %v2385_v23, 16  ;;  %v2389_v43 = vld [vmem:[%s3079_s24 + $0xa8] sm:$0xf] }
  0x3c   : > { %v665_v39 = vrot.slane %v663_v30, 4  ;;  %v1240_v30 = vshll.u32 %v2386_v24, 16  ;;  %v1262_v50 = vshll.u32 %v2389_v43, 16  ;;  %v2396_v24 = vld [vmem:[%s3079_s24 + $0xc4] sm:$0x1] }
  0x3d   : > { %2712 = vmatpush3.bf16.msra.mxu0 %v2924_v36  ;;  %v586_v36 = vld [vmem:[%s3079_s24 + $0x34] sm:$0x1]  ;;  %v661_v63 = vsel %vm3150_vm2, %v656_v53, %v660_v38  ;;  %v1236_v37 = vrot.slane %v1234_v29, 5  ;;  %v2397_v29 = vld [vmem:[%s3079_s24 + $0xc8] sm:$0xf] }
  0x3e   : > { %2736 = vmatpush3.bf16.msra.mxu1 %v2925_v42  ;;  %2713 = vmatprep.subr.bf16.mxu0 %v2930_v60  ;;  %v680_v42 = vshll.u32 %v585_v32, 16  ;;  %v686_v47 = vshll.u32 %v586_v36, 16  ;;  %v669_v48 = vor.u32 %v668_v40, %v665_v39  ;;  %v1233_v36 = vrot.slane %v1231_v28, 4  ;;  %v2387_v40 = vld [vmem:[%s3079_s24 + $0xa0] sm:$0xf] }
  0x3f   : > { %2737 = vmatprep.subr.bf16.mxu1 %v2931_v3  ;;  %v1242_v38 = vrot.slane %v1240_v30, 5  ;;  %v1245_v45 = vshrl.u32 %v2387_v40, 16 }
  0x40   : > { %v682_v49 = vrot.slane %v680_v42, 5  ;;  %v670_v57 = vrot.slane %v669_v48, 4  ;;  %v688_v0 = vrot.slane %v686_v47, 5  ;;  %v1237_v42 = vor.u32 %v1236_v37, %v1233_v36  ;;  %v2961_v37 = vld [vmem:[%s3428_s1 + $0x1f0] sm:$0xff]  }
  0x41   : > { %2714 = vmatpush3.bf16.msra.mxu0 %v2930_v60  ;;  %v696_v60 = vrot.slane %v694_v51, 5  ;;  %v1254_v48 = vshll.u32 %v2388_v41, 16  ;;  %v1315_v41 = vshrl.u32 %v2397_v29, 16 }
  0x42   : > { %2738 = vmatpush3.bf16.msra.mxu1 %v2931_v3  ;;  %2715 = vmatprep.subr.bf16.mxu0 %v2932_v12  ;;  %v683_v58 = vor.u32 %v682_v49, %v679_v46  ;;  %v675_v2 = vsel %vm3150_vm2, %v670_v57, %v674_v44  ;;  %v2390_v44 = vld [vmem:[%s3079_s24 + $0xac] sm:$0x1]  ;;  %v1248_v46 = vshll.u32 %v2387_v40, 16  ;;  %v1259_v49 = vshrl.u32 %v2389_v43, 16 }
  0x43   : > { %2739 = vmatprep.subr.bf16.mxu1 %v2933_v16  ;;  %v697_v4 = vor.u32 %v696_v60, %v693_v59  ;;  %v2301_v8 = vcombine.low %v661_v63, %v675_v2  ;;  %v1238_v51 = vrot.slane %v1237_v42, 4  ;;  %v1268_v54 = vshll.u32 %v2390_v44, 16  ;;  %v2953_v59 = vld [vmem:[%s3428_s1 + $0x148] sm:$0xff]  }
  0x44   : > { %v684_v3 = vrot.slane %v683_v58, 4  ;;  %v1250_v53 = vrot.slane %v1248_v46, 5  ;;  %v1261_v57 = vrot.slane %v1259_v49, 4  ;;  %v1264_v58 = vrot.slane %v1262_v50, 5  ;;  %v2964_v49 = vld [vmem:[%s3428_s1 + $0x1a8] sm:$0xff]  }
  0x45   : > { %2716 = vmatpush3.bf16.msra.mxu0 %v2932_v12  ;;  %v698_v9 = vrot.slane %v697_v4, 4  ;;  %v1243_v60 = vsel %vm3150_vm2, %v1238_v51, %v1242_v38  ;;  %v1256_v63 = vrot.slane %v1254_v48, 5  ;;  %v1270_v2 = vrot.slane %v1268_v54, 5 }
  0x46   : > { %2740 = vmatpush3.bf16.msra.mxu1 %v2933_v16  ;;  %2717 = vmatprep.subr.bf16.mxu0 %v2934_v21  ;;  %v689_v11 = vsel %vm3150_vm2, %v684_v3, %v688_v0  ;;  %v2946_v16 = vld [vmem:[%s3428_s1 + $0x120] sm:$0xff]   ;;  %v1310_v40 = vshll.u32 %v2396_v24, 16  ;;  %v1318_v43 = vshll.u32 %v2397_v29, 16  ;;  %v1317_v48 = vrot.slane %v1315_v41, 4  ;;  %v2507_v24 = vld [vmem:[%s3079_s24 + $0x28] sm:$0xf] }
  0x47   : > { %2741 = vmatprep.subr.bf16.mxu1 %v2935_v27  ;;  %v703_v12 = vsel %vm3150_vm2, %v698_v9, %v702_v5  ;;  %v2954_v3 = vld [vmem:[%s3428_s1 + $0x100] sm:$0xff]   ;;  %v2958_v9 = vld [vmem:[%s3428_s1 + $0x1b8] sm:$0xff]   ;;  %v2981_v41 = vld [vmem:[%s3428_s1 + $0x230] sm:$0xff]  }
  0x48   : > { %v2302_v14 = vcombine.low %v689_v11, %v703_v12  ;;  %v2955_v5 = vld [vmem:[%s3428_s1 + $0x140] sm:$0xff]   ;;  %v2392_v11 = vld [vmem:[%s3079_s24 + $0xb4] sm:$0x1]  ;;  %v2393_v12 = vld [vmem:[%s3079_s24 + $0xb8] sm:$0xf]  ;;  %v1312_v51 = vrot.slane %v1310_v40, 5 }
  0x49   : > { %2718 = vmatpush3.bf16.msra.mxu0 %v2934_v21  ;;  %v2383_v21 = vld [vmem:[%s3079_s24 + $0x90] sm:$0xf] }
  0x4a   : > { %2742 = vmatpush3.bf16.msra.mxu1 %v2935_v27  ;;  %2751 = vmatprep.subr.bf16.mxu0 %v2937_v52  ;;  %v1217_v25 = vshrl.u32 %v2383_v21, 16  ;;  %v1220_v26 = vshll.u32 %v2383_v21, 16  ;;  %v1226_v27 = vshll.u32 %v2384_v22, 16  ;;  %v1287_v21 = vshrl.u32 %v2393_v12, 16 }
  0x4b   : > { %2775 = vmatprep.subr.bf16.mxu1 %v2938_v55  ;;  %v1290_v22 = vshll.u32 %v2393_v12, 16  ;;  %v2974_v12 = vld [vmem:[%s3428_s1 + $0x180] sm:$0xff]  }
  0x4c   : > { %2720 = vmatmul.mubr.bf16.vlgmr.msra.gmra.mxu0 %v2300_v62  ;;  %v1219_v32 = vrot.slane %v1217_v25, 4  ;;  %v1222_v33 = vrot.slane %v1220_v26, 5  ;;  %v1228_v35 = vrot.slane %v1226_v27, 5 }
  0x4d   : > { %2744 = vmatmul.mubr.bf16.vlgmr.msra.gmra.mxu1 %v2939_v56  ;;  %2752 = vmatpush3.bf16.msra.mxu0 %v2937_v52  ;;  %v1247_v52 = vrot.slane %v1245_v45, 4  ;;  %v2962_v45 = vld [vmem:[%s3079_s24 + $0xf8] ss:$8 sps:$4 sm:$0xff]  }
  0x4e   : > { %2776 = vmatpush3.bf16.msra.mxu1 %v2938_v55  ;;  %2753 = vmatprep.subr.bf16.mxu0 %v2940_v1  ;;  %v1223_v39 = vor.u32 %v1222_v33, %v1219_v32  ;;  %v2952_v55 = vld [vmem:[%s3428_s1 + $0x108] sm:$0xff]   ;;  %v1289_v32 = vrot.slane %v1287_v21, 4  ;;  %v1292_v33 = vrot.slane %v1290_v22, 5  ;;  %v2977_v21 = vld [vmem:[%s3079_s24 + $0x18] ss:$8 sps:$4 sm:$0xff]  }
  0x4f   : > { %2777 = vmatprep.subr.bf16.mxu1 %v2941_v7  ;;  %2723 = vmatprep.mubr.bf16.mxu0 %v2301_v8  ;;  %v1251_v62 = vor.u32 %v1250_v53, %v1247_v52  ;;  %v2391_v8 = vld [vmem:[%s3079_s24 + $0xb0] sm:$0xf]  ;;  %v1320_v52 = vrot.slane %v1318_v43, 5  ;;  %v2979_v22 = vld [vmem:[%s3428_s1 + $0x238] sm:$0xff]  }
  0x50   : > { %2747 = vmatprep.mubr.bf16.mxu1 %v2944_v6  ;;  %v1224_v47 = vrot.slane %v1223_v39, 4  ;;  %v1293_v42 = vor.u32 %v1292_v33, %v1289_v32  ;;  %v2510_v33 = vld [vmem:[%s3079_s24 + $0x34] sm:$0x1] }
  0x51   : > { %2754 = vmatpush3.bf16.msra.mxu0 %v2940_v1  ;;  %v1265_v1 = vor.u32 %v1264_v58, %v1261_v57  ;;  %v1252_v4 = vrot.slane %v1251_v62, 4  ;;  %v1321_v58 = vor.u32 %v1320_v52, %v1317_v48 }
  0x52   : > { %2778 = vmatpush3.bf16.msra.mxu1 %v2941_v7  ;;  %2755 = vmatprep.subr.bf16.mxu0 %v2942_v10  ;;  %v1229_v56 = vsel %vm3150_vm2, %v1224_v47, %v1228_v35  ;;  %v2398_v35 = vld [vmem:[%s3079_s24 + $0xcc] sm:$0x1]  ;;  %v1294_v50 = vrot.slane %v1293_v42, 4 }
  0x53   : > { %2779 = vmatprep.subr.bf16.mxu1 %v2943_v13  ;;  %v2415_v0 = vcombine.low %v1229_v56, %v1243_v60  ;;  %v1266_v6 = vrot.slane %v1265_v1, 4  ;;  %v1257_v7 = vsel %vm3150_vm2, %v1252_v4, %v1256_v63  ;;  %v1324_v44 = vshll.u32 %v2398_v35, 16  ;;  %v2963_v56 = vld [vmem:[%s3079_s24 + $0x108] ss:$8 sps:$4 sm:$0xff]   ;;  %v2966_v1 = vld [vmem:[%s3428_s1 + $0x1a0] sm:$0xff]  }
  0x54   : > { %2724 = vmatmul.mubr.bf16.gmra.mxu0 %v2302_v14  ;;  %v2959_v14 = vld [vmem:[%s3428_s1 + $0x1f8] sm:$0xff]   ;;  %v1322_v63 = vrot.slane %v1321_v58, 4  ;;  %v2976_v4 = vld [vmem:[%s3079_s24 + $0x8] ss:$8 sps:$4 sm:$0xff]   ;;  %v1900_v35 = vshll.u32 %v2507_v24, 16 }
  0x55   : > { %2756 = vmatpush3.bf16.msra.mxu0 %v2942_v10  ;;  %2748 = vmatmul.mubr.bf16.gmra.mxu1 %v2945_v15  ;;  %v1271_v10 = vsel %vm3150_vm2, %v1266_v6, %v1270_v2  ;;  %v2978_v6 = vld [vmem:[%s3079_s24 + $0x50] ss:$8 sps:$4 sm:$0xff]   ;;  %v2984_v58 = vld [vmem:[%s3428_s1 + $0x228] sm:$0xff]  }
  0x56   : > { %2780 = vmatpush3.bf16.msra.mxu1 %v2943_v13  ;;  %2757 = vmatprep.subr.bf16.mxu0 %v2946_v16  ;;  %v2394_v13 = vld [vmem:[%s3079_s24 + $0xbc] sm:$0x1]  ;;  %v2416_v15 = vcombine.low %v1257_v7, %v1271_v10  ;;  %v2972_v10 = vld [vmem:[%s3428_s1 + $0x188] sm:$0xff]  }
  0x57   : > { %2781 = vmatprep.subr.bf16.mxu1 %v2947_v17  ;;  %2767 = vmatprep.mubr.bf16.mxu0 %v2956_v19  ;;  %v2395_v19 = vld [vmem:[%s3079_s24 + $0xc0] sm:$0xf]  ;;  %v1296_v23 = vshll.u32 %v2394_v13, 16  ;;  %v2969_v7 = vld [vmem:[%s3428_s1 + $0x1d8] sm:$0xff]  }
  0x58   : > { %2791 = vmatprep.mubr.bf16.mxu1 %v2415_v0  ;;  %v1301_v25 = vshrl.u32 %v2395_v19, 16  ;;  %v1304_v30 = vshll.u32 %v2395_v19, 16  ;;  %v2975_v13 = vld [vmem:[%s3428_s1 + $0x1c0] sm:$0xff]  }
  0x59   : > { %2758 = vmatpush3.bf16.msra.mxu0 %v2946_v16  ;;  %v1273_v16 = vshrl.u32 %v2391_v8, 16 }
  0x5a   : > { %2782 = vmatpush3.bf16.msra.mxu1 %v2947_v17  ;;  %2759 = vmatprep.subr.bf16.mxu0 %v2948_v18  ;;  %v1276_v17 = vshll.u32 %v2391_v8, 16  ;;  %v1303_v36 = vrot.slane %v1301_v25, 4  ;;  %v1306_v39 = vrot.slane %v1304_v30, 5  ;;  %v2970_v8 = vld [vmem:[%s3428_s1 + $0x190] sm:$0xff]   ;;  %v2508_v25 = vld [vmem:[%s3079_s24 + $0x2c] sm:$0x1] }
  0x5b   : > { %2783 = vmatprep.subr.bf16.mxu1 %v2949_v20  ;;  %v1275_v26 = vrot.slane %v1273_v16, 4  ;;  %v2501_v16 = vld [vmem:[%s3079_s24 + $0x10] sm:$0xf] }
  0x5c   : > { %v1278_v27 = vrot.slane %v1276_v17, 5  ;;  %v1307_v47 = vor.u32 %v1306_v39, %v1303_v36  ;;  %v2502_v17 = vld [vmem:[%s3079_s24 + $0x14] sm:$0x1]  ;;  %v2509_v30 = vld [vmem:[%s3079_s24 + $0x30] sm:$0xf] }
  0x5d   : > { %2760 = vmatpush3.bf16.msra.mxu0 %v2948_v18  ;;  %v1282_v18 = vshll.u32 %v2392_v11, 16  ;;  %v2973_v11 = vld [vmem:[%s3428_s1 + $0x1c8] sm:$0xff]   ;;  %v1864_v32 = vshll.u32 %v2502_v17, 16  ;;  %v1911_v39 = vshrl.u32 %v2509_v30, 16  ;;  %v1914_v40 = vshll.u32 %v2509_v30, 16 }
  0x5e   : > { %2784 = vmatpush3.bf16.msra.mxu1 %v2949_v20  ;;  %2761 = vmatprep.subr.bf16.mxu0 %v2950_v31  ;;  %v2957_v20 = vld [vmem:[%s3079_s24 + $0xe8] ss:$8 sps:$4 sm:$0xff]   ;;  %v1279_v38 = vor.u32 %v1278_v27, %v1275_v26  ;;  %v1308_v54 = vrot.slane %v1307_v47, 4 }
  0x5f   : > { %2785 = vmatprep.subr.bf16.mxu1 %v2951_v34  ;;  %v1284_v28 = vrot.slane %v1282_v18, 5  ;;  %v2980_v36 = vld [vmem:[%s3079_s24 + $0x60] ss:$8 sps:$4 sm:$0xff]   ;;  %v1913_v48 = vrot.slane %v1911_v39, 4 }
  0x60   : > { %v1280_v46 = vrot.slane %v1279_v38, 4  ;;  %v1313_v62 = vsel %vm3150_vm2, %v1308_v54, %v1312_v51  ;;  %v1906_v38 = vshll.u32 %v2508_v25, 16 }
  0x61   : > { %2762 = vmatpush3.bf16.msra.mxu0 %v2950_v31  ;;  %v2960_v31 = vld [vmem:[%s3428_s1 + $0x1b0] sm:$0xff]  }
  0x62   : > { %2786 = vmatpush3.bf16.msra.mxu1 %v2951_v34  ;;  %2763 = vmatprep.subr.bf16.mxu0 %v2952_v55  ;;  %v1298_v34 = vrot.slane %v1296_v23, 5  ;;  %v1285_v53 = vsel %vm3150_vm2, %v1280_v46, %v1284_v28  ;;  %v1858_v23 = vshll.u32 %v2501_v16, 16  ;;  %v2982_v46 = vld [vmem:[%s3079_s24 + $0x28] ss:$8 sps:$4 sm:$0xff]  }
  0x63   : > { %2787 = vmatprep.subr.bf16.mxu1 %v2953_v59 }
  0x64   : > { %v1299_v57 = vsel %vm3150_vm2, %v1294_v50, %v1298_v34  ;;  %v1897_v34 = vshrl.u32 %v2507_v24, 16  ;;  %v2985_v50 = vld [vmem:[%s3079_s24 + $0x70] ss:$8 sps:$4 sm:$0xff]  }
  0x65   : > { %2764 = vmatpush3.bf16.msra.mxu0 %v2952_v55  ;;  %v1326_v55 = vrot.slane %v1324_v44, 5  ;;  %v2417_v60 = vcombine.low %v1285_v53, %v1299_v57  ;;  %v1902_v44 = vrot.slane %v1900_v35, 5  ;;  %v1866_v53 = vrot.slane %v1864_v32, 5  ;;  %v2514_v32 = vld [vmem:[%s3079_s24 + $0x44] sm:$0x1] }
  0x66   : > { %2788 = vmatpush3.bf16.msra.mxu1 %v2953_v59  ;;  %2765 = vmatprep.subr.bf16.mxu0 %v2954_v3  ;;  %v2965_v59 = vld [vmem:[%s3428_s1 + $0x1e8] sm:$0xff]   ;;  %v1899_v43 = vrot.slane %v1897_v34, 4 }
  0x67   : > { %2789 = vmatprep.subr.bf16.mxu1 %v2955_v5  ;;  %v1327_v0 = vsel %vm3150_vm2, %v1322_v63, %v1326_v55  ;;  %v1908_v55 = vrot.slane %v1906_v38, 5 }
  0x68   : > { %v2418_v2 = vcombine.low %v1313_v62, %v1327_v0  ;;  %v1903_v54 = vor.u32 %v1902_v44, %v1899_v43  ;;  %v2983_v62 = vld [vmem:[%s3079_s24 + $0x38] ss:$8 sps:$4 sm:$0xff]  }
  0x69   : > { %2766 = vmatpush3.bf16.msra.mxu0 %v2954_v3  ;;  %v2967_v3 = vld [vmem:[%s3428_s1 + $0x1e0] sm:$0xff]  }
  0x6a   : > { %2790 = vmatpush3.bf16.msra.mxu1 %v2955_v5  ;;  %2799 = vmatprep.subr.bf16.mxu0 %v2958_v9  ;;  %v2968_v5 = vld [vmem:[%s3428_s1 + $0x198] sm:$0xff]  }
  0x6b   : > { %2823 = vmatprep.subr.bf16.mxu1 %v2959_v14 }
  0x6c   : > { %2768 = vmatmul.mubr.bf16.vlgmr.msra.gmra.mxu0 %v2957_v20  ;;  %v1855_v20 = vshrl.u32 %v2501_v16, 16 }
  0x6d   : > { %2792 = vmatmul.mubr.bf16.vlgmr.msra.gmra.mxu1 %v2416_v15  ;;  %2800 = vmatpush3.bf16.msra.mxu0 %v2958_v9  ;;  %v2971_v9 = vld [vmem:[%s3428_s1 + $0x1d0] sm:$0xff]   ;;  %v2500_v15 = vld [vmem:[%s3079_s24 + $0xc] sm:$0x1] }
  0x6e   : > { %2824 = vmatpush3.bf16.msra.mxu1 %v2959_v14  ;;  %2801 = vmatprep.subr.bf16.mxu0 %v2960_v31  ;;  %v2499_v14 = vld [vmem:[%s3079_s24 + $0x8] sm:$0xf]  ;;  %v1850_v28 = vshll.u32 %v2500_v15, 16  ;;  %v1857_v29 = vrot.slane %v1855_v20, 4  ;;  %v2988_v15 = vld [vmem:[%s3428_s1 + $0x218] sm:$0xff]   ;;  %v2989_v20 = vld [vmem:[%s3428_s1 + $0x210] sm:$0xff]  }
  0x6f   : > { %2825 = vmatprep.subr.bf16.mxu1 %v2961_v37  ;;  %2771 = vmatprep.mubr.bf16.mxu0 %v2962_v45  ;;  %v1841_v18 = vshrl.u32 %v2499_v14, 16  ;;  %v1844_v19 = vshll.u32 %v2499_v14, 16  ;;  %v1920_v45 = vshll.u32 %v2510_v33, 16 }
  0x70   : > { %2795 = vmatprep.mubr.bf16.mxu1 %v2417_v60  ;;  %v1852_v47 = vrot.slane %v1850_v28, 5 }
  0x71   : > { %2802 = vmatpush3.bf16.msra.mxu0 %v2960_v31  ;;  %v1843_v26 = vrot.slane %v1841_v18, 4  ;;  %v1846_v27 = vrot.slane %v1844_v19, 5  ;;  %v1860_v31 = vrot.slane %v1858_v23, 5  ;;  %v1922_v57 = vrot.slane %v1920_v45, 5 }
  0x72   : > { %2826 = vmatpush3.bf16.msra.mxu1 %v2961_v37  ;;  %2803 = vmatprep.subr.bf16.mxu0 %v2964_v49 }
  0x73   : > { %2827 = vmatprep.subr.bf16.mxu1 %v2965_v59  ;;  %v1847_v37 = vor.u32 %v1846_v27, %v1843_v26  ;;  %v1861_v42 = vor.u32 %v1860_v31, %v1857_v29  ;;  %v2506_v26 = vld [vmem:[%s3079_s24 + $0x24] sm:$0x1]  ;;  %v2512_v31 = vld [vmem:[%s3079_s24 + $0x3c] sm:$0x1] }
  0x74   : > { %2772 = vmatmul.mubr.bf16.gmra.mxu0 %v2963_v56  ;;  %v1934_v39 = vshll.u32 %v2512_v31, 16 }
  0x75   : > { %2804 = vmatpush3.bf16.msra.mxu0 %v2964_v49  ;;  %2796 = vmatmul.mubr.bf16.gmra.mxu1 %v2418_v2  ;;  %v1916_v49 = vrot.slane %v1914_v40, 5  ;;  %v1848_v51 = vrot.slane %v1847_v37, 4  ;;  %v1862_v52 = vrot.slane %v1861_v42, 4  ;;  %v2990_v37 = vld [vmem:[%s3428_s1 + $0x208] sm:$0xff]  }
  0x76   : > { %2828 = vmatpush3.bf16.msra.mxu1 %v2965_v59  ;;  %2805 = vmatprep.subr.bf16.mxu0 %v2966_v1  ;;  %v1904_v59 = vrot.slane %v1903_v54, 4 }
  0x77   : > { %2829 = vmatprep.subr.bf16.mxu1 %v2967_v3  ;;  %2815 = vmatprep.mubr.bf16.mxu0 %v2976_v4  ;;  %v1917_v56 = vor.u32 %v1916_v49, %v1913_v48  ;;  %v1853_v63 = vsel %vm3150_vm2, %v1848_v51, %v1852_v47  ;;  %v1867_v0 = vsel %vm3150_vm2, %v1862_v52, %v1866_v53  ;;  %v2987_v4 = vld [vmem:[%s3428_s1 + $0x220] sm:$0xff]   ;;  %v1936_v48 = vrot.slane %v1934_v39, 5 }
  0x78   : > { %2839 = vmatprep.mubr.bf16.mxu1 %v2978_v6  ;;  %v1909_v2 = vsel %vm3150_vm2, %v1904_v59, %v1908_v55  ;;  %v2505_v6 = vld [vmem:[%s3079_s24 + $0x20] sm:$0xf] }
  0x79   : > { %2806 = vmatpush3.bf16.msra.mxu0 %v2966_v1  ;;  %v1918_v60 = vrot.slane %v1917_v56, 4  ;;  %v2986_v1 = vld [vmem:[%s3079_s24 + $0x80] ss:$8 sps:$4 sm:$0xff]   ;;  %v1886_v14 = vshll.u32 %v2505_v6, 16 }
  0x7a   : > { %2830 = vmatpush3.bf16.msra.mxu1 %v2967_v3  ;;  %2807 = vmatprep.subr.bf16.mxu0 %v2968_v5 }
  0x7b   : > { %2831 = vmatprep.subr.bf16.mxu1 %v2969_v7  ;;  %v1923_v3 = vsel %vm3150_vm2, %v1918_v60, %v1922_v57  ;;  %v1888_v25 = vrot.slane %v1886_v14, 5 }
  0x7d   : > { %2808 = vmatpush3.bf16.msra.mxu0 %v2968_v5  ;;  %v2503_v5 = vld [vmem:[%s3079_s24 + $0x18] sm:$0xf] }
  0x7e   : > { %2832 = vmatpush3.bf16.msra.mxu1 %v2969_v7  ;;  %2809 = vmatprep.subr.bf16.mxu0 %v2970_v8  ;;  %v2531_v7 = vcombine.low %v1853_v63, %v1867_v0 }
  0x7f   : > { %2833 = vmatprep.subr.bf16.mxu1 %v2971_v9 }
  0x81   : > { %2810 = vmatpush3.bf16.msra.mxu0 %v2970_v8  ;;  %v2511_v8 = vld [vmem:[%s3079_s24 + $0x38] sm:$0xf] }
  0x82   : > { %2834 = vmatpush3.bf16.msra.mxu1 %v2971_v9  ;;  %2811 = vmatprep.subr.bf16.mxu0 %v2972_v10  ;;  %v2513_v9 = vld [vmem:[%s3079_s24 + $0x40] sm:$0xf]  ;;  %v1925_v16 = vshrl.u32 %v2511_v8, 16  ;;  %v1928_v17 = vshll.u32 %v2511_v8, 16 }
  0x83   : > { %2835 = vmatprep.subr.bf16.mxu1 %v2973_v11  ;;  %v1939_v18 = vshrl.u32 %v2513_v9, 16  ;;  %v1942_v19 = vshll.u32 %v2513_v9, 16 }
  0x84   : > { %v1927_v27 = vrot.slane %v1925_v16, 4  ;;  %v1930_v28 = vrot.slane %v1928_v17, 5 }
  0x85   : > { %2812 = vmatpush3.bf16.msra.mxu0 %v2972_v10  ;;  %v2533_v10 = vcombine.low %v1909_v2, %v1923_v3  ;;  %v1941_v29 = vrot.slane %v1939_v18, 4  ;;  %v1944_v30 = vrot.slane %v1942_v19, 5 }
  0x86   : > { %2836 = vmatpush3.bf16.msra.mxu1 %v2973_v11  ;;  %2813 = vmatprep.subr.bf16.mxu0 %v2974_v12  ;;  %v1869_v11 = vshrl.u32 %v2503_v5, 16  ;;  %v1931_v38 = vor.u32 %v1930_v28, %v1927_v27 }
  0x87   : > { %2837 = vmatprep.subr.bf16.mxu1 %v2975_v13  ;;  %v1945_v40 = vor.u32 %v1944_v30, %v1941_v29 }
  0x88   : > { %v1932_v47 = vrot.slane %v1931_v38, 4 }
  0x89   : > { %2814 = vmatpush3.bf16.msra.mxu0 %v2974_v12  ;;  %v1872_v12 = vshll.u32 %v2503_v5, 16  ;;  %v1946_v49 = vrot.slane %v1945_v40, 4 }
  0x8a   : > { %2838 = vmatpush3.bf16.msra.mxu1 %v2975_v13  ;;  %2847 = vmatprep.subr.bf16.mxu0 %v2979_v22  ;;  %v1883_v13 = vshrl.u32 %v2505_v6, 16  ;;  %v1937_v53 = vsel %vm3150_vm2, %v1932_v47, %v1936_v48 }
  0x8b   : > { %2871 = vmatprep.subr.bf16.mxu1 %v2979_v22  ;;  %v1874_v23 = vrot.slane %v1872_v12, 5 }
  0x8c   : > { %2816 = vmatmul.mubr.bf16.vlgmr.msra.gmra.mxu0 %v2977_v21  ;;  %v2504_v21 = vld [vmem:[%s3079_s24 + $0x1c] sm:$0x1]  ;;  %v1885_v24 = vrot.slane %v1883_v13, 4 }
  0x8d   : > { %2840 = vmatmul.mubr.bf16.vlgmr.msra.gmra.mxu1 %v2980_v36  ;;  %2848 = vmatpush3.bf16.msra.mxu0 %v2979_v22  ;;  %v1878_v34 = vshll.u32 %v2504_v21, 16  ;;  %v1892_v36 = vshll.u32 %v2506_v26, 16 }
  0x8e   : > { %2879 = vmatpush3.bf16.msra.mxu1 %v2979_v22  ;;  %2849 = vmatprep.subr.bf16.mxu0 %v2981_v41  ;;  %v1871_v22 = vrot.slane %v1869_v11, 4  ;;  %v1889_v35 = vor.u32 %v1888_v25, %v1885_v24 }
  0x8f   : > { %2872 = vmatprep.subr.bf16.mxu1 %v2981_v41  ;;  %2819 = vmatprep.mubr.bf16.mxu0 %v2982_v46  ;;  %v1880_v43 = vrot.slane %v1878_v34, 5  ;;  %v1894_v45 = vrot.slane %v1892_v36, 5  ;;  %v2991_v46 = vld [vmem:[%s3428_s1 + $0x200] sm:$0xff]  }
  0x90   : > { %2843 = vmatprep.mubr.bf16.mxu1 %v2985_v50  ;;  %v1875_v33 = vor.u32 %v1874_v23, %v1871_v22  ;;  %v1890_v44 = vrot.slane %v1889_v35, 4 }
  0x91   : > { %2850 = vmatpush3.bf16.msra.mxu0 %v2981_v41 }
  0x92   : > { %2880 = vmatpush3.bf16.msra.mxu1 %v2981_v41  ;;  %2851 = vmatprep.subr.bf16.mxu0 %v2984_v58  ;;  %v1948_v41 = vshll.u32 %v2514_v32, 16  ;;  %v1876_v42 = vrot.slane %v1875_v33, 4  ;;  %v1895_v52 = vsel %vm3150_vm2, %v1890_v44, %v1894_v45 }
  0x93   : > { %2873 = vmatprep.subr.bf16.mxu1 %v2984_v58 }
  0x94   : > { %2820 = vmatmul.mubr.bf16.gmra.mxu0 %v2983_v62  ;;  %v1950_v50 = vrot.slane %v1948_v41, 5  ;;  %v1881_v51 = vsel %vm3150_vm2, %v1876_v42, %v1880_v43 }
  0x95   : > { %2852 = vmatpush3.bf16.msra.mxu0 %v2984_v58  ;;  %2844 = vmatmul.mubr.bf16.gmra.mxu1 %v2986_v1  ;;  %v2532_v55 = vcombine.low %v1881_v51, %v1895_v52 }
  0x96   : > { %2881 = vmatpush3.bf16.msra.mxu1 %v2984_v58  ;;  %2853 = vmatprep.subr.bf16.mxu0 %v2987_v4  ;;  %v1951_v54 = vsel %vm3150_vm2, %v1946_v49, %v1950_v50 }
  0x97   : > { %2874 = vmatprep.subr.bf16.mxu1 %v2987_v4  ;;  %2863 = vmatprep.mubr.bf16.mxu0 %v2531_v7  ;;  %v2534_v56 = vcombine.low %v1937_v53, %v1951_v54 }
  0x98   : > { %2867 = vmatprep.mubr.bf16.mxu1 %v2533_v10 }
  0x99   : > { %2854 = vmatpush3.bf16.msra.mxu0 %v2987_v4 }
  0x9a   : > { %2882 = vmatpush3.bf16.msra.mxu1 %v2987_v4  ;;  %2855 = vmatprep.subr.bf16.mxu0 %v2988_v15 }
  0x9b   : > { %2875 = vmatprep.subr.bf16.mxu1 %v2988_v15 }
  0x9d   : > { %2856 = vmatpush3.bf16.msra.mxu0 %v2988_v15 }
  0x9e   : > { %2883 = vmatpush3.bf16.msra.mxu1 %v2988_v15  ;;  %2857 = vmatprep.subr.bf16.mxu0 %v2989_v20 }
  0x9f   : > { %2876 = vmatprep.subr.bf16.mxu1 %v2989_v20 }
  0xa1   : > { %2858 = vmatpush3.bf16.msra.mxu0 %v2989_v20 }
  0xa2   : > { %2884 = vmatpush3.bf16.msra.mxu1 %v2989_v20  ;;  %2859 = vmatprep.subr.bf16.mxu0 %v2990_v37 }
  0xa3   : > { %2877 = vmatprep.subr.bf16.mxu1 %v2990_v37 }
  0xa5   : > { %2860 = vmatpush3.bf16.msra.mxu0 %v2990_v37 }
  0xa6   : > { %2885 = vmatpush3.bf16.msra.mxu1 %v2990_v37  ;;  %2861 = vmatprep.subr.bf16.mxu0 %v2991_v46 }
  0xa7   : > { %2878 = vmatprep.subr.bf16.mxu1 %v2991_v46 }
  0xa9   : > { %2862 = vmatpush3.bf16.msra.mxu0 %v2991_v46 }
  0xaa   : > { %2886 = vmatpush3.bf16.msra.mxu1 %v2991_v46 }
  0xac   : > { %2864 = vmatmul.mubr.bf16.vlgmr.msra.gmra.mxu0 %v2532_v55 }
  0xad   : > { %2868 = vmatmul.mubr.bf16.vlgmr.msra.gmra.mxu1 %v2534_v56 }
  0xec   : > { %v2673_v57 = vpop.f32.mrf.mxu0 }
  0xed   : > { %v2697_v58 = vpop.f32.mrf.mxu1 }
  0xee   : > { %v405_v59 = vpop.f32.mrf.mxu0  ;;  %v551_v47 = vadd.f32 %v2697_v58, %v2673_v57 }
  0xef   : > { %v542_v60 = vpop.f32.mrf.mxu1 }
  0xf0   : > { %v2674_v62 = vpop.f32.mrf.mxu0  ;;  %v543_v49 = vadd.f32 %v542_v60, %v405_v59 }
  0xf1   : > { %v2698_v63 = vpop.f32.mrf.mxu1 }
  0xf2   : > { %v408_v0 = vpop.f32.mrf.mxu0  ;;  %v554_v52 = vadd.f32 %v2698_v63, %v2674_v62 }
  0xf3   : > { %v545_v1 = vpop.f32.mrf.mxu1 }
  0xf4   : > { %v2677_v2 = vpop.f32.mrf.mxu0  ;;  %v546_v55 = vadd.f32 %v545_v1, %v408_v0 }
  0xf5   : > { %v2701_v3 = vpop.f32.mrf.mxu1 }
  0xf6   : > { %v421_v4 = vpop.f32.mrf.mxu0  ;;  %v567_v60 = vadd.f32 %v2701_v3, %v2677_v2 }
  0xf7   : > { %v558_v61 = vpop.f32.mrf.mxu1 }
  0xf8   : > { %v2678_v5 = vpop.f32.mrf.mxu0  ;;  %v559_v53 = vadd.f32 %v558_v61, %v421_v4 }
  0xf9   : > { %v2702_v6 = vpop.f32.mrf.mxu1 }
  0xfa   : > { %v424_v7 = vpop.f32.mrf.mxu0 }
  0xfb   : > { %v561_v8 = vpop.f32.mrf.mxu1 }
 0x10c   : > { %v2721_v9 = vpop.f32.mrf.mxu0 }
 0x10d   : > { %v2745_v10 = vpop.f32.mrf.mxu1  ;;  %v852_v50 = vadd.f32 %v2721_v9, %v551_v47  ;;  %v562_v9 = vadd.f32 %v561_v8, %v424_v7 }
 0x10e   : > { %v819_v11 = vpop.f32.mrf.mxu0 }
 0x10f   : > { %v990_v12 = vpop.f32.mrf.mxu1  ;;  %v850_v54 = vadd.f32 %v819_v11, %v543_v49 }
 0x110   : > { %v2722_v13 = vpop.f32.mrf.mxu0 }
 0x111   : > { %v2746_v14 = vpop.f32.mrf.mxu1  ;;  %v853_v57 = vadd.f32 %v2722_v13, %v554_v52 }
 0x112   : > { %v822_v15 = vpop.f32.mrf.mxu0 }
 0x113   : > { %v993_v16 = vpop.f32.mrf.mxu1  ;;  %v851_v47 = vadd.f32 %v822_v15, %v546_v55  ;;  %v1024_v49 = vadd.f32 %v2746_v14, %v853_v57  ;;  %v2544_v57 = vld [vmem:[%s3430_s3] ss:$0 sm:$0xff] }
 0x114   : > { %v2725_v17 = vpop.f32.mrf.mxu0 }
 0x115   : > { %v2749_v18 = vpop.f32.mrf.mxu1  ;;  %v856_v4 = vadd.f32 %v2725_v17, %v567_v60 }
 0x116   : > { %v835_v19 = vpop.f32.mrf.mxu0 }
 0x117   : > { %v1006_v20 = vpop.f32.mrf.mxu1  ;;  %v854_v58 = vadd.f32 %v835_v19, %v559_v53  ;;  %v1027_v52 = vadd.f32 %v2749_v18, %v856_v4 }
 0x118   : > { %v2726_v21 = vpop.f32.mrf.mxu0 }
 0x119   : > { %v2750_v22 = vpop.f32.mrf.mxu1  ;;  %v1025_v0 = vadd.f32 %v1006_v20, %v854_v58 }
 0x11a   : > { %v838_v23 = vpop.f32.mrf.mxu0 }
 0x11b   : > { %v1009_v24 = vpop.f32.mrf.mxu1  ;;  %v855_v61 = vadd.f32 %v838_v23, %v562_v9 }
 0x11d   : > { %v1026_v53 = vadd.f32 %v1009_v24, %v855_v61 }
 0x12c   : > { %v2769_v25 = vpop.f32.mrf.mxu0 }
 0x12d   : > { %v2793_v26 = vpop.f32.mrf.mxu1 }
 0x12e   : > { %v1161_v27 = vpop.f32.mrf.mxu0 }
 0x12f   : > { %v1443_v28 = vpop.f32.mrf.mxu1 }
 0x130   : > { %v2770_v29 = vpop.f32.mrf.mxu0 }
 0x131   : > { %v2794_v30 = vpop.f32.mrf.mxu1  ;;  %v1195_v13 = vadd.f32 %v2770_v29, %v1024_v49 }
 0x132   : > { %v1164_v31 = vpop.f32.mrf.mxu0 }
 0x133   : > { %v1446_v32 = vpop.f32.mrf.mxu1  ;;  %v1477_v23 = vadd.f32 %v2794_v30, %v1195_v13  ;;  %v2543_v30 = vld [vmem:[%s3429_s2] ss:$0 sm:$0xff] }
 0x134   : > { %v2773_v33 = vpop.f32.mrf.mxu0 }
 0x135   : > { %v3396_v34 = vpop.f32.mrf.mxu1  ;;  %v1198_v17 = vadd.f32 %v2773_v33, %v1027_v52 }
 0x136   : > { %3436 = vst [vmem:[#allocation2_spill] sm:$0xff] %v3396_v34  ;;  %v1177_v35 = vpop.f32.mrf.mxu0  ;;  %v570_v34 = vadd.f32 %v2702_v6, %v2678_v5  ;;  %v1022_v6 = vadd.f32 %v993_v16, %v851_v47 }
 0x137   : > { %v1459_v36 = vpop.f32.mrf.mxu1  ;;  %v1196_v19 = vadd.f32 %v1177_v35, %v1025_v0 }
 0x138   : > { %v2774_v37 = vpop.f32.mrf.mxu0  ;;  %v857_v62 = vadd.f32 %v2726_v21, %v570_v34  ;;  %v1193_v2 = vadd.f32 %v1164_v31, %v1022_v6 }
 0x139   : > { %v2798_v38 = vpop.f32.mrf.mxu1  ;;  %v1478_v14 = vadd.f32 %v1459_v36, %v1196_v19 }
 0x13a   : > { %v1180_v39 = vpop.f32.mrf.mxu0 }
 0x13b   : > { %v1462_v40 = vpop.f32.mrf.mxu1  ;;  %v1197_v21 = vadd.f32 %v1180_v39, %v1026_v53 }
 0x13d   : > { %v3439_v18 = vld [vmem:[#allocation2_spill] sm:$0xff]  ;;  %v1479_v31 = vadd.f32 %v1462_v40, %v1197_v21 }
 0x13e   : > { %v1480_v24 = vadd.f32 %v3439_v18, %v1198_v17 }
 0x14c   : > { %v2817_v41 = vpop.f32.mrf.mxu0 }
 0x14d   : > { %v2841_v42 = vpop.f32.mrf.mxu1 }
 0x14e   : > { %v1614_v43 = vpop.f32.mrf.mxu0 }
 0x14f   : > { %v1785_v44 = vpop.f32.mrf.mxu1 }
 0x150   : > { %v2818_v45 = vpop.f32.mrf.mxu0 }
 0x151   : > { %v3398_v46 = vpop.f32.mrf.mxu1 }
 0x152   : > { %3437 = vst [vmem:[#allocation3_spill] sm:$0xff] %v3398_v46  ;;  %v1617_v48 = vpop.f32.mrf.mxu0  ;;  %v1023_v46 = vadd.f32 %v2745_v10, %v852_v50  ;;  %v1028_v10 = vadd.f32 %v2750_v22, %v857_v62 }
 0x153   : > { %v3400_v51 = vpop.f32.mrf.mxu1 }
 0x154   : > { %3438 = vst [vmem:[#allocation4_spill] sm:$0xff] %v3400_v51  ;;  %v2821_v56 = vpop.f32.mrf.mxu0  ;;  %v1021_v51 = vadd.f32 %v990_v12, %v850_v54  ;;  %v1194_v63 = vadd.f32 %v2769_v25, %v1023_v46  ;;  %v1199_v8 = vadd.f32 %v2774_v37, %v1028_v10  ;;  %v1475_v25 = vadd.f32 %v1446_v32, %v1193_v2 }
 0x155   : > { %v3402_v59 = vpop.f32.mrf.mxu1  ;;  %v1651_v32 = vadd.f32 %v2821_v56, %v1480_v24 }
 0x156   : > { %v1630_v11 = vpop.f32.mrf.mxu0  ;;  %v1192_v1 = vadd.f32 %v1161_v27, %v1021_v51  ;;  %v1476_v50 = vadd.f32 %v2793_v26, %v1194_v63  ;;  %v1481_v16 = vadd.f32 %v2798_v38, %v1199_v8  ;;  %v1648_v26 = vadd.f32 %v2818_v45, %v1477_v23 }
 0x157   : > { %v1801_v5 = vpop.f32.mrf.mxu1  ;;  %v1649_v29 = vadd.f32 %v1630_v11, %v1478_v14  ;;  %v1646_v35 = vadd.f32 %v1617_v48, %v1475_v25  ;;  %v1822_v47 = vadd.f32 %v3402_v59, %v1651_v32 }
 0x158   : > { %v2822_v3 = vpop.f32.mrf.mxu0  ;;  %v1474_v7 = vadd.f32 %v1443_v28, %v1192_v1  ;;  %v1647_v12 = vadd.f32 %v2817_v41, %v1476_v50 }
 0x159   : > { %v2846_v15 = vpop.f32.mrf.mxu1  ;;  %v1652_v41 = vadd.f32 %v2822_v3, %v1481_v16  ;;  %v3440_v39 = vld [vmem:[#allocation3_spill] sm:$0xff] }
 0x15a   : > { %v1645_v20 = vadd.f32 %v1614_v43, %v1474_v7  ;;  %v1633_v27 = vpop.f32.mrf.mxu0  ;;  %v1818_v22 = vadd.f32 %v2841_v42, %v1647_v12  ;;  %v1819_v42 = vadd.f32 %v3440_v39, %v1648_v26  ;;  %v1820_v43 = vadd.f32 %v1801_v5, %v1649_v29 }
 0x15b   : > { %v1804_v34 = vpop.f32.mrf.mxu1  ;;  %v1650_v36 = vadd.f32 %v1633_v27, %v1479_v31  ;;  %v3441_v54 = vld [vmem:[#allocation4_spill] sm:$0xff] }
 0x15c   : > { %v1816_v37 = vadd.f32 %v1785_v44, %v1645_v20  ;;  %v1817_v40 = vadd.f32 %v3441_v54, %v1646_v35  ;;  %v1823_v44 = vadd.f32 %v2846_v15, %v1652_v41 }
 0x15d   : > { %v1821_v62 = vadd.f32 %v1804_v34, %v1650_v36 }
 0x16c   : > { %v2865_v28 = vpop.f32.mrf.mxu0 }
 0x16d   : > { %v2100_v46 = vadd.f32 %v2865_v28, %v1818_v22  ;;  %v2869_v33 = vpop.f32.mrf.mxu1 }
 0x16e   : > { %v2067_v38 = vpop.f32.mrf.mxu0  ;;  %v2104_v1 = vadd.f32 %v2869_v33, %v1822_v47 }
 0x16f   : > { %v2098_v45 = vadd.f32 %v2067_v38, %v1816_v37  ;;  %v2083_v51 = vpop.f32.mrf.mxu1  ;;  %v2115_v48 = vmul.f32 %v2543_v30, %v2100_v46 }
 0x170   : > { %v2866_v55 = vpop.f32.mrf.mxu0  ;;  %v2102_v60 = vadd.f32 %v2083_v51, %v1820_v43  ;;  %v2119_v3 = vmul.f32 %v2543_v30, %v2104_v1 }
 0x171   : > { %v2113_v58 = vmul.f32 %v2543_v30, %v2098_v45  ;;  %v2101_v9 = vadd.f32 %v2866_v55, %v1819_v42  ;;  %v2870_v56 = vpop.f32.mrf.mxu1  ;;  %v2130_v0 = vadd.f32 %v2544_v57, %v2115_v48  ;;  %v2173_v55 = vld [vmem:[%s3432_s5] sm:$0x1] }
 0x172   : > { %v2070_v63 = vpop.f32.mrf.mxu0  ;;  %v2105_v61 = vadd.f32 %v2870_v56, %v1823_v44  ;;  %v2117_v10 = vmul.f32 %v2543_v30, %v2102_v60  ;;  %v2134_v20 = vadd.f32 %v2544_v57, %v2119_v3 }
 0x173   : > { %v2116_v4 = vmul.f32 %v2543_v30, %v2101_v9  ;;  %v2099_v11 = vadd.f32 %v2070_v63, %v1817_v40  ;;  %v2086_v49 = vpop.f32.mrf.mxu1  ;;  %v2128_v6 = vadd.f32 %v2544_v57, %v2113_v58  ;;  %v2138_v59 = vmax.f32 %v2130_v0, 0.0  ;;  %v2171_v40 = vld [vmem:[%s3431_s4] sm:$0x1] }
 0x174   : > { %v2103_v5 = vadd.f32 %v2086_v49, %v1821_v62  ;;  %v2120_v53 = vmul.f32 %v2543_v30, %v2105_v61  ;;  %v2132_v12 = vadd.f32 %v2544_v57, %v2117_v10  ;;  %v2142_v18 = vmax.f32 %v2134_v20, 0.0  ;;  %v2179_v58 = vld [vmem:[%s247_s8] sm:$0x1] }
 0x175   : > { %v2131_v50 = vadd.f32 %v2544_v57, %v2116_v4  ;;  %v2114_v13 = vmul.f32 %v2543_v30, %v2099_v11  ;;  %v2136_v8 = vmax.f32 %v2128_v6, 0.0 }
 0x176   : > { %v2118_v19 = vmul.f32 %v2543_v30, %v2103_v5  ;;  %v2135_v21 = vadd.f32 %v2544_v57, %v2120_v53  ;;  %v2140_v25 = vmax.f32 %v2132_v12, 0.0 }
 0x177   : > { %v2139_v52 = vmax.f32 %v2131_v50, 0.0  ;;  %v2129_v2 = vadd.f32 %v2544_v57, %v2114_v13 }
 0x178   : > { %v2133_v7 = vadd.f32 %v2544_v57, %v2118_v19  ;;  %v2143_v26 = vmax.f32 %v2135_v21, 0.0 }
 0x179   : > { %v2137_v15 = vmax.f32 %v2129_v2, 0.0  ;;  %v2145_v17 = vpack.c.bf16 %v2139_v52, %v2138_v59 }
 0x17a   : > { %v2141_v14 = vmax.f32 %v2133_v7, 0.0  ;;  %v2147_v35 = vpack.c.bf16 %v2143_v26, %v2142_v18 }
 0x17b   : > { %v2144_v23 = vpack.c.bf16 %v2137_v15, %v2136_v8  ;;  %v2150_v22 = vunpack.c.l.bf16 %v2145_v17  ;;  %v2151_v24 = vunpack.c.h.bf16 %v2145_v17 }
 0x17c   : > { %v2146_v34 = vpack.c.bf16 %v2141_v14, %v2140_v25  ;;  %v2154_v30 = vunpack.c.l.bf16 %v2147_v35  ;;  %v2155_v32 = vunpack.c.h.bf16 %v2147_v35 }
 0x17d   : > { %v2148_v27 = vunpack.c.l.bf16 %v2144_v23  ;;  %v2149_v16 = vunpack.c.h.bf16 %v2144_v23 }
 0x17e   : > { %v2152_v28 = vunpack.c.l.bf16 %v2146_v34  ;;  %v2153_v41 = vunpack.c.h.bf16 %v2146_v34 }
 0x17f   : > { %v2156_v29 = vadd.f32 %v2149_v16, %v2148_v27 }
 0x181   : > { %v2157_v31 = vadd.f32 %v2156_v29, %v2150_v22 }
 0x183   : > { %v2158_v37 = vadd.f32 %v2157_v31, %v2151_v24 }
 0x185   : > { %v2159_v46 = vadd.f32 %v2158_v37, %v2152_v28 }
 0x187   : > { %v2160_v33 = vadd.f32 %v2159_v46, %v2153_v41 }
 0x189   : > { %v2161_v36 = vadd.f32 %v2160_v33, %v2154_v30 }
 0x18b   : > { %v2162_v38 = vadd.f32 %v2161_v36, %v2155_v32 }
 0x18d   : > { %v2163_v39 = vrot.slane %v2162_v38, 4 }
 0x18f   : > { %v2164_v42 = vadd.f32 %v2163_v39, %v2162_v38 }
 0x191   : > { %v2165_v43 = vrot.slane %v2164_v42, 2 }
 0x193   : > { %v2166_v45 = vadd.f32 %v2165_v43, %v2164_v42 }
 0x195   : > { %v2167_v51 = vrot.slane %v2166_v45, 1 }
 0x197   : > { %v2168_v54 = vadd.f32 %v2167_v51, %v2166_v45 }
 0x199   : > { %v2170_v48 = vmul.f32 0.015625, %v2168_v54 }
 0x19b   : > { %v2172_v44 = vmul.f32 %v2171_v40, %v2170_v48 }
 0x19d   : > { %v2174_v57 = vadd.f32 %v2173_v55, %v2172_v44 }
 0x19f   : > { %v2175_v60 = vpack.c.bf16 %v2174_v57, %v2174_v57 }
 0x1a1   : > { %v2180_v9 = vsel %vm2178_vm5, %v2175_v60, %v2179_v58 }
 0x1a2   : > { %2181 = vst [vmem:[%s247_s8] sm:$0x1] %v2180_v9 }
 0x1a3 PF: > { %s16_s21 = sadd.s32 1, %s2998_s21  }
 0x1a4   : > { %p13_p4 = scmp.ge.s32.totalorder %s16_s21, 4  }
 0x1a6   :  { %15 = sbr.rel (!%p13_p4) target bundleno = 1 (0x1), region = 87 }

// kernel: fastreid_forward.2
= control target key start
LH: loop header
LB: loop body
LE: loop exit
PB: predicated region body
PF: predicated region fallthrough
CT: control target
= control target key end

     0   :  { %s6354_s15 = smov 0   ;;  %s8981_s0 = inlined_call_operand.vmem [shape: bf16[2,18,18,4], index: 0, kind: input, shape index: {}]   ;;  %s8982_s1 = inlined_call_operand.vmem [shape: bf16[9,4,128], index: 1, kind: input, shape index: {}]   ;;  %s8983_s2 = inlined_call_operand.vmem [shape: f32[1,128], index: 2, kind: input, shape index: {}]   ;;  %s8984_s3 = inlined_call_operand.vmem [shape: f32[1,128], index: 3, kind: input, shape index: {}]   ;;  %s8985_s4 = inlined_call_operand.vmem [shape: bf16[2,16,16,128], index: 4, kind: output, shape index: {}]  }
   0x1 LB: > { %s5083_s16 = sadd.s32 4294967295, %s6327_s15   ;;  %p5087_p0 = scmp.ge.s32.totalorder %s6327_s15, 1  ;;  %s6327_s15 = sphi %s6354_s15, %s14_s15  }
   0x2   : > { %p162_p1 = scmp.lt.s32.totalorder %s6327_s15, 3 }
   0x4   : > { %p163_p2 = pnand %p5087_p0, %p162_p1 }
   0x6   : > { %166 = sbr.rel (%p163_p2) target bundleno = 560 (0x230), region = 36 }
   0xb   : > { %v5091_v0 = vld [vmem:[%s8982_s1 + $0x2] sm:$0x3]  ;;  %vm734_vm0 = vcmask 1041408   ;;  %p188_p3 = scmp.lt.s32.totalorder %s5083_s16, 1  ;;  %v231_v2 = vld [vmem:[%s8982_s1] sm:$0x3] }
   0xc   : > { %6253 = vmatprep.subr.msk.bf16.mxu1 %vm734_vm0, %v5091_v0  ;;  %6252 = vmatprep.subr.msk.bf16.mxu0 %vm734_vm0, %v5091_v0  ;;  %v736_v1 = vsel %vm734_vm0, %v5091_v0, 0  ;;  %v5172_v3 = vld [vmem:[%s8982_s1 + $0x4] sm:$0x3]  ;;  %vm248_vm1 = vsmask.f32 3328  ;;  %v6385_v4 = vsel %vm734_vm0, %v231_v2, 0 }
   0xd   : > { %6251 = vmatpush3.bf16.msra.mxu1 %v736_v1  ;;  %5945 = vmatpush3.bf16.msra.mxu0 %v736_v1  ;;  %s9209_s16 = smov (!%p188_p3, %s5083_s16), 1  ;;  %vm249_vm2 = vsmask.f32 7440  ;;  %vm685_vm3 = vcmask 31744   ;;  %v6411_v16 = vsel %vm734_vm0, %v5172_v3, 0  ;;  %vm1239_vm5 = vcmask 1042432  }
   0xe   : > { %6254 = vmatprep.subr.msk.bf16.mxu1 %vm734_vm0, %v231_v2  ;;  %6255 = vmatprep.subr.msk.bf16.mxu0 %vm734_vm0, %v5172_v3  ;;  %s6262_s23 = smul.u32 216, %s9209_s16  ;;  %vm6426_vm4 = vmor %vm248_vm1, %vm249_vm2  ;;  %vm1240_vm6 = vcmask 1046532   ;;  %s5663_s19 = sshll.u32 %s9209_s16, 7 }
   0xf   : > { %vm6712_vm7 = vmor %vm1239_vm5, %vm1240_vm6  ;;  %s8858_s21 = scalar_lea.vmem %s8985_s4, %s5663_s19 }
  0x10   : > { %s6382_s26 = scalar_lea.vmem %s8981_s0, %s6262_s23 }
  0x11   : > { %v6388_v5 = vld [vmem:[%s6382_s26] sm:$0xf]  ;;  %v6391_v6 = vld [vmem:[%s6382_s26 + $0x4] sm:$0xf]  ;;  %v6394_v7 = vld [vmem:[%s6382_s26 + $0x8] sm:$0x1] }
  0x12   : > { %v252_v8 = vshrl.u32 %v6388_v5, 16  ;;  %v255_v9 = vshll.u32 %v6388_v5, 16  ;;  %v261_v10 = vshll.u32 %v6391_v6, 16  ;;  %v265_v11 = vshrl.u32 %v6391_v6, 16  ;;  %v6401_v12 = vld [vmem:[%s6382_s26 + $0x60] sm:$0xf] }
  0x13   : > { %v271_v13 = vshll.u32 %v6394_v7, 16  ;;  %v6405_v14 = vld [vmem:[%s6382_s26 + $0x64] sm:$0xf]  ;;  %v6408_v15 = vld [vmem:[%s6382_s26 + $0x68] sm:$0x1]  ;;  %v444_v22 = vshrl.u32 %v6401_v12, 16 }
  0x14   : > { %v254_v17 = vrot.slane %v252_v8, 4  ;;  %v257_v18 = vrot.slane %v255_v9, 5  ;;  %v263_v19 = vrot.slane %v261_v10, 5  ;;  %v267_v20 = vrot.slane %v265_v11, 4  ;;  %v6419_v29 = vld [vmem:[%s6382_s26 + $0xc] sm:$0xf] }
  0x15   : > { %v273_v21 = vrot.slane %v271_v13, 5  ;;  %v447_v23 = vshll.u32 %v6401_v12, 16  ;;  %v453_v24 = vshll.u32 %v6405_v14, 16  ;;  %v457_v27 = vshrl.u32 %v6405_v14, 16  ;;  %v6422_v30 = vld [vmem:[%s6382_s26 + $0x10] sm:$0xf] }
  0x16   : > { %v258_v25 = vor.u32 %v257_v18, %v254_v17  ;;  %v268_v26 = vor.u32 %v267_v20, %v263_v19  ;;  %v463_v28 = vshll.u32 %v6408_v15, 16  ;;  %v446_v33 = vrot.slane %v444_v22, 4  ;;  %v6432_v41 = vld [vmem:[%s6382_s26 + $0x14] sm:$0x1]  ;;  %v6443_v53 = vld [vmem:[%s6382_s26 + $0x6c] sm:$0xf] }
  0x17   : > { %v449_v34 = vrot.slane %v447_v23, 5  ;;  %v455_v35 = vrot.slane %v453_v24, 5  ;;  %v459_v38 = vrot.slane %v457_v27, 4  ;;  %v276_v42 = vshrl.u32 %v6419_v29, 16  ;;  %v6447_v58 = vld [vmem:[%s6382_s26 + $0x70] sm:$0xf] }
  0x18   : > { %v259_v36 = vrot.slane %v258_v25, 4  ;;  %v269_v37 = vrot.slane %v268_v26, 4  ;;  %v465_v39 = vrot.slane %v463_v28, 5  ;;  %v279_v43 = vshll.u32 %v6419_v29, 16  ;;  %v6455_v63 = vld [vmem:[%s6382_s26 + $0x74] sm:$0x1] }
  0x19   : > { %v450_v40 = vor.u32 %v449_v34, %v446_v33  ;;  %v285_v44 = vshll.u32 %v6422_v30, 16  ;;  %v460_v47 = vor.u32 %v459_v38, %v455_v35  ;;  %v289_v48 = vshrl.u32 %v6422_v30, 16  ;;  %v6461_v8 = vld [vmem:[%s6382_s26 + $0x18] sm:$0xf]  ;;  %v6474_v25 = vld [vmem:[%s6382_s26 + $0x20] sm:$0x1] }
  0x1a   : > { %v264_v45 = vsel %vm6426_vm4, %v259_v36, %v263_v19  ;;  %v274_v46 = vsel %vm6426_vm4, %v269_v37, %v273_v21  ;;  %v278_v51 = vrot.slane %v276_v42, 4  ;;  %v281_v52 = vrot.slane %v279_v43, 5  ;;  %v6468_v21 = vld [vmem:[%s6382_s26 + $0x1c] sm:$0xf] }
  0x1b   : > { %v5092_v49 = vcombine.low %v264_v45, %v274_v46  ;;  %v451_v50 = vrot.slane %v450_v40, 4  ;;  %v461_v54 = vrot.slane %v460_v47, 4  ;;  %v287_v55 = vrot.slane %v285_v44, 5  ;;  %v6487_v40 = vld [vmem:[%s8982_s1 + $0x8] sm:$0x3] }
  0x1c   : > { %v291_v56 = vrot.slane %v289_v48, 4  ;;  %v295_v57 = vshll.u32 %v6432_v41, 16  ;;  %v282_v60 = vor.u32 %v281_v52, %v278_v51  ;;  %v468_v3 = vshrl.u32 %v6443_v53, 16  ;;  %v6492_v46 = vld [vmem:[%s6382_s26 + $0x7c] sm:$0xf] }
  0x1d   : > { %5946 = vmatprep.mubr.msk.bf16.mxu0 %vm685_vm3, %v5092_v49  ;;  %v456_v59 = vsel %vm6426_vm4, %v451_v50, %v455_v35  ;;  %v466_v0 = vsel %vm6426_vm4, %v461_v54, %v465_v39  ;;  %v471_v11 = vshll.u32 %v6443_v53, 16  ;;  %v477_v13 = vshll.u32 %v6447_v58, 16  ;;  %v6481_v35 = vld [vmem:[%s6382_s26 + $0x78] sm:$0xf] }
  0x1e   : > { %v292_v1 = vor.u32 %v291_v56, %v287_v55  ;;  %v297_v2 = vrot.slane %v295_v57, 5  ;;  %v5100_v9 = vcombine.low %v456_v59, %v466_v0  ;;  %v283_v10 = vrot.slane %v282_v60, 4  ;;  %v6499_v56 = vld [vmem:[%s6382_s26 + $0x80] sm:$0x1] }
  0x1f   : > { %v470_v18 = vrot.slane %v468_v3, 4  ;;  %v481_v19 = vshrl.u32 %v6447_v58, 16  ;;  %v487_v20 = vshll.u32 %v6455_v63, 16  ;;  %v473_v23 = vrot.slane %v471_v11, 5  ;;  %9021 = vst [vmem:[#allocation2_spill] sm:$0xff] %v6499_v56 }
  0x20   : > { %v293_v17 = vrot.slane %v292_v1, 4  ;;  %5962 = vmatprep.mubr.msk.bf16.mxu1 %vm685_vm3, %v5100_v9  ;;  %v288_v22 = vsel %vm6426_vm4, %v283_v10, %v287_v55  ;;  %v479_v24 = vrot.slane %v477_v13, 5  ;;  %v300_v26 = vshrl.u32 %v6461_v8, 16  ;;  %v6505_v1 = vld [vmem:[%s6382_s26 + $0x24] sm:$0xf] }
  0x21   : > { %v483_v28 = vrot.slane %v481_v19, 4  ;;  %v489_v33 = vrot.slane %v487_v20, 5  ;;  %v303_v34 = vshll.u32 %v6461_v8, 16  ;;  %v474_v37 = vor.u32 %v473_v23, %v470_v18  ;;  %v6513_v10 = vld [vmem:[%s6382_s26 + $0x28] sm:$0xf] }
  0x22   : > { %v298_v27 = vsel %vm6426_vm4, %v293_v17, %v297_v2  ;;  %v302_v38 = vrot.slane %v300_v26, 4  ;;  %v309_v39 = vshll.u32 %v6468_v21, 16  ;;  %v313_v44 = vshrl.u32 %v6468_v21, 16  ;;  %v6519_v19 = vld [vmem:[%s8982_s1 + $0x6] sm:$0x3] }
  0x23   : > { %v5093_v36 = vcombine.low %v288_v22, %v298_v27  ;;  %v484_v42 = vor.u32 %v483_v28, %v479_v24  ;;  %v305_v43 = vrot.slane %v303_v34, 5  ;;  %v319_v45 = vshll.u32 %v6474_v25, 16 }
  0x24   : > { %v475_v47 = vrot.slane %v474_v37, 4  ;;  %v311_v48 = vrot.slane %v309_v39, 5  ;;  %v492_v49 = vshrl.u32 %v6481_v35, 16  ;;  %v495_v50 = vshll.u32 %v6481_v35, 16 }
  0x25   : > { %5947 = vmatmul.mubr.msk.bf16.vlgmr.msra.gmra.mxu0 %vm685_vm3, %v5093_v36  ;;  %v485_v51 = vrot.slane %v484_v42, 4  ;;  %v306_v52 = vor.u32 %v305_v43, %v302_v38  ;;  %v315_v54 = vrot.slane %v313_v44, 4  ;;  %v321_v55 = vrot.slane %v319_v45, 5  ;;  %v6531_v36 = vld [vmem:[%s6382_s26 + $0x84] sm:$0xf] }
  0x26   : > { %6013 = vmatpush3.bf16.msra.mxu0 %v6411_v16  ;;  %v480_v57 = vsel %vm6426_vm4, %v475_v47, %v479_v24  ;;  %v494_v59 = vrot.slane %v492_v49, 4  ;;  %v497_v60 = vrot.slane %v495_v50, 5  ;;  %v501_v0 = vshll.u32 %v6492_v46, 16  ;;  %v6524_v24 = vld [vmem:[%s6382_s26 + $0x2c] sm:$0x1] }
  0x27   : > { %6257 = vmatprep.subr.msk.bf16.mxu0 %vm734_vm0, %v6487_v40  ;;  %v490_v16 = vsel %vm6426_vm4, %v485_v51, %v489_v33  ;;  %v307_v2 = vrot.slane %v306_v52, 4  ;;  %v316_v3 = vor.u32 %v315_v54, %v311_v48  ;;  %v505_v9 = vshrl.u32 %v6492_v46, 16  ;;  %v6538_v43 = vld [vmem:[%s6382_s26 + $0x88] sm:$0xf]  ;;  %v6546_v51 = vld [vmem:[%s6382_s26 + $0x8c] sm:$0x1] }
  0x28   : > { %v5101_v11 = vcombine.low %v480_v57, %v490_v16  ;;  %v498_v13 = vor.u32 %v497_v60, %v494_v59  ;;  %v503_v17 = vrot.slane %v501_v0, 5  ;;  %v511_v18 = vshll.u32 %v6499_v56, 16  ;;  %9022 = vst [vmem:[#allocation3_spill] sm:$0xff] %v6546_v51  ;;  %v6554_v60 = vld [vmem:[%s6382_s26 + $0x30] sm:$0xf] }
  0x29   : > { %v312_v20 = vsel %vm6426_vm4, %v307_v2, %v311_v48  ;;  %v317_v22 = vrot.slane %v316_v3, 4  ;;  %v507_v23 = vrot.slane %v505_v9, 4  ;;  %v324_v26 = vshrl.u32 %v6505_v1, 16  ;;  %v6559_v9 = vld [vmem:[%s6382_s26 + $0x34] sm:$0xf] }
  0x2a   : > { %5963 = vmatmul.mubr.msk.bf16.vlgmr.msra.gmra.mxu1 %vm685_vm3, %v5101_v11  ;;  %v499_v27 = vrot.slane %v498_v13, 4  ;;  %v513_v28 = vrot.slane %v511_v18, 5  ;;  %v327_v33 = vshll.u32 %v6505_v1, 16  ;;  %v333_v34 = vshll.u32 %v6513_v10, 16 }
  0x2b   : > { %5979 = vmatpush3.bf16.msra.mxu1 %v6385_v4  ;;  %v322_v37 = vsel %vm6426_vm4, %v317_v22, %v321_v55  ;;  %v508_v38 = vor.u32 %v507_v23, %v503_v17  ;;  %v326_v39 = vrot.slane %v324_v26, 4  ;;  %v337_v42 = vshrl.u32 %v6513_v10, 16 }
  0x2c   : > { %v5094_v44 = vcombine.low %v312_v20, %v322_v37  ;;  %v504_v45 = vsel %vm6426_vm4, %v499_v27, %v503_v17  ;;  %v329_v47 = vrot.slane %v327_v33, 5  ;;  %v335_v48 = vrot.slane %v333_v34, 5  ;;  %6256 = vmatprep.subr.msk.bf16.mxu1 %vm734_vm0, %v6519_v19  ;;  %v6567_v33 = vld [vmem:[%s6382_s26 + $0x38] sm:$0x1] }
  0x2d   : > { %v509_v4 = vrot.slane %v508_v38, 4  ;;  %v339_v49 = vrot.slane %v337_v42, 4  ;;  %v343_v50 = vshll.u32 %v6524_v24, 16  ;;  %v516_v52 = vshrl.u32 %v6531_v36, 16  ;;  %v6572_v38 = vld [vmem:[%s6382_s26 + $0x90] sm:$0xf] }
  0x2e   : > { %5950 = vmatprep.mubr.msk.bf16.mxu0 %vm685_vm3, %v5094_v44  ;;  %v330_v54 = vor.u32 %v329_v47, %v326_v39  ;;  %v519_v55 = vshll.u32 %v6531_v36, 16  ;;  %v525_v57 = vshll.u32 %v6538_v43, 16  ;;  %v529_v59 = vshrl.u32 %v6538_v43, 16  ;;  %9023 = vst [vmem:[#allocation4_spill] sm:$0xff] %v6572_v38  ;;  %v6577_v47 = vld [vmem:[%s6382_s26 + $0x94] sm:$0xf] }
  0x2f   : > { %v514_v0 = vsel %vm6426_vm4, %v509_v4, %v513_v28  ;;  %v340_v16 = vor.u32 %v339_v49, %v335_v48  ;;  %v345_v2 = vrot.slane %v343_v50, 5  ;;  %v518_v3 = vrot.slane %v516_v52, 4  ;;  %9024 = vst [vmem:[#allocation5_spill] sm:$0xff] %v6577_v47 }
  0x30   : > { %v5102_v11 = vcombine.low %v504_v45, %v514_v0  ;;  %v331_v13 = vrot.slane %v330_v54, 4  ;;  %v521_v17 = vrot.slane %v519_v55, 5  ;;  %v527_v18 = vrot.slane %v525_v57, 5 }
  0x31   : > { %v341_v20 = vrot.slane %v340_v16, 4  ;;  %v531_v22 = vrot.slane %v529_v59, 4  ;;  %v535_v23 = vshll.u32 %v6546_v51, 16  ;;  %v348_v26 = vshrl.u32 %v6554_v60, 16  ;;  %v6586_v16 = vld [vmem:[%s6382_s26 + $0x98] sm:$0x1] }
  0x32   : > { %5966 = vmatprep.mubr.msk.bf16.mxu1 %vm685_vm3, %v5102_v11  ;;  %v336_v27 = vsel %vm6426_vm4, %v331_v13, %v335_v48  ;;  %v522_v28 = vor.u32 %v521_v17, %v518_v3  ;;  %v351_v34 = vshll.u32 %v6554_v60, 16  ;;  %v357_v37 = vshll.u32 %v6559_v9, 16  ;;  %9025 = vst [vmem:[#allocation6_spill] sm:$0xff] %v6586_v16  ;;  %v6591_v11 = vld [vmem:[%s6382_s26 + $0x3c] sm:$0xf] }
  0x33   : > { %v346_v39 = vsel %vm6426_vm4, %v341_v20, %v345_v2  ;;  %v532_v42 = vor.u32 %v531_v22, %v527_v18  ;;  %v537_v44 = vrot.slane %v535_v23, 5  ;;  %v350_v45 = vrot.slane %v348_v26, 4  ;;  %v6596_v23 = vld [vmem:[%s6382_s26 + $0x40] sm:$0xf]  ;;  %v1192_v51 = vld [vmem:[%s6382_s26 + $0xc] sm:$0xe] }
  0x34   : > { %v5095_v48 = vcombine.low %v336_v27, %v346_v39  ;;  %v523_v4 = vrot.slane %v522_v28, 4  ;;  %v353_v49 = vrot.slane %v351_v34, 5  ;;  %v359_v50 = vrot.slane %v357_v37, 5 }
  0x35   : > { %v533_v52 = vrot.slane %v532_v42, 4  ;;  %v361_v54 = vshrl.u32 %v6559_v9, 16  ;;  %v367_v55 = vshll.u32 %v6567_v33, 16  ;;  %v540_v57 = vshrl.u32 %v6572_v38, 16 }
  0x36   : > { %5951 = vmatmul.mubr.msk.bf16.gmra.mxu0 %vm685_vm3, %v5095_v48  ;;  %v528_v59 = vsel %vm6426_vm4, %v523_v4, %v527_v18  ;;  %v354_v0 = vor.u32 %v353_v49, %v350_v45  ;;  %v543_v2 = vshll.u32 %v6572_v38, 16  ;;  %v549_v3 = vshll.u32 %v6577_v47, 16  ;;  %v6605_v48 = vld [vmem:[%s6382_s26 + $0x44] sm:$0x1] }
  0x37   : > { %v538_v13 = vsel %vm6426_vm4, %v533_v52, %v537_v44  ;;  %v363_v17 = vrot.slane %v361_v54, 4  ;;  %v369_v20 = vrot.slane %v367_v55, 5  ;;  %v542_v22 = vrot.slane %v540_v57, 4  ;;  %v6610_v52 = vld [vmem:[%s6382_s26 + $0x9c] sm:$0xf] }
  0x38   : > { %v5103_v18 = vcombine.low %v528_v59, %v538_v13  ;;  %v355_v26 = vrot.slane %v354_v0, 4  ;;  %v545_v27 = vrot.slane %v543_v2, 5  ;;  %v551_v28 = vrot.slane %v549_v3, 5  ;;  %9026 = vst [vmem:[#allocation7_spill] sm:$0xff] %v6610_v52  ;;  %v6614_v13 = vld [vmem:[%s6382_s26 + $0xa0] sm:$0xf] }
  0x39   : > { %v364_v34 = vor.u32 %v363_v17, %v359_v50  ;;  %v553_v37 = vshrl.u32 %v6577_v47, 16  ;;  %v559_v39 = vshll.u32 %v6586_v16, 16  ;;  %v372_v42 = vshrl.u32 %v6591_v11, 16  ;;  %9027 = vst [vmem:[#allocation8_spill] sm:$0xff] %v6614_v13 }
  0x3a   : > { %5967 = vmatmul.mubr.msk.bf16.gmra.mxu1 %vm685_vm3, %v5103_v18  ;;  %v360_v44 = vsel %vm6426_vm4, %v355_v26, %v359_v50  ;;  %v546_v45 = vor.u32 %v545_v27, %v542_v22  ;;  %v375_v4 = vshll.u32 %v6591_v11, 16  ;;  %v381_v49 = vshll.u32 %v6596_v23, 16  ;;  %v6620_v26 = vld [vmem:[%s6382_s26 + $0xa4] sm:$0x1] }
  0x3b   : > { %v365_v54 = vrot.slane %v364_v34, 4  ;;  %v555_v55 = vrot.slane %v553_v37, 4  ;;  %v561_v57 = vrot.slane %v559_v39, 5  ;;  %v374_v59 = vrot.slane %v372_v42, 4  ;;  %9028 = vst [vmem:[#allocation9_spill] sm:$0xff] %v6620_v26 }
  0x3c   : > { %v547_v0 = vrot.slane %v546_v45, 4  ;;  %v377_v2 = vrot.slane %v375_v4, 5  ;;  %v383_v3 = vrot.slane %v381_v49, 5  ;;  %v385_v50 = vshrl.u32 %v6596_v23, 16  ;;  %v6624_v34 = vld [vmem:[%s6382_s26 + $0x48] sm:$0xf] }
  0x3d   : > { %v370_v17 = vsel %vm6426_vm4, %v365_v54, %v369_v20  ;;  %v556_v22 = vor.u32 %v555_v55, %v551_v28  ;;  %v391_v18 = vshll.u32 %v6605_v48, 16  ;;  %v564_v27 = vshrl.u32 %v6610_v52, 16 }
  0x3e   : > { %v5096_v37 = vcombine.low %v360_v44, %v370_v17  ;;  %v552_v39 = vsel %vm6426_vm4, %v547_v0, %v551_v28  ;;  %v378_v42 = vor.u32 %v377_v2, %v374_v59  ;;  %v387_v45 = vrot.slane %v385_v50, 4  ;;  %v6633_v17 = vld [vmem:[%s6382_s26 + $0x4c] sm:$0xf]  ;;  %v6639_v2 = vld [vmem:[%s6382_s26 + $0x50] sm:$0x1] }
  0x3f   : > { %v557_v4 = vrot.slane %v556_v22, 4  ;;  %v393_v49 = vrot.slane %v391_v18, 5  ;;  %v566_v20 = vrot.slane %v564_v27, 4  ;;  %v567_v54 = vshll.u32 %v6610_v52, 16 }
  0x40   : > { %5954 = vmatprep.mubr.msk.bf16.mxu0 %vm685_vm3, %v5096_v37  ;;  %v379_v55 = vrot.slane %v378_v42, 4  ;;  %v388_v62 = vor.u32 %v387_v45, %v383_v3  ;;  %v573_v32 = vshll.u32 %v6614_v13, 16  ;;  %v577_v44 = vshrl.u32 %v6614_v13, 16  ;;  %v6645_v42 = vld [vmem:[%s6382_s26 + $0xa8] sm:$0xf] }
  0x41   : > { %v562_v28 = vsel %vm6426_vm4, %v557_v4, %v561_v57  ;;  %v569_v59 = vrot.slane %v567_v54, 5  ;;  %v583_v0 = vshll.u32 %v6620_v26, 16  ;;  %v396_v50 = vshrl.u32 %v6624_v34, 16  ;;  %9029 = vst [vmem:[#allocation10_spill] sm:$0xff] %v6645_v42 }
  0x42   : > { %v5104_v22 = vcombine.low %v552_v39, %v562_v28  ;;  %v384_v18 = vsel %vm6426_vm4, %v379_v55, %v383_v3  ;;  %v389_v27 = vrot.slane %v388_v62, 4  ;;  %v575_v37 = vrot.slane %v573_v32, 5 }
  0x43   : > { %v570_v45 = vor.u32 %v569_v59, %v566_v20  ;;  %v579_v61 = vrot.slane %v577_v44, 4  ;;  %v585_v57 = vrot.slane %v583_v0, 5  ;;  %v398_v4 = vrot.slane %v396_v50, 4  ;;  %v6655_v44 = vld [vmem:[%s6382_s26 + $0xac] sm:$0xf] }
  0x44   : > { %5970 = vmatprep.mubr.msk.bf16.mxu1 %vm685_vm3, %v5104_v22  ;;  %v394_v54 = vsel %vm6426_vm4, %v389_v27, %v393_v49  ;;  %v399_v39 = vshll.u32 %v6624_v34, 16  ;;  %v405_v28 = vshll.u32 %v6633_v17, 16  ;;  %v409_v62 = vshrl.u32 %v6633_v17, 16  ;;  %9030 = vst [vmem:[#allocation11_spill] sm:$0xff] %v6655_v44  ;;  %v6658_v22 = vld [vmem:[%s6382_s26 + $0xb0] sm:$0x1] }
  0x45   : > { %v5097_v3 = vcombine.low %v384_v18, %v394_v54  ;;  %v571_v32 = vrot.slane %v570_v45, 4  ;;  %v580_v55 = vor.u32 %v579_v61, %v575_v37  ;;  %v415_v20 = vshll.u32 %v6639_v2, 16  ;;  %9031 = vst [vmem:[#allocation12_spill] sm:$0xff] %v6658_v22 }
  0x46   : > { %v401_v59 = vrot.slane %v399_v39, 5  ;;  %v407_v0 = vrot.slane %v405_v28, 5  ;;  %v411_v50 = vrot.slane %v409_v62, 4  ;;  %v588_v49 = vshrl.u32 %v6645_v42, 16  ;;  %v6667_v62 = vld [vmem:[%s6382_s26 + $0x54] sm:$0xf] }
  0x47   : > { %5955 = vmatmul.mubr.msk.bf16.gmra.mxu0 %vm685_vm3, %v5097_v3  ;;  %v576_v18 = vsel %vm6426_vm4, %v571_v32, %v575_v37  ;;  %v581_v27 = vrot.slane %v580_v55, 4  ;;  %v417_v61 = vrot.slane %v415_v20, 5  ;;  %v591_v45 = vshll.u32 %v6645_v42, 16  ;;  %v6674_v55 = vld [vmem:[%s6382_s26 + $0x58] sm:$0xf] }
  0x48   : > { %v402_v54 = vor.u32 %v401_v59, %v398_v4  ;;  %v412_v56 = vor.u32 %v411_v50, %v407_v0  ;;  %v590_v39 = vrot.slane %v588_v49, 4  ;;  %v597_v28 = vshll.u32 %v6655_v44, 16  ;;  %v6677_v49 = vld [vmem:[%s6382_s26 + $0x5c] sm:$0x1] }
  0x49   : > { %v586_v3 = vsel %vm6426_vm4, %v581_v27, %v585_v57  ;;  %v593_v26 = vrot.slane %v591_v45, 5  ;;  %v601_v37 = vshrl.u32 %v6655_v44, 16  ;;  %v607_v32 = vshll.u32 %v6658_v22, 16  ;;  %v1191_v22 = vld [vmem:[%s6382_s26] sm:$0xe] }
  0x4a   : > { %v5105_v4 = vcombine.low %v576_v18, %v586_v3  ;;  %v403_v20 = vrot.slane %v402_v54, 4  ;;  %v413_v59 = vrot.slane %v412_v56, 4  ;;  %v599_v50 = vrot.slane %v597_v28, 5  ;;  %v6688_v54 = vld [vmem:[%s6382_s26 + $0xb4] sm:$0xf] }
  0x4b   : > { %v594_v42 = vor.u32 %v593_v26, %v590_v39  ;;  %v603_v52 = vrot.slane %v601_v37, 4  ;;  %v609_v13 = vrot.slane %v607_v32, 5  ;;  %v420_v57 = vshrl.u32 %v6667_v62, 16  ;;  %9032 = vst [vmem:[#allocation13_spill] sm:$0xff] %v6688_v54  ;;  %v6691_v37 = vld [vmem:[%s6382_s26 + $0xb8] sm:$0xf] }
  0x4c   : > { %5971 = vmatmul.mubr.msk.bf16.gmra.mxu1 %vm685_vm3, %v5105_v4  ;;  %v408_v27 = vsel %vm6426_vm4, %v403_v20, %v407_v0  ;;  %v418_v18 = vsel %vm6426_vm4, %v413_v59, %v417_v61  ;;  %v423_v56 = vshll.u32 %v6667_v62, 16  ;;  %v429_v45 = vshll.u32 %v6674_v55, 16  ;;  %v6696_v61 = vld [vmem:[%s6382_s26 + $0xbc] sm:$0x1] }
  0x4d   : > { %v5098_v26 = vcombine.low %v408_v27, %v418_v18  ;;  %v595_v39 = vrot.slane %v594_v42, 4  ;;  %v604_v28 = vor.u32 %v603_v52, %v599_v50  ;;  %v422_v3 = vrot.slane %v420_v57, 4 }
  0x4e   : > { %v425_v32 = vrot.slane %v423_v56, 5  ;;  %v431_v4 = vrot.slane %v429_v45, 5  ;;  %v433_v0 = vshrl.u32 %v6674_v55, 16  ;;  %v439_v20 = vshll.u32 %v6677_v49, 16 }
  0x4f   : > { %5958 = vmatprep.mubr.msk.bf16.mxu0 %vm685_vm3, %v5098_v26  ;;  %v600_v59 = vsel %vm6426_vm4, %v595_v39, %v599_v50  ;;  %v605_v27 = vrot.slane %v604_v28, 4  ;;  %v612_v52 = vshrl.u32 %v6688_v54, 16  ;;  %v615_v42 = vshll.u32 %v6688_v54, 16 }
  0x50   : > { %v426_v57 = vor.u32 %v425_v32, %v422_v3  ;;  %v435_v18 = vrot.slane %v433_v0, 4  ;;  %v441_v56 = vrot.slane %v439_v20, 5  ;;  %v621_v45 = vshll.u32 %v6691_v37, 16 }
  0x51   : > { %v610_v44 = vsel %vm6426_vm4, %v605_v27, %v609_v13  ;;  %v614_v16 = vrot.slane %v612_v52, 4  ;;  %v617_v26 = vrot.slane %v615_v42, 5  ;;  %v625_v38 = vshrl.u32 %v6691_v37, 16 }
  0x52   : > { %v5106_v50 = vcombine.low %v600_v59, %v610_v44  ;;  %v427_v39 = vrot.slane %v426_v57, 4  ;;  %v436_v28 = vor.u32 %v435_v18, %v431_v4  ;;  %v623_v47 = vrot.slane %v621_v45, 5  ;;  %v1193_v57 = vld [vmem:[%s6382_s26 + $0x18] sm:$0xe] }
  0x53   : > { %v618_v54 = vor.u32 %v617_v26, %v614_v16  ;;  %v627_v3 = vrot.slane %v625_v38, 4  ;;  %v631_v32 = vshll.u32 %v6696_v61, 16  ;;  %v5156_v13 = vrot.slane %v1191_v22, 9 }
  0x54   : > { %5974 = vmatprep.mubr.msk.bf16.mxu1 %vm685_vm3, %v5106_v50  ;;  %v432_v44 = vsel %vm6426_vm4, %v427_v39, %v431_v4  ;;  %v437_v20 = vrot.slane %v436_v28, 4  ;;  %v1244_v59 = vrot.slane %v6391_v6, 5  ;;  %v5125_v38 = vcombine.low %v6419_v29, %v6422_v30 }
  0x55   : > { %v619_v16 = vrot.slane %v618_v54, 4  ;;  %v628_v27 = vor.u32 %v627_v3, %v623_v47  ;;  %v633_v52 = vrot.slane %v631_v32, 5  ;;  %v5157_v42 = vrot.slane %v1192_v51, 9 }
  0x56   : > { %v442_v18 = vsel %vm6426_vm4, %v437_v20, %v441_v56  ;;  %v1245_v22 = vsel %vm6712_vm7, %v5156_v13, %v1244_v59  ;;  %v1246_v45 = vrot.slane %v1244_v59, 4  ;;  %v9035_v4 = vrot.slane %v6422_v30, 5 }
  0x57   : > { %v5099_v50 = vcombine.low %v432_v44, %v442_v18  ;;  %v624_v54 = vsel %vm6426_vm4, %v619_v16, %v623_v47  ;;  %v629_v39 = vrot.slane %v628_v27, 4  ;;  %v5124_v51 = vcombine.low %v6388_v5, %v6391_v6  ;;  %v1194_v27 = vld [vmem:[%s6382_s26 + $0x24] sm:$0xe] }
  0x58   : > { %v1253_v26 = vrot.slane %v9035_v4, 4  ;;  %v9036_v28 = vrot.slane %v6394_v7, 5  ;;  %v9037_v3 = vmov %v9035_v4  ;;  %v5126_v13 = vcombine.low %v6461_v8, %v6468_v21  ;;  %v1196_v4 = vld [vmem:[%s6382_s26 + $0x3c] sm:$0xe] }
  0x59   : > { %v1252_v32 = vsel %vm6712_vm7, %v5157_v42, %v9037_v3  ;;  %v5158_v44 = vrot.slane %v1193_v57, 9  ;;  %5959 = vmatmul.mubr.msk.bf16.gmra.mxu0 %vm685_vm3, %v5099_v50  ;;  %v634_v47 = vsel %vm6426_vm4, %v629_v39, %v633_v52  ;;  %v9038_v6 = vrot.slane %v6432_v41, 5  ;;  %v1195_v42 = vld [vmem:[%s6382_s26 + $0x30] sm:$0xe]  ;;  %v1197_v39 = vld [vmem:[%s6382_s26 + $0x48] sm:$0xe] }
  0x5a   : > { %v1248_v56 = vsel %vm6712_vm7, %v1246_v45, %v9036_v28  ;;  %v1258_v20 = vrot.slane %v6468_v21, 5  ;;  %v5107_v59 = vcombine.low %v624_v54, %v634_v47  ;;  %v1261_v16 = vrot.slane %v6474_v25, 5  ;;  %v1198_v47 = vld [vmem:[%s6382_s26 + $0x54] sm:$0xe]  ;;  %v7007_v21 = vld [vmem:[%s6382_s26 + $0x2c] sm:$0x1] }
  0x5b   : > { %v5173_v5 = vcombine.low %v1245_v22, %v1248_v56  ;;  %v1255_v7 = vsel %vm6712_vm7, %v1253_v26, %v9038_v6  ;;  %v1812_v52 = vsel %vm734_vm0, %v6519_v19, 0  ;;  %v1265_v18 = vrot.slane %v6513_v10, 5 }
  0x5c   : > { %v1259_v41 = vsel %vm6712_vm7, %v5158_v44, %v1258_v20  ;;  %v1260_v57 = vrot.slane %v1258_v20, 4  ;;  %5975 = vmatmul.mubr.msk.bf16.gmra.mxu1 %vm685_vm3, %v5107_v59  ;;  %v5174_v22 = vcombine.low %v1252_v32, %v1255_v7  ;;  %v2538_v25 = vsel %vm734_vm0, %v6487_v40, 0 }
  0x5d   : > { %6014 = vmatprep.mubr.msk.bf16.mxu0 %vm685_vm3, %v5173_v5  ;;  %v1272_v45 = vrot.slane %v6559_v9, 5  ;;  %5980 = vmatprep.mubr.msk.bf16.mxu1 %vm685_vm3, %v5124_v51  ;;  %v5159_v26 = vrot.slane %v1194_v27, 9  ;;  %v1268_v50 = vrot.slane %v6524_v24, 5  ;;  %v5160_v54 = vrot.slane %v1195_v42, 9  ;;  %v6779_v24 = vld [vmem:[%s8982_s1 + $0xc] sm:$0x3] }
  0x5e   : > { %v1262_v19 = vsel %vm6712_vm7, %v1260_v57, %v1261_v16  ;;  %v1267_v56 = vrot.slane %v1265_v18, 4  ;;  %v1275_v32 = vrot.slane %v6567_v33, 5  ;;  %v5161_v44 = vrot.slane %v1196_v4, 9 }
  0x5f   : > { %v5175_v28 = vcombine.low %v1259_v41, %v1262_v19  ;;  %v1274_v3 = vrot.slane %v1272_v45, 4  ;;  %v1279_v40 = vrot.slane %v6596_v23, 5  ;;  %v1303_v5 = vrot.slane %v6408_v15, 5 }
  0x60   : > { %v1282_v51 = vrot.slane %v6605_v48, 5  ;;  %v5162_v6 = vrot.slane %v1197_v39, 9  ;;  %v1286_v7 = vrot.slane %v6633_v17, 5  ;;  %v5127_v33 = vcombine.low %v6505_v1, %v6513_v10  ;;  %v1199_v1 = vld [vmem:[%s6382_s26 + $0x60] sm:$0xe] }
  0x61   : > { %6015 = vmatmul.mubr.msk.bf16.vlgmr.msra.gmra.mxu0 %vm685_vm3, %v5174_v22  ;;  %v1266_v20 = vsel %vm6712_vm7, %v5159_v26, %v1265_v18  ;;  %v1281_v59 = vrot.slane %v1279_v40, 4  ;;  %v1289_v16 = vrot.slane %v6639_v2, 5  ;;  %v1269_v48 = vsel %vm6712_vm7, %v1267_v56, %v1268_v50  ;;  %v6807_v22 = vld [vmem:[%s8982_s1 + $0xa] sm:$0x3]  ;;  %v6832_v50 = vld [vmem:[%s6382_s26 + $0x6c] sm:$0xe] }
  0x62   : > { %6081 = vmatpush3.bf16.msra.mxu0 %v2538_v25  ;;  %6018 = vmatprep.mubr.msk.bf16.mxu0 %vm685_vm3, %v5175_v28  ;;  %v1273_v27 = vsel %vm6712_vm7, %v5160_v54, %v1272_v45  ;;  %v1276_v42 = vsel %vm6712_vm7, %v1274_v3, %v1275_v32  ;;  %v1288_v41 = vrot.slane %v1286_v7, 4  ;;  %v6797_v10 = vsel %vm6712_vm7, %v5161_v44, %v1279_v40  ;;  %v1202_v39 = vld [vmem:[%s6382_s26 + $0x84] sm:$0xe]  ;;  %v6861_v44 = vld [vmem:[%s6382_s26 + $0x78] sm:$0xe] }
  0x63   : > { %v6801_v2 = vsel %vm6712_vm7, %v5162_v6, %v1286_v7  ;;  %v5163_v57 = vrot.slane %v1198_v47, 9  ;;  %v1293_v18 = vrot.slane %v6674_v55, 5  ;;  %6259 = vmatprep.subr.msk.bf16.mxu0 %vm734_vm0, %v6779_v24  ;;  %v6817_v25 = vsel %vm6712_vm7, %v1281_v59, %v1282_v51  ;;  %v1203_v40 = vld [vmem:[%s6382_s26 + $0x90] sm:$0xe] }
  0x64   : > { %5981 = vmatmul.mubr.msk.bf16.vlgmr.msra.gmra.mxu1 %vm685_vm3, %v5125_v38  ;;  %v6821_v45 = vsel %vm6712_vm7, %v1288_v41, %v1289_v16  ;;  %v1296_v4 = vrot.slane %v6677_v49, 5  ;;  %v1300_v19 = vrot.slane %v6405_v14, 5  ;;  %v5176_v29 = vcombine.low %v1266_v20, %v1269_v48  ;;  %v9039_v48 = vld [vmem:[#allocation3_spill] sm:$0xff] }
  0x65   : > { %6047 = vmatpush3.bf16.msra.mxu1 %v1812_v52  ;;  %5984 = vmatprep.mubr.msk.bf16.mxu1 %vm685_vm3, %v5126_v13  ;;  %v5128_v30 = vcombine.low %v6554_v60, %v6559_v9  ;;  %v1295_v38 = vrot.slane %v1293_v18, 4  ;;  %v5164_v26 = vrot.slane %v1199_v1, 9  ;;  %v5177_v49 = vcombine.low %v1273_v27, %v1276_v42  ;;  %v1204_v42 = vld [vmem:[%s6382_s26 + $0x9c] sm:$0xe] }
  0x66   : > { %v5129_v52 = vcombine.low %v6591_v11, %v6596_v23  ;;  %v5130_v8 = vcombine.low %v6624_v34, %v6633_v17  ;;  %6258 = vmatprep.subr.msk.bf16.mxu1 %vm734_vm0, %v6807_v22  ;;  %v5178_v60 = vcombine.low %v6797_v10, %v6817_v25  ;;  %v5179_v9 = vcombine.low %v6801_v2, %v6821_v45  ;;  %v9040_v10 = vld [vmem:[#allocation5_spill] sm:$0xff]  ;;  %v9041_v2 = vld [vmem:[#allocation4_spill] sm:$0xff] }
  0x67   : > { %v1302_v54 = vrot.slane %v1300_v19, 4  ;;  %v6851_v28 = vsel %vm6712_vm7, %v5163_v57, %v1293_v18  ;;  %v6855_v56 = vsel %vm6712_vm7, %v1295_v38, %v1296_v4  ;;  %v5165_v32 = vrot.slane %v6832_v50, 9  ;;  %v1205_v18 = vld [vmem:[%s6382_s26 + $0xa8] sm:$0xe]  ;;  %v9043_v38 = vld [vmem:[#allocation8_spill] sm:$0xff] }
  0x68   : > { %v6867_v47 = vsel %vm6712_vm7, %v5164_v26, %v1300_v19  ;;  %v1307_v51 = vrot.slane %v6447_v58, 5  ;;  %v1310_v6 = vrot.slane %v6455_v63, 5  ;;  %v5167_v59 = vrot.slane %v1202_v39, 9  ;;  %v9042_v19 = vld [vmem:[#allocation6_spill] sm:$0xff]  ;;  %v9044_v26 = vld [vmem:[#allocation7_spill] sm:$0xff] }
  0x69   : > { %6019 = vmatmul.mubr.msk.bf16.gmra.mxu0 %vm685_vm3, %v5176_v29  ;;  %v1321_v16 = vrot.slane %v6538_v43, 5  ;;  %v1324_v27 = vrot.slane %v9039_v48, 5  ;;  %v5180_v41 = vcombine.low %v6851_v28, %v6855_v56  ;;  %v6885_v63 = vsel %vm6712_vm7, %v1302_v54, %v1303_v5  ;;  %v9046_v48 = vld [vmem:[#allocation11_spill] sm:$0xff] }
  0x6a   : > { %6022 = vmatprep.mubr.msk.bf16.mxu0 %vm685_vm3, %v5177_v49  ;;  %v5166_v1 = vrot.slane %v6861_v44, 9  ;;  %v5168_v4 = vrot.slane %v1203_v40, 9  ;;  %v1328_v15 = vrot.slane %v9040_v10, 5  ;;  %v1309_v5 = vrot.slane %v1307_v51, 4  ;;  %v5270_v57 = vld [vmem:[%s6382_s26 + $0xc] sm:$0xf] }
  0x6b   : > { %v6894_v25 = vsel %vm6712_vm7, %v5167_v59, %v1321_v16  ;;  %v1323_v45 = vrot.slane %v1321_v16, 4  ;;  %v1331_v29 = vrot.slane %v9042_v19, 5  ;;  %v5169_v49 = vrot.slane %v1204_v42, 9  ;;  %v9045_v59 = vld [vmem:[#allocation9_spill] sm:$0xff]  ;;  %v9047_v42 = vld [vmem:[#allocation10_spill] sm:$0xff] }
  0x6c   : > { %5985 = vmatmul.mubr.msk.bf16.gmra.mxu1 %vm685_vm3, %v5127_v33  ;;  %v1314_v33 = vrot.slane %v6492_v46, 5  ;;  %v6908_v39 = vsel %vm6712_vm7, %v5168_v4, %v1328_v15  ;;  %v1330_v44 = vrot.slane %v1328_v15, 4  ;;  %v1335_v40 = vrot.slane %v9043_v38, 5  ;;  %v9048_v15 = vld [vmem:[#allocation12_spill] sm:$0xff] }
  0x6d   : > { %5988 = vmatprep.mubr.msk.bf16.mxu1 %vm685_vm3, %v5128_v30  ;;  %v6904_v54 = vsel %vm6712_vm7, %v1323_v45, %v1324_v27  ;;  %v1338_v16 = vrot.slane %v9045_v59, 5  ;;  %v5170_v45 = vrot.slane %v1205_v18, 9  ;;  %v1342_v4 = vrot.slane %v9046_v48, 5 }
  0x6e   : > { %v6918_v27 = vsel %vm6712_vm7, %v1330_v44, %v1331_v29  ;;  %v1345_v50 = vrot.slane %v9048_v15, 5  ;;  %v6928_v19 = vsel %vm6712_vm7, %v5169_v49, %v1335_v40  ;;  %v1337_v7 = vrot.slane %v1335_v40, 4  ;;  %v9049_v29 = vld [vmem:[#allocation13_spill] sm:$0xff]  ;;  %v9050_v15 = vld [vmem:[#allocation2_spill] sm:$0xff]  ;;  %v6943_v49 = vld [vmem:[%s6382_s26 + $0x10] sm:$0xf] }
  0x6f   : > { %v6935_v18 = vsel %vm6712_vm7, %v5165_v32, %v1307_v51  ;;  %v6940_v59 = vsel %vm6712_vm7, %v5170_v45, %v1342_v4  ;;  %v1344_v30 = vrot.slane %v1342_v4, 4  ;;  %v5273_v40 = vld [vmem:[%s6382_s26 + $0x18] sm:$0xf]  ;;  %v1316_v20 = vrot.slane %v1314_v33, 4 }
  0x70   : > { %v2056_v44 = vshrl.u32 %v5270_v57, 16  ;;  %v2059_v32 = vshll.u32 %v5270_v57, 16  ;;  %v5181_v51 = vcombine.low %v6867_v47, %v6885_v63  ;;  %v6958_v45 = vsel %vm6712_vm7, %v1309_v5, %v1310_v6  ;;  %v1206_v57 = vld [vmem:[%s6382_s26 + $0xb4] sm:$0xe]  ;;  %v6979_v47 = vld [vmem:[%s6382_s26 + $0x14] sm:$0x1] }
  0x71   : > { %6023 = vmatmul.mubr.msk.bf16.gmra.mxu0 %vm685_vm3, %v5178_v60  ;;  %v1317_v60 = vrot.slane %v9050_v15, 5  ;;  %v6973_v11 = vsel %vm6712_vm7, %v5166_v1, %v1314_v33  ;;  %v2065_v6 = vshll.u32 %v6943_v49, 16  ;;  %v5274_v63 = vld [vmem:[%s6382_s26 + $0x1c] sm:$0xf]  ;;  %v2069_v17 = vshrl.u32 %v6943_v49, 16 }
  0x72   : > { %6026 = vmatprep.mubr.msk.bf16.mxu0 %vm685_vm3, %v5179_v9  ;;  %v6948_v9 = vsel %vm6712_vm7, %v1337_v7, %v1338_v16  ;;  %v6964_v7 = vsel %vm6712_vm7, %v1344_v30, %v1345_v50  ;;  %v2058_v5 = vrot.slane %v2056_v44, 4  ;;  %v2061_v34 = vrot.slane %v2059_v32, 5  ;;  %v5276_v15 = vld [vmem:[%s6382_s26 + $0x24] sm:$0xf]  ;;  %v6992_v44 = vld [vmem:[%s6382_s26 + $0x28] sm:$0xf] }
  0x73   : > { %v2080_v50 = vshrl.u32 %v5273_v40, 16  ;;  %v1318_v1 = vsel %vm6712_vm7, %v1316_v20, %v1317_v60  ;;  %v5171_v33 = vrot.slane %v1206_v57, 9  ;;  %v6987_v30 = vrot.slane %v2065_v6, 5 }
  0x74   : > { %5989 = vmatmul.mubr.msk.bf16.gmra.mxu1 %vm685_vm3, %v5129_v52  ;;  %v1349_v52 = vrot.slane %v6691_v37, 5  ;;  %v2083_v16 = vshll.u32 %v5273_v40, 16  ;;  %v1352_v23 = vrot.slane %v6696_v61, 5  ;;  %v2071_v4 = vrot.slane %v2069_v17, 4 }
  0x75   : > { %5992 = vmatprep.mubr.msk.bf16.mxu1 %vm685_vm3, %v5130_v8  ;;  %v5275_v8 = vld [vmem:[%s6382_s26 + $0x20] sm:$0x1]  ;;  %v2082_v3 = vrot.slane %v2080_v50, 4  ;;  %v2089_v13 = vshll.u32 %v5274_v63, 16  ;;  %v2075_v20 = vshll.u32 %v6979_v47, 16  ;;  %v2093_v57 = vshrl.u32 %v5274_v63, 16 }
  0x76   : > { %v1351_v32 = vrot.slane %v1349_v52, 4  ;;  %v2085_v60 = vrot.slane %v2083_v16, 5  ;;  %v5182_v61 = vcombine.low %v6935_v18, %v6958_v45  ;;  %v5183_v40 = vcombine.low %v6973_v11, %v1318_v1 }
  0x77   : > { %v2062_v6 = vor.u32 %v2061_v34, %v2058_v5  ;;  %v7003_v17 = vrot.slane %v2089_v13, 5  ;;  %v2072_v28 = vor.u32 %v2071_v4, %v6987_v30  ;;  %v2099_v50 = vshll.u32 %v5275_v8, 16  ;;  %v7030_v5 = vld [vmem:[%s6382_s26 + $0x34] sm:$0xf] }
  0x78   : > { %v2086_v56 = vor.u32 %v2085_v60, %v2082_v3  ;;  %v7015_v18 = vsel %vm6712_vm7, %v5171_v33, %v1349_v52  ;;  %v2104_v13 = vshrl.u32 %v5276_v15, 16  ;;  %v2107_v45 = vshll.u32 %v5276_v15, 16  ;;  %v5279_v52 = vld [vmem:[%s6382_s26 + $0x30] sm:$0xf] }
  0x79   : > { %6027 = vmatmul.mubr.msk.bf16.gmra.mxu0 %vm685_vm3, %v5180_v41  ;;  %v2095_v41 = vrot.slane %v2093_v57, 4  ;;  %v2113_v11 = vshll.u32 %v6992_v44, 16  ;;  %v9052_v3 = vcombine.low %v6401_v12, %v6405_v14  ;;  %v7024_v4 = vsel %vm6712_vm7, %v1351_v32, %v1352_v23 }
  0x7a   : > { %6030 = vmatprep.mubr.msk.bf16.mxu0 %vm685_vm3, %v5181_v51  ;;  %v9051_v51 = vcombine.low %v6667_v62, %v6674_v55  ;;  %v2077_v62 = vrot.slane %v2075_v20, 5  ;;  %v2117_v63 = vshrl.u32 %v6992_v44, 16  ;;  %v2063_v34 = vrot.slane %v2062_v6, 4 }
  0x7b   : > { %v2096_v55 = vor.u32 %v2095_v41, %v7003_v17  ;;  %v2106_v8 = vrot.slane %v2104_v13, 4  ;;  %v2109_v1 = vrot.slane %v2107_v45, 5  ;;  %v7032_v33 = vrot.slane %v2113_v11, 5  ;;  %v7038_v41 = vld [vmem:[%s6382_s26 + $0x38] sm:$0x1] }
  0x7c   : > { %5993 = vmatmul.mubr.msk.bf16.gmra.mxu1 %vm685_vm3, %v9051_v51  ;;  %v2073_v12 = vrot.slane %v2072_v28, 4  ;;  %v2087_v14 = vrot.slane %v2086_v56, 4  ;;  %v2101_v16 = vrot.slane %v2099_v50, 5  ;;  %v2119_v23 = vrot.slane %v2117_v63, 4  ;;  %v5282_v13 = vld [vmem:[%s6382_s26 + $0x3c] sm:$0xf] }
  0x7d   : > { %5996 = vmatprep.mubr.msk.bf16.mxu1 %vm685_vm3, %v9052_v3  ;;  %v2097_v15 = vrot.slane %v2096_v55, 4  ;;  %v2123_v32 = vshll.u32 %v7007_v21, 16  ;;  %v2128_v20 = vshrl.u32 %v5279_v52, 16  ;;  %v2131_v60 = vshll.u32 %v5279_v52, 16 }
  0x7e   : > { %v2110_v57 = vor.u32 %v2109_v1, %v2106_v8  ;;  %v2120_v6 = vor.u32 %v2119_v23, %v7032_v33  ;;  %v2137_v28 = vshll.u32 %v7030_v5, 16  ;;  %v2141_v56 = vshrl.u32 %v7030_v5, 16  ;;  %v5285_v8 = vld [vmem:[%s6382_s26 + $0x48] sm:$0xf]  ;;  %v7065_v1 = vld [vmem:[%s6382_s26 + $0x4c] sm:$0xf] }
  0x7f   : > { %v2130_v50 = vrot.slane %v2128_v20, 4  ;;  %v2133_v51 = vrot.slane %v2131_v60, 5  ;;  %v9053_v3 = vcombine.low %v6443_v53, %v6447_v58  ;;  %v5188_v55 = vcombine.low %v7015_v18, %v7024_v4 }
  0x80   : > { %v7044_v45 = vrot.slane %v2137_v28, 5  ;;  %v2143_v11 = vrot.slane %v2141_v56, 4  ;;  %v2078_v63 = vsel %vm6426_vm4, %v2073_v12, %v2077_v62  ;;  %v2092_v52 = vsel %vm6426_vm4, %v2087_v14, %v7003_v17 }
  0x81   : > { %6031 = vmatmul.mubr.msk.bf16.gmra.mxu0 %vm685_vm3, %v5182_v61  ;;  %v7047_v61 = vld [vmem:[%s6382_s26 + $0x40] sm:$0xf]  ;;  %v9054_v53 = vcombine.low %v6481_v35, %v6492_v46  ;;  %v2102_v58 = vsel %vm6426_vm4, %v2097_v15, %v2101_v16  ;;  %v2111_v23 = vrot.slane %v2110_v57, 4  ;;  %v2134_v20 = vor.u32 %v2133_v51, %v2130_v50  ;;  %v7099_v50 = vld [vmem:[%s6382_s26 + $0x44] sm:$0x1] }
  0x82   : > { %6034 = vmatprep.mubr.msk.bf16.mxu0 %vm685_vm3, %v5183_v40  ;;  %v2068_v40 = vsel %vm6426_vm4, %v2063_v34, %v6987_v30  ;;  %v2121_v30 = vrot.slane %v2120_v6, 4  ;;  %v2125_v34 = vrot.slane %v2123_v32, 5  ;;  %v2147_v62 = vshll.u32 %v7038_v41, 16  ;;  %v5288_v51 = vld [vmem:[%s6382_s26 + $0x54] sm:$0xf] }
  0x83   : > { %v2152_v12 = vshrl.u32 %v5282_v13, 16  ;;  %v2155_v17 = vshll.u32 %v5282_v13, 16  ;;  %v7076_v14 = vsel %vm734_vm0, %v6807_v22, 0  ;;  %v2144_v35 = vor.u32 %v2143_v11, %v7044_v45 }
  0x84   : > { %5997 = vmatmul.mubr.msk.bf16.gmra.mxu1 %vm685_vm3, %v9053_v3  ;;  %v2161_v46 = vshll.u32 %v7047_v61, 16  ;;  %v2165_v16 = vshrl.u32 %v7047_v61, 16  ;;  %v7081_v15 = vcombine.low %v2068_v40, %v2078_v63  ;;  %v7085_v32 = vsel %vm734_vm0, %v6779_v24, 0  ;;  %v7108_v40 = vld [vmem:[%s6382_s26 + $0x58] sm:$0xf] }
  0x85   : > { %6000 = vmatprep.mubr.msk.bf16.mxu1 %vm685_vm3, %v9054_v53  ;;  %v2176_v60 = vshrl.u32 %v5285_v8, 16  ;;  %v2179_v57 = vshll.u32 %v5285_v8, 16  ;;  %v9055_v6 = vcombine.low %v6894_v25, %v6904_v54  ;;  %v7091_v22 = vcombine.low %v2092_v52, %v2102_v58  ;;  %v7113_v8 = vld [vmem:[%s6382_s26 + $0x50] sm:$0x1] }
  0x86   : > { %v2116_v28 = vsel %vm6426_vm4, %v2111_v23, %v7032_v33  ;;  %v2126_v56 = vsel %vm6426_vm4, %v2121_v30, %v2125_v34  ;;  %v2185_v24 = vshll.u32 %v7065_v1, 16  ;;  %v9056_v25 = vcombine.low %v6908_v39, %v6918_v27  ;;  %v5291_v34 = vld [vmem:[%s6382_s26 + $0x60] sm:$0xf] }
  0x87   : > { %v2135_v54 = vrot.slane %v2134_v20, 4  ;;  %v2149_v13 = vrot.slane %v2147_v62, 5  ;;  %v2154_v11 = vrot.slane %v2152_v12, 4  ;;  %v2157_v3 = vrot.slane %v2155_v17, 5 }
  0x88   : > { %v2145_v33 = vrot.slane %v2144_v35, 4  ;;  %v7110_v63 = vrot.slane %v2161_v46, 5  ;;  %v2167_v52 = vrot.slane %v2165_v16, 4  ;;  %v2189_v53 = vshrl.u32 %v7065_v1, 16  ;;  %v7130_v35 = vld [vmem:[%s6382_s26 + $0x5c] sm:$0x1] }
  0x89   : > { %6035 = vmatmul.mubr.msk.bf16.gmra.mxu0 %vm685_vm3, %v9055_v6  ;;  %v9057_v39 = vcombine.low %v6531_v36, %v6538_v43  ;;  %v2178_v27 = vrot.slane %v2176_v60, 4  ;;  %v2181_v58 = vrot.slane %v2179_v57, 5  ;;  %v2200_v23 = vshrl.u32 %v5288_v51, 16 }
  0x8a   : > { %6038 = vmatprep.mubr.msk.bf16.mxu0 %vm685_vm3, %v9056_v25  ;;  %v2203_v30 = vshll.u32 %v5288_v51, 16  ;;  %v9058_v20 = vcombine.low %v9041_v2, %v9040_v10  ;;  %v7125_v62 = vcombine.low %v2116_v28, %v2126_v56  ;;  %v7127_v12 = vrot.slane %v2185_v24, 5  ;;  %v7143_v28 = vld [vmem:[%s6382_s26 + $0x64] sm:$0xf] }
  0x8b   : > { %v2191_v17 = vrot.slane %v2189_v53, 4  ;;  %v2209_v36 = vshll.u32 %v7108_v40, 16  ;;  %v2171_v43 = vshll.u32 %v7099_v50, 16  ;;  %v2202_v46 = vrot.slane %v2200_v23, 4 }
  0x8c   : > { %6001 = vmatmul.mubr.msk.bf16.gmra.mxu1 %vm685_vm3, %v9057_v39  ;;  %v2205_v16 = vrot.slane %v2203_v30, 5  ;;  %v2213_v60 = vshrl.u32 %v7108_v40, 16  ;;  %v2140_v10 = vsel %vm6426_vm4, %v2135_v54, %v7044_v45  ;;  %v2150_v2 = vsel %vm6426_vm4, %v2145_v33, %v2149_v13  ;;  %v7165_v30 = vld [vmem:[%s6382_s26 + $0x68] sm:$0x1] }
  0x8d   : > { %6004 = vmatprep.mubr.msk.bf16.mxu1 %vm685_vm3, %v9058_v20  ;;  %v2158_v57 = vor.u32 %v2157_v3, %v2154_v11  ;;  %v7140_v6 = vrot.slane %v2209_v36, 5  ;;  %v2168_v56 = vor.u32 %v2167_v52, %v7110_v63  ;;  %v2182_v24 = vor.u32 %v2181_v58, %v2178_v27  ;;  %v5294_v3 = vld [vmem:[%s6382_s26 + $0x6c] sm:$0xf]  ;;  %v7162_v27 = vld [vmem:[%s6382_s26 + $0x70] sm:$0xf] }
  0x8e   : > { %v2195_v51 = vshll.u32 %v7113_v8, 16  ;;  %v2215_v25 = vrot.slane %v2213_v60, 4  ;;  %v9059_v53 = vcombine.low %v6928_v19, %v6948_v9  ;;  %v2192_v45 = vor.u32 %v2191_v17, %v7127_v12 }
  0x8f   : > { %v2206_v54 = vor.u32 %v2205_v16, %v2202_v46  ;;  %v2224_v13 = vshrl.u32 %v5291_v34, 16  ;;  %v2227_v11 = vshll.u32 %v5291_v34, 16  ;;  %v9060_v33 = vcombine.low %v6940_v59, %v6964_v7  ;;  %v5297_v16 = vld [vmem:[%s6382_s26 + $0x78] sm:$0xf] }
  0x90   : > { %v2216_v52 = vor.u32 %v2215_v25, %v7140_v6  ;;  %v2219_v39 = vshll.u32 %v7130_v35, 16  ;;  %v2233_v19 = vshll.u32 %v7143_v28, 16  ;;  %v2237_v9 = vshrl.u32 %v7143_v28, 16 }
  0x91   : > { %6039 = vmatmul.mubr.msk.bf16.gmra.mxu0 %vm685_vm3, %v9059_v53  ;;  %v2159_v58 = vrot.slane %v2158_v57, 4  ;;  %v2173_v23 = vrot.slane %v2171_v43, 5  ;;  %v2226_v34 = vrot.slane %v2224_v13, 4  ;;  %v2229_v20 = vrot.slane %v2227_v11, 5 }
  0x92   : > { %6042 = vmatprep.mubr.msk.bf16.mxu0 %vm685_vm3, %v9060_v33  ;;  %v9061_v59 = vcombine.low %v9044_v26, %v9043_v38  ;;  %v7171_v7 = vcombine.low %v2140_v10, %v2150_v2  ;;  %v2169_v17 = vrot.slane %v2168_v56, 4  ;;  %v2183_v36 = vrot.slane %v2182_v24, 4  ;;  %v7181_v2 = vld [vmem:[%s6382_s26 + $0x7c] sm:$0xf] }
  0x93   : > { %v7173_v46 = vrot.slane %v2233_v19, 5  ;;  %v9062_v43 = vcombine.low %v9047_v42, %v9046_v48  ;;  %v2193_v60 = vrot.slane %v2192_v45, 4  ;;  %v2197_v57 = vrot.slane %v2195_v51, 5  ;;  %9063 = vst [vmem:[#allocation3_spill] sm:$0xff] %v7181_v2  ;;  %v5300_v19 = vld [vmem:[%s6382_s26 + $0x84] sm:$0xf] }
  0x94   : > { %6005 = vmatmul.mubr.msk.bf16.gmra.mxu1 %vm685_vm3, %v9061_v59  ;;  %v2207_v25 = vrot.slane %v2206_v54, 4  ;;  %v2239_v38 = vrot.slane %v2237_v9, 4  ;;  %v2217_v26 = vrot.slane %v2216_v52, 4  ;;  %v2221_v53 = vrot.slane %v2219_v39, 5 }
  0x95   : > { %6008 = vmatprep.mubr.msk.bf16.mxu1 %vm685_vm3, %v9062_v43  ;;  %v2230_v13 = vor.u32 %v2229_v20, %v2226_v34  ;;  %v2248_v10 = vshrl.u32 %v5294_v3, 16  ;;  %v2164_v56 = vsel %vm6426_vm4, %v2159_v58, %v7110_v63  ;;  %v2251_v24 = vshll.u32 %v5294_v3, 16  ;;  %v6287_v63 = vld [vmem:[%s6382_s26 + $0xc] sm:$0xff]   ;;  %v7215_v34 = vld [vmem:[%s6382_s26 + $0x88] sm:$0xf] }
  0x96   : > { %v2257_v48 = vshll.u32 %v7162_v27, 16  ;;  %v2261_v42 = vshrl.u32 %v7162_v27, 16  ;;  %v2174_v51 = vsel %vm6426_vm4, %v2169_v17, %v2173_v23  ;;  %v2188_v45 = vsel %vm6426_vm4, %v2183_v36, %v7127_v12  ;;  %9064 = vst [vmem:[#allocation5_spill] sm:$0xff] %v7215_v34  ;;  %v7224_v36 = vld [vmem:[%s6382_s26 + $0x74] sm:$0x1] }
  0x97   : > { %v2240_v54 = vor.u32 %v2239_v38, %v7173_v46  ;;  %v2243_v11 = vshll.u32 %v7165_v30, 16  ;;  %v2198_v3 = vsel %vm6426_vm4, %v2193_v60, %v2197_v57  ;;  %v2212_v33 = vsel %vm6426_vm4, %v2207_v25, %v7140_v6  ;;  %9066 = vst [vmem:[#allocation4_spill] sm:$0xff] %v7224_v36  ;;  %v7234_v38 = vld [vmem:[%s6382_s26 + $0x80] sm:$0x1] }
  0x98   : > { %v2272_v52 = vshrl.u32 %v5297_v16, 16  ;;  %v2275_v12 = vshll.u32 %v5297_v16, 16  ;;  %v2222_v18 = vsel %vm6426_vm4, %v2217_v26, %v2221_v53  ;;  %v2231_v4 = vrot.slane %v2230_v13, 4  ;;  %9067 = vst [vmem:[#allocation6_spill] sm:$0xff] %v7234_v38  ;;  %v7237_v26 = vld [vmem:[%s6382_s26 + $0x8c] sm:$0x1] }
  0x99   : > { %6043 = vmatmul.mubr.msk.bf16.gmra.mxu0 %vm685_vm3, %v5188_v55  ;;  %v2250_v55 = vrot.slane %v2248_v10, 4  ;;  %v2281_v39 = vshll.u32 %v7181_v2, 16  ;;  %v2253_v9 = vrot.slane %v2251_v24, 5  ;;  %v7211_v58 = vrot.slane %v2257_v48, 5  ;;  %9068 = vst [vmem:[#allocation8_spill] sm:$0xff] %v7237_v26  ;;  %v6288_v10 = vld [vmem:[%s6382_s26 + $0x18] sm:$0xff]  }
  0x9a   : > { %6082 = vmatprep.mubr.msk.bf16.mxu0 %vm685_vm3, %v7081_v15  ;;  %v2263_v23 = vrot.slane %v2261_v42, 4  ;;  %v2285_v6 = vshrl.u32 %v7181_v2, 16  ;;  %v9065_v15 = vcombine.low %v9049_v29, %v6691_v37  ;;  %v7221_v20 = vcombine.low %v2164_v56, %v2174_v51  ;;  %v5303_v51 = vld [vmem:[%s6382_s26 + $0x90] sm:$0xf] }
  0x9b   : > { %v2241_v59 = vrot.slane %v2240_v54, 4  ;;  %v2245_v17 = vrot.slane %v2243_v11, 5  ;;  %v2274_v16 = vrot.slane %v2272_v52, 4  ;;  %v2277_v43 = vrot.slane %v2275_v12, 5 }
  0x9c   : > { %6009 = vmatmul.mubr.msk.bf16.gmra.mxu1 %vm685_vm3, %v9065_v15  ;;  %v7227_v60 = vrot.slane %v2281_v39, 5  ;;  %v2287_v57 = vrot.slane %v2285_v6, 4  ;;  %v2296_v25 = vshrl.u32 %v5300_v19, 16  ;;  %v7229_v37 = vcombine.low %v2188_v45, %v2198_v3  ;;  %v7248_v45 = vld [vmem:[%s6382_s26 + $0x94] sm:$0xf] }
  0x9d   : > { %6048 = vmatprep.mubr.msk.bf16.mxu1 %vm685_vm3, %v6287_v63  ;;  %v7231_v29 = vcombine.low %v2212_v33, %v2222_v18  ;;  %v2299_v53 = vshll.u32 %v5300_v19, 16  ;;  %v2305_v13 = vshll.u32 %v7215_v34, 16  ;;  %v2236_v56 = vsel %vm6426_vm4, %v2231_v4, %v7173_v46  ;;  %9069 = vst [vmem:[#allocation7_spill] sm:$0xff] %v7248_v45  ;;  %v7256_v33 = vld [vmem:[%s8982_s1 + $0x10] sm:$0x3]  ;;  %v6289_v46 = vld [vmem:[%s6382_s26 + $0x24] sm:$0xff]  }
  0x9e   : > { %v2254_v24 = vor.u32 %v2253_v9, %v2250_v55  ;;  %v2264_v48 = vor.u32 %v2263_v23, %v7211_v58  ;;  %v2267_v42 = vshll.u32 %v7224_v36, 16  ;;  %v2298_v54 = vrot.slane %v2296_v25, 4  ;;  %9070 = vst [vmem:[#allocation9_spill] sm:$0xff] %v7256_v33 }
  0x9f   : > { %v2301_v11 = vrot.slane %v2299_v53, 5  ;;  %v7250_v63 = vrot.slane %v2305_v13, 5  ;;  %v2309_v3 = vshrl.u32 %v7215_v34, 16  ;;  %v2246_v52 = vsel %vm6426_vm4, %v2241_v59, %v2245_v17 }
  0xa0   : > { %v2278_v12 = vor.u32 %v2277_v43, %v2274_v16  ;;  %v2288_v18 = vor.u32 %v2287_v57, %v7227_v60  ;;  %v2291_v4 = vshll.u32 %v7234_v38, 16  ;;  %v2320_v19 = vshrl.u32 %v5303_v51, 16  ;;  %v7290_v57 = vld [vmem:[%s6382_s26 + $0xa0] sm:$0xf] }
  0xa1   : > { %6083 = vmatmul.mubr.msk.bf16.vlgmr.msra.gmra.mxu0 %vm685_vm3, %v7091_v22  ;;  %v2302_v55 = vor.u32 %v2301_v11, %v2298_v54  ;;  %v2311_v39 = vrot.slane %v2309_v3, 4  ;;  %v2323_v9 = vshll.u32 %v5303_v51, 16  ;;  %v5306_v22 = vld [vmem:[%s6382_s26 + $0x9c] sm:$0xf]  ;;  %v7269_v23 = vrot.slane %v2254_v24, 4  ;;  %9072 = vst [vmem:[#allocation10_spill] sm:$0xff] %v7290_v57 }
  0xa2   : > { %6149 = vmatpush3.bf16.msra.mxu0 %v7085_v32  ;;  %6086 = vmatprep.mubr.msk.bf16.mxu0 %vm685_vm3, %v7125_v62  ;;  %v7271_v6 = vrot.slane %v2267_v42, 5  ;;  %v2315_v15 = vshll.u32 %v7237_v26, 16  ;;  %v2329_v59 = vshll.u32 %v7248_v45, 16  ;;  %v7278_v32 = vld [vmem:[%s8982_s1 + $0xe] sm:$0x3]  ;;  %v7283_v62 = vcombine.low %v2236_v56, %v2246_v52 }
  0xa3   : > { %9071 = vst [vmem:[#allocation11_spill] sm:$0xff] %v7278_v32  ;;  %6261 = vmatprep.subr.msk.bf16.mxu0 %vm734_vm0, %v7256_v33  ;;  %v7285_v17 = vrot.slane %v2264_v48, 4  ;;  %v2312_v16 = vor.u32 %v2311_v39, %v7250_v63  ;;  %v2333_v43 = vshrl.u32 %v7248_v45, 16  ;;  %v7294_v25 = vrot.slane %v2278_v12, 4  ;;  %v7303_v56 = vld [vmem:[%s6382_s26 + $0x98] sm:$0x1] }
  0xa4   : > { %6049 = vmatmul.mubr.msk.bf16.vlgmr.msra.gmra.mxu1 %vm685_vm3, %v6288_v10  ;;  %v7296_v53 = vrot.slane %v2288_v18, 4  ;;  %v7298_v13 = vrot.slane %v2291_v4, 5  ;;  %v7300_v10 = vrot.slane %v2302_v55, 4  ;;  %9073 = vst [vmem:[#allocation12_spill] sm:$0xff] %v7303_v56  ;;  %v2322_v24 = vrot.slane %v2320_v19, 4  ;;  %v6291_v19 = vld [vmem:[%s6382_s26 + $0x3c] sm:$0xff]  }
  0xa5   : > { %6115 = vmatpush3.bf16.msra.mxu1 %v7076_v14  ;;  %6052 = vmatprep.mubr.msk.bf16.mxu1 %vm685_vm3, %v6289_v46  ;;  %v2325_v48 = vrot.slane %v2323_v9, 5  ;;  %v2344_v42 = vshrl.u32 %v5306_v22, 16  ;;  %v2347_v51 = vshll.u32 %v5306_v22, 16  ;;  %v6290_v14 = vld [vmem:[%s6382_s26 + $0x30] sm:$0xff]   ;;  %v7312_v11 = vrot.slane %v2315_v15, 5 }
  0xa6   : > { %6260 = vmatprep.subr.msk.bf16.mxu1 %vm734_vm0, %v7278_v32  ;;  %v7314_v3 = vrot.slane %v2329_v59, 5  ;;  %v2353_v46 = vshll.u32 %v7290_v57, 16  ;;  %v5309_v52 = vld [vmem:[%s6382_s26 + $0xa8] sm:$0xf]  ;;  %v7318_v12 = vrot.slane %v2312_v16, 4  ;;  %v2335_v18 = vrot.slane %v2333_v43, 4 }
  0xa7   : > { %v2339_v4 = vshll.u32 %v7303_v56, 16  ;;  %v2357_v55 = vshrl.u32 %v7290_v57, 16  ;;  %v7323_v39 = vld [vmem:[%s6382_s26 + $0xac] sm:$0xf]  ;;  %v2326_v59 = vor.u32 %v2325_v48, %v2322_v24  ;;  %v7347_v16 = vld [vmem:[%s6382_s26 + $0xa4] sm:$0x1] }
  0xa8   : > { %9074 = vst [vmem:[#allocation13_spill] sm:$0xff] %v7323_v39  ;;  %9075 = vst [vmem:[#allocation2_spill] sm:$0xff] %v7347_v16  ;;  %v2346_v43 = vrot.slane %v2344_v42, 4  ;;  %v2349_v22 = vrot.slane %v2347_v51, 5  ;;  %v2368_v54 = vshrl.u32 %v5309_v52, 16  ;;  %v7349_v9 = vrot.slane %v2353_v46, 5 }
  0xa9   : > { %6087 = vmatmul.mubr.msk.bf16.gmra.mxu0 %vm685_vm3, %v7171_v7  ;;  %v2359_v32 = vrot.slane %v2357_v55, 4  ;;  %v2371_v15 = vshll.u32 %v5309_v52, 16  ;;  %v2377_v33 = vshll.u32 %v7323_v39, 16  ;;  %v5312_v57 = vld [vmem:[%s6382_s26 + $0xb4] sm:$0xf]  ;;  %v2336_v24 = vor.u32 %v2335_v18, %v7314_v3 }
  0xaa   : > { %6090 = vmatprep.mubr.msk.bf16.mxu0 %vm685_vm3, %v7221_v20  ;;  %v2318_v20 = vsel %vm6426_vm4, %v7318_v12, %v7312_v11  ;;  %v7359_v48 = vrot.slane %v2339_v4, 5  ;;  %v7362_v42 = vld [vmem:[%s6382_s26 + $0xb0] sm:$0x1]  ;;  %v2370_v51 = vrot.slane %v2368_v54, 4  ;;  %v7365_v46 = vld [vmem:[%s6382_s26 + $0xb8] sm:$0xf]  ;;  %v2350_v18 = vor.u32 %v2349_v22, %v2346_v43 }
  0xab   : > { %9076 = vst [vmem:[#allocation14_spill] sm:$0xff] %v7362_v42  ;;  %9077 = vst [vmem:[#allocation15_spill] sm:$0xff] %v7365_v46  ;;  %v2373_v52 = vrot.slane %v2371_v15, 5  ;;  %v7369_v55 = vrot.slane %v2377_v33, 5  ;;  %v2381_v11 = vshrl.u32 %v7323_v39, 16  ;;  %v7372_v12 = vrot.slane %v2326_v59, 4 }
  0xac   : > { %6053 = vmatmul.mubr.msk.bf16.gmra.mxu1 %vm685_vm3, %v6290_v14  ;;  %v2363_v14 = vshll.u32 %v7347_v16, 16  ;;  %v7375_v4 = vld [vmem:[%s6382_s26 + $0xbc] sm:$0x1]  ;;  %v2392_v54 = vshrl.u32 %v5312_v57, 16  ;;  %v2395_v7 = vshll.u32 %v5312_v57, 16  ;;  %v2360_v56 = vor.u32 %v2359_v32, %v7349_v9  ;;  %v6292_v16 = vld [vmem:[%s6382_s26 + $0x48] sm:$0xff]  }
  0xad   : > { %6056 = vmatprep.mubr.msk.bf16.mxu1 %vm685_vm3, %v6291_v19  ;;  %v2383_v45 = vrot.slane %v2381_v11, 4  ;;  %v2387_v19 = vshll.u32 %v7362_v42, 16  ;;  %v2401_v15 = vshll.u32 %v7365_v46, 16  ;;  %v5315_v33 = vld [vmem:[%s6382_s26 + $0xc0] sm:$0xf]  ;;  %v2374_v26 = vor.u32 %v2373_v52, %v2370_v51  ;;  %v6293_v57 = vld [vmem:[%s6382_s26 + $0x54] sm:$0xff]  }
  0xae   : > { %v2394_v39 = vrot.slane %v2392_v54, 4  ;;  %v2397_v34 = vrot.slane %v2395_v7, 5  ;;  %v2405_v59 = vshrl.u32 %v7365_v46, 16  ;;  %v7384_v22 = vld [vmem:[%s6382_s26 + $0xc4] sm:$0xf]  ;;  %v2337_v43 = vrot.slane %v2336_v24, 4 }
  0xaf   : > { %v2365_v32 = vrot.slane %v2363_v14, 5  ;;  %v2384_v11 = vor.u32 %v2383_v45, %v7369_v55  ;;  %v2403_v42 = vrot.slane %v2401_v15, 5  ;;  %v2411_v7 = vshll.u32 %v7375_v4, 16  ;;  %v7396_v45 = vld [vmem:[%s6382_s26 + $0xc8] sm:$0x1] }
  0xb0   : > { %v2398_v51 = vor.u32 %v2397_v34, %v2394_v39  ;;  %v2407_v52 = vrot.slane %v2405_v59, 4  ;;  %v2416_v54 = vshrl.u32 %v5315_v33, 16  ;;  %v2351_v46 = vrot.slane %v2350_v18, 4 }
  0xb1   : > { %6091 = vmatmul.mubr.msk.bf16.gmra.mxu0 %vm685_vm3, %v7229_v37  ;;  %v2361_v38 = vrot.slane %v2360_v56, 4  ;;  %v2419_v2 = vshll.u32 %v5315_v33, 16  ;;  %v2425_v37 = vshll.u32 %v7384_v22, 16  ;;  %v2375_v24 = vrot.slane %v2374_v26, 4 }
  0xb2   : > { %6094 = vmatprep.mubr.msk.bf16.mxu0 %vm685_vm3, %v7231_v29  ;;  %v2389_v14 = vrot.slane %v2387_v19, 5  ;;  %v2408_v36 = vor.u32 %v2407_v52, %v2403_v42  ;;  %v2418_v15 = vrot.slane %v2416_v54, 4  ;;  %v2385_v34 = vrot.slane %v2384_v11, 4 }
  0xb3   : > { %v2421_v29 = vrot.slane %v2419_v2, 5  ;;  %v7399_v39 = vrot.slane %v2425_v37, 5  ;;  %v2429_v56 = vshrl.u32 %v7384_v22, 16  ;;  %v9078_v26 = vsel %vm6426_vm4, %v7285_v17, %v7271_v6 }
  0xb4   : > { %6057 = vmatmul.mubr.msk.bf16.gmra.mxu1 %vm685_vm3, %v6292_v16  ;;  %v9079_v16 = vsel %vm6426_vm4, %v7269_v23, %v7211_v58  ;;  %v2399_v19 = vrot.slane %v2398_v51, 4  ;;  %v2409_v33 = vrot.slane %v2408_v36, 4  ;;  %v2413_v2 = vrot.slane %v2411_v7, 5  ;;  %v6294_v23 = vld [vmem:[%s6382_s26 + $0x60] sm:$0xff]  }
  0xb5   : > { %6060 = vmatprep.mubr.msk.bf16.mxu1 %vm685_vm3, %v6293_v57  ;;  %v5327_v18 = vcombine.low %v9079_v16, %v9078_v26  ;;  %v9080_v59 = vsel %vm6426_vm4, %v7296_v53, %v7298_v13  ;;  %v9081_v6 = vsel %vm6426_vm4, %v7294_v25, %v7227_v60  ;;  %v2422_v57 = vor.u32 %v2421_v29, %v2418_v15  ;;  %v5353_v13 = vld [vmem:[%s6382_s26 + $0x24] sm:$0xe]  ;;  %v5356_v26 = vld [vmem:[%s6382_s26 + $0x48] sm:$0xe] }
  0xb6   : > { %v5328_v17 = vcombine.low %v9081_v6, %v9080_v59  ;;  %v2431_v11 = vrot.slane %v2429_v56, 4  ;;  %v2435_v58 = vshll.u32 %v7396_v45, 16  ;;  %v9082_v36 = vsel %vm6426_vm4, %v7300_v10, %v7250_v63  ;;  %v6295_v63 = vld [vmem:[%s6382_s26 + $0x6c] sm:$0xff]   ;;  %v5357_v6 = vld [vmem:[%s6382_s26 + $0x54] sm:$0xe] }
  0xb7   : > { %v5329_v51 = vcombine.low %v9082_v36, %v2318_v20  ;;  %v2332_v53 = vsel %vm6426_vm4, %v7372_v12, %v7314_v3  ;;  %v2342_v60 = vsel %vm6426_vm4, %v2337_v43, %v7359_v48  ;;  %v2356_v25 = vsel %vm6426_vm4, %v2351_v46, %v7349_v9  ;;  %v7452_v12 = vld [vmem:[%s6382_s26 + $0xc] sm:$0xe] }
  0xb8   : > { %v2366_v10 = vsel %vm6426_vm4, %v2361_v38, %v2365_v32  ;;  %v2380_v3 = vsel %vm6426_vm4, %v2375_v24, %v7369_v55  ;;  %v2390_v20 = vsel %vm6426_vm4, %v2385_v34, %v2389_v14  ;;  %v2432_v48 = vor.u32 %v2431_v11, %v7399_v39  ;;  %v5354_v55 = vld [vmem:[%s6382_s26 + $0x30] sm:$0xe]  ;;  %v5355_v14 = vld [vmem:[%s6382_s26 + $0x3c] sm:$0xe] }
  0xb9   : > { %6095 = vmatmul.mubr.msk.bf16.gmra.mxu0 %vm685_vm3, %v7283_v62  ;;  %v2404_v62 = vsel %vm6426_vm4, %v2399_v19, %v2403_v42  ;;  %v2414_v38 = vsel %vm6426_vm4, %v2409_v33, %v2413_v2  ;;  %v7459_v9 = vrot.slane %v2422_v57, 4  ;;  %v2799_v46 = vrot.slane %v6943_v49, 5  ;;  %v6296_v57 = vld [vmem:[%s6382_s26 + $0x78] sm:$0xff]  }
  0xba   : > { %6098 = vmatprep.mubr.msk.bf16.mxu0 %vm685_vm3, %v5327_v18  ;;  %v7463_v43 = vcombine.low %v2332_v53, %v2342_v60  ;;  %v7465_v32 = vrot.slane %v2432_v48, 4  ;;  %v7467_v52 = vrot.slane %v2435_v58, 5  ;;  %v5369_v7 = vrot.slane %v5353_v13, 9  ;;  %v6297_v53 = vld [vmem:[%s6382_s26 + $0x84] sm:$0xff]   ;;  %v5358_v13 = vld [vmem:[%s6382_s26 + $0x60] sm:$0xe] }
  0xbb   : > { %v7470_v54 = vcombine.low %v2356_v25, %v2366_v10  ;;  %v7472_v42 = vcombine.low %v2380_v3, %v2390_v20  ;;  %v5367_v37 = vrot.slane %v7452_v12, 9  ;;  %v2813_v24 = vrot.slane %v6992_v44, 5  ;;  %v6303_v49 = vld [vmem:[%s6382_s26 + $0x18] sm:$0xff]  }
  0xbc   : > { %6061 = vmatmul.mubr.msk.bf16.gmra.mxu1 %vm685_vm3, %v6294_v23  ;;  %v7478_v15 = vcombine.low %v2404_v62, %v2414_v38  ;;  %v2802_v34 = vrot.slane %v6979_v47, 5  ;;  %v2816_v29 = vrot.slane %v7007_v21, 5  ;;  %v5370_v56 = vrot.slane %v5354_v55, 9  ;;  %v5360_v55 = vld [vmem:[%s6382_s26 + $0x78] sm:$0xe] }
  0xbd   : > { %6064 = vmatprep.mubr.msk.bf16.mxu1 %vm685_vm3, %v6295_v63  ;;  %v2428_v16 = vsel %vm6426_vm4, %v7459_v9, %v7399_v39  ;;  %v7489_v44 = vrot.slane %v2799_v46, 4  ;;  %v7493_v18 = vsel %vm6712_vm7, %v5369_v7, %v2813_v24  ;;  %v2815_v19 = vrot.slane %v2813_v24, 4 }
  0xbe   : > { %v2438_v21 = vsel %vm6426_vm4, %v7465_v32, %v7467_v52  ;;  %v2820_v33 = vrot.slane %v7030_v5, 5  ;;  %v2823_v2 = vrot.slane %v7038_v41, 5  ;;  %v5371_v59 = vrot.slane %v5355_v14, 9  ;;  %v6302_v52 = vld [vmem:[%s6382_s26 + $0xc0] sm:$0xff]  }
  0xbf   : > { %v7505_v11 = vsel %vm6712_vm7, %v2815_v19, %v2816_v29  ;;  %v2827_v58 = vrot.slane %v7047_v61, 5  ;;  %v2830_v23 = vrot.slane %v7099_v50, 5  ;;  %v5372_v36 = vrot.slane %v5356_v26, 9  ;;  %v5361_v19 = vld [vmem:[%s6382_s26 + $0x84] sm:$0xe] }
  0xc0   : > { %v5386_v5 = vcombine.low %v7493_v18, %v7505_v11  ;;  %v7515_v41 = vsel %vm6712_vm7, %v5370_v56, %v2820_v33  ;;  %v2822_v60 = vrot.slane %v2820_v33, 4  ;;  %v2834_v25 = vrot.slane %v7065_v1, 5 }
  0xc1   : > { %6099 = vmatmul.mubr.msk.bf16.gmra.mxu0 %vm685_vm3, %v5328_v17  ;;  %v7522_v61 = vsel %vm6712_vm7, %v5371_v59, %v2827_v58  ;;  %v2829_v50 = vrot.slane %v2827_v58, 4  ;;  %v2837_v17 = vrot.slane %v7113_v8, 5  ;;  %v5373_v63 = vrot.slane %v5357_v6, 9  ;;  %v9083_v59 = vld [vmem:[#allocation4_spill] sm:$0xff] }
  0xc2   : > { %6102 = vmatprep.mubr.msk.bf16.mxu0 %vm685_vm3, %v5329_v51  ;;  %v7527_v10 = vsel %vm6712_vm7, %v2822_v60, %v2823_v2  ;;  %v7531_v3 = vsel %vm6712_vm7, %v5372_v36, %v2834_v25  ;;  %v2836_v1 = vrot.slane %v2834_v25, 4  ;;  %v2841_v20 = vrot.slane %v7108_v40, 5  ;;  %v5359_v51 = vld [vmem:[%s6382_s26 + $0x6c] sm:$0xe]  ;;  %v6298_v58 = vld [vmem:[%s6382_s26 + $0x90] sm:$0xff]  }
  0xc3   : > { %v5387_v48 = vcombine.low %v7515_v41, %v7527_v10  ;;  %v7540_v8 = vsel %vm6712_vm7, %v2829_v50, %v2830_v23  ;;  %v2844_v62 = vrot.slane %v7130_v35, 5  ;;  %v5374_v38 = vrot.slane %v5358_v13, 9  ;;  %v9084_v36 = vld [vmem:[#allocation3_spill] sm:$0xff]  ;;  %v5362_v60 = vld [vmem:[%s6382_s26 + $0x90] sm:$0xe]  ;;  %v9085_v50 = vld [vmem:[#allocation6_spill] sm:$0xff] }
  0xc4   : > { %6065 = vmatmul.mubr.msk.bf16.gmra.mxu1 %vm685_vm3, %v6296_v57  ;;  %v5388_v40 = vcombine.low %v7522_v61, %v7540_v8  ;;  %v7549_v7 = vsel %vm6712_vm7, %v2836_v1, %v2837_v17  ;;  %v7553_v24 = vsel %vm6712_vm7, %v5373_v63, %v2841_v20  ;;  %v2843_v14 = vrot.slane %v2841_v20, 4 }
  0xc5   : > { %6068 = vmatprep.mubr.msk.bf16.mxu1 %vm685_vm3, %v6297_v53  ;;  %v5389_v35 = vcombine.low %v7531_v3, %v7549_v7  ;;  %v2848_v29 = vrot.slane %v7143_v28, 5  ;;  %v2851_v56 = vrot.slane %v7165_v30, 5  ;;  %v5375_v26 = vrot.slane %v5359_v51, 9  ;;  %v9086_v51 = vld [vmem:[#allocation5_spill] sm:$0xff]  ;;  %v5493_v3 = vld [vmem:[%s6382_s26 + $0x48] sm:$0xf] }
  0xc6   : > { %v7562_v33 = vsel %vm6712_vm7, %v2843_v14, %v2844_v62  ;;  %v2855_v2 = vrot.slane %v7162_v27, 5  ;;  %v2858_v6 = vrot.slane %v9083_v59, 5  ;;  %v5376_v57 = vrot.slane %v5360_v55, 9  ;;  %v6299_v27 = vld [vmem:[%s6382_s26 + $0x9c] sm:$0xff]   ;;  %v9094_v55 = vld [vmem:[#allocation15_spill] sm:$0xff] }
  0xc7   : > { %v5390_v23 = vcombine.low %v7553_v24, %v7562_v33  ;;  %v7571_v28 = vsel %vm6712_vm7, %v5374_v38, %v2848_v29  ;;  %v2850_v30 = vrot.slane %v2848_v29, 4  ;;  %v2862_v53 = vrot.slane %v9084_v36, 5  ;;  %v5363_v38 = vld [vmem:[%s6382_s26 + $0x9c] sm:$0xe]  ;;  %v9089_v36 = vld [vmem:[#allocation12_spill] sm:$0xff] }
  0xc8   : > { %v7580_v25 = vsel %vm6712_vm7, %v5375_v26, %v2855_v2  ;;  %v2857_v13 = vrot.slane %v2855_v2, 4  ;;  %v2865_v17 = vrot.slane %v9085_v50, 5  ;;  %v5377_v63 = vrot.slane %v5361_v19, 9  ;;  %v5364_v26 = vld [vmem:[%s6382_s26 + $0xa8] sm:$0xe] }
  0xc9   : > { %6103 = vmatmul.mubr.msk.bf16.gmra.mxu0 %vm685_vm3, %v7463_v43  ;;  %v7587_v1 = vsel %vm6712_vm7, %v2850_v30, %v2851_v56  ;;  %v7591_v43 = vsel %vm6712_vm7, %v5376_v57, %v2862_v53  ;;  %v2864_v20 = vrot.slane %v2862_v53, 4  ;;  %v2869_v62 = vrot.slane %v9086_v51, 5  ;;  %v5366_v57 = vld [vmem:[%s6382_s26 + $0xc0] sm:$0xe]  ;;  %v6300_v19 = vld [vmem:[%s6382_s26 + $0xa8] sm:$0xff]  }
  0xca   : > { %6106 = vmatprep.mubr.msk.bf16.mxu0 %vm685_vm3, %v7470_v54  ;;  %v7599_v14 = vsel %vm6712_vm7, %v2857_v13, %v2858_v6  ;;  %v9087_v54 = vld [vmem:[#allocation8_spill] sm:$0xff]  ;;  %v5378_v56 = vrot.slane %v5362_v60, 9  ;;  %v2879_v53 = vrot.slane %v9089_v36, 5  ;;  %v5379_v60 = vrot.slane %v5363_v38, 9  ;;  %v9092_v38 = vld [vmem:[#allocation13_spill] sm:$0xff] }
  0xcb   : > { %v2872_v29 = vrot.slane %v9087_v54, 5  ;;  %v7608_v2 = vsel %vm6712_vm7, %v2864_v20, %v2865_v17  ;;  %v7612_v59 = vsel %vm6712_vm7, %v5377_v63, %v2869_v62  ;;  %v2871_v6 = vrot.slane %v2869_v62, 4  ;;  %v5365_v13 = vld [vmem:[%s6382_s26 + $0xb4] sm:$0xe]  ;;  %v9090_v17 = vld [vmem:[#allocation10_spill] sm:$0xff] }
  0xcc   : > { %6069 = vmatmul.mubr.msk.bf16.gmra.mxu1 %vm685_vm3, %v6298_v58  ;;  %v9088_v58 = vld [vmem:[#allocation7_spill] sm:$0xff]  ;;  %v2883_v63 = vrot.slane %v9090_v17, 5  ;;  %v9091_v20 = vld [vmem:[#allocation2_spill] sm:$0xff]  ;;  %v5380_v62 = vrot.slane %v5364_v26, 9  ;;  %v2890_v36 = vrot.slane %v9092_v38, 5  ;;  %v5381_v26 = vrot.slane %v5365_v13, 9 }
  0xcd   : > { %6072 = vmatprep.mubr.msk.bf16.mxu1 %vm685_vm3, %v6299_v27  ;;  %v2876_v30 = vrot.slane %v9088_v58, 5  ;;  %v7622_v50 = vsel %vm6712_vm7, %v2871_v6, %v2872_v29  ;;  %v2886_v51 = vrot.slane %v9091_v20, 5  ;;  %v9093_v17 = vld [vmem:[#allocation14_spill] sm:$0xff]  ;;  %v6301_v27 = vld [vmem:[%s6382_s26 + $0xb4] sm:$0xff]   ;;  %v2803_v39 = vsel %vm6712_vm7, %v7489_v44, %v2802_v34  ;;  %v7839_v7 = vld [vmem:[%s6382_s26 + $0x4c] sm:$0xf] }
  0xce   : > { %v7637_v29 = vsel %vm6712_vm7, %v5379_v60, %v2883_v63  ;;  %v2885_v6 = vrot.slane %v2883_v63, 4  ;;  %v2893_v20 = vrot.slane %v9093_v17, 5  ;;  %v2892_v38 = vrot.slane %v2890_v36, 4  ;;  %v6320_v44 = vld [vmem:[%s6382_s26 + $0x20] sm:$0x1] }
  0xcf   : > { %v7630_v54 = vsel %vm6712_vm7, %v5378_v56, %v2876_v30  ;;  %v2878_v58 = vrot.slane %v2876_v30, 4  ;;  %v7649_v30 = vsel %vm6712_vm7, %v5380_v62, %v2890_v36  ;;  %v2897_v60 = vrot.slane %v9094_v55, 5 }
  0xd0   : > { %v5382_v63 = vrot.slane %v5366_v57, 9  ;;  %v7665_v55 = vsel %vm6712_vm7, %v2892_v38, %v2893_v20  ;;  %v2904_v57 = vrot.slane %v7384_v22, 5  ;;  %v2800_v22 = vsel %vm6712_vm7, %v5367_v37, %v2799_v46  ;;  %v6305_v38 = vld [vmem:[%s6382_s26 + $0x30] sm:$0xff]  }
  0xd1   : > { %6107 = vmatmul.mubr.msk.bf16.gmra.mxu0 %vm685_vm3, %v7472_v42  ;;  %v7645_v56 = vsel %vm6712_vm7, %v2878_v58, %v2879_v53  ;;  %v7658_v42 = vsel %vm6712_vm7, %v2885_v6, %v2886_v51  ;;  %v2900_v53 = vrot.slane %v7375_v4, 5  ;;  %v2899_v58 = vrot.slane %v2897_v60, 4 }
  0xd2   : > { %6110 = vmatprep.mubr.msk.bf16.mxu0 %vm685_vm3, %v7478_v15  ;;  %v7669_v15 = vsel %vm6712_vm7, %v5381_v26, %v2897_v60  ;;  %v2907_v51 = vrot.slane %v7396_v45, 5  ;;  %v5352_v45 = vld [vmem:[%s6382_s26 + $0x18] sm:$0xe]  ;;  %v7709_v9 = vsel %vm6712_vm7, %v5382_v63, %v2904_v57  ;;  %v2906_v46 = vrot.slane %v2904_v57, 4  ;;  %v6304_v26 = vld [vmem:[%s6382_s26 + $0x24] sm:$0xff]  }
  0xd3   : > { %v7697_v32 = vsel %vm6712_vm7, %v2899_v58, %v2900_v53  ;;  %v5368_v37 = vrot.slane %v5352_v45, 9  ;;  %v5384_v34 = vcombine.low %v2800_v22, %v2803_v39  ;;  %v9095_v60 = vld [vmem:[#allocation9_spill] sm:$0xff] }
  0xd4   : > { %6073 = vmatmul.mubr.msk.bf16.gmra.mxu1 %vm685_vm3, %v6300_v19  ;;  %v5334_v19 = vcombine.low %v2428_v16, %v2438_v21  ;;  %v7714_v47 = vsel %vm6712_vm7, %v2906_v46, %v2907_v51  ;;  %v2809_v21 = vrot.slane %v6320_v44, 5  ;;  %v4563_v53 = vsel %vm734_vm0, %v9095_v60, 0  ;;  %v5481_v63 = vld [vmem:[%s6382_s26 + $0x18] sm:$0xf]  ;;  %v5482_v57 = vld [vmem:[%s6382_s26 + $0x1c] sm:$0xf] }
  0xd5   : > { %6076 = vmatprep.mubr.msk.bf16.mxu1 %vm685_vm3, %v6301_v27  ;;  %v6319_v27 = vld [vmem:[%s6382_s26 + $0x1c] sm:$0xf]  ;;  %v5484_v51 = vld [vmem:[%s6382_s26 + $0x24] sm:$0xf]  ;;  %v3611_v45 = vshrl.u32 %v5481_v63, 16  ;;  %v3620_v39 = vshll.u32 %v5482_v57, 16 }
  0xd6   : > { %v2806_v36 = vrot.slane %v6319_v27, 5  ;;  %v3614_v27 = vshll.u32 %v5481_v63, 16  ;;  %v3635_v46 = vshrl.u32 %v5484_v51, 16  ;;  %v6307_v44 = vld [vmem:[%s6382_s26 + $0x48] sm:$0xff]   ;;  %v5562_v60 = vld [vmem:[%s6382_s26 + $0x18] sm:$0xe] }
  0xd7   : > { %v7755_v63 = vld [vmem:[%s6382_s26 + $0x2c] sm:$0x1] }
  0xd8   : > { %v2808_v16 = vrot.slane %v2806_v36, 4  ;;  %v2807_v17 = vsel %vm6712_vm7, %v5368_v37, %v2806_v36  ;;  %v7739_v36 = vld [vmem:[%s6382_s26 + $0x28] sm:$0xf]  ;;  %v6306_v37 = vld [vmem:[%s6382_s26 + $0x3c] sm:$0xff]   ;;  %v3637_v18 = vrot.slane %v3635_v46, 4 }
  0xd9   : > { %6111 = vmatmul.mubr.msk.bf16.gmra.mxu0 %vm685_vm3, %v5334_v19  ;;  %v9096_v19 = vld [vmem:[#allocation11_spill] sm:$0xff] }
  0xda   : > { %6150 = vmatprep.mubr.msk.bf16.mxu0 %vm685_vm3, %v6303_v49  ;;  %v2810_v20 = vsel %vm6712_vm7, %v2808_v16, %v2809_v21  ;;  %v4093_v22 = vsel %vm734_vm0, %v9096_v19, 0  ;;  %v3624_v49 = vshrl.u32 %v5482_v57, 16  ;;  %v3648_v16 = vshrl.u32 %v7739_v36, 16  ;;  %v5483_v21 = vld [vmem:[%s6382_s26 + $0x20] sm:$0x1] }
  0xdb   : > { %v5385_v58 = vcombine.low %v2807_v17, %v2810_v20  ;;  %v3613_v17 = vrot.slane %v3611_v45, 4  ;;  %v3616_v20 = vrot.slane %v3614_v27, 5  ;;  %v5487_v19 = vld [vmem:[%s6382_s26 + $0x30] sm:$0xf]  ;;  %v3630_v45 = vshll.u32 %v5483_v21, 16 }
  0xdc   : > { %6077 = vmatmul.mubr.msk.bf16.gmra.mxu1 %vm685_vm3, %v6302_v52  ;;  %v3638_v52 = vshll.u32 %v5484_v51, 16  ;;  %v3650_v51 = vrot.slane %v3648_v16, 4  ;;  %v5578_v27 = vrot.slane %v5562_v60, 9  ;;  %v4357_v46 = vrot.slane %v5483_v21, 5  ;;  %v5563_v16 = vld [vmem:[%s6382_s26 + $0x24] sm:$0xe] }
  0xdd   : > { %6116 = vmatprep.mubr.msk.bf16.mxu1 %vm685_vm3, %v5384_v34  ;;  %v3644_v34 = vshll.u32 %v7739_v36, 16  ;;  %v6308_v21 = vld [vmem:[%s6382_s26 + $0x54] sm:$0xff]   ;;  %v3662_v10 = vshll.u32 %v5487_v19, 16  ;;  %v6309_v60 = vld [vmem:[%s6382_s26 + $0x60] sm:$0xff]  }
  0xde   : > { %v3640_v11 = vrot.slane %v3638_v52, 5  ;;  %v3654_v52 = vshll.u32 %v7755_v63, 16 }
  0xe1   : > { %6151 = vmatmul.mubr.msk.bf16.vlgmr.msra.gmra.mxu0 %vm685_vm3, %v6304_v26  ;;  %v7751_v26 = vrot.slane %v3620_v39, 5 }
  0xe2   : > { %6217 = vmatpush3.bf16.msra.mxu0 %v4563_v53  ;;  %6154 = vmatprep.mubr.msk.bf16.mxu0 %vm685_vm3, %v6305_v38  ;;  %v3626_v38 = vrot.slane %v3624_v49, 4  ;;  %v4354_v53 = vrot.slane %v5482_v57, 5  ;;  %v7765_v57 = vld [vmem:[%s6382_s26 + $0x34] sm:$0xf] }
  0xe4   : > { %6117 = vmatmul.mubr.msk.bf16.vlgmr.msra.gmra.mxu1 %vm685_vm3, %v5385_v58  ;;  %v7760_v58 = vrot.slane %v3644_v34, 5  ;;  %v3627_v39 = vor.u32 %v3626_v38, %v7751_v26  ;;  %v4356_v49 = vrot.slane %v4354_v53, 4  ;;  %v3641_v34 = vor.u32 %v3640_v11, %v3637_v18 }
  0xe5   : > { %6183 = vmatpush3.bf16.msra.mxu1 %v4093_v22  ;;  %6120 = vmatprep.mubr.msk.bf16.mxu1 %vm685_vm3, %v5386_v5  ;;  %v7758_v5 = vpop.f32.mrf.mxu0  ;;  %v3617_v22 = vor.u32 %v3616_v20, %v3613_v17  ;;  %v3659_v17 = vshrl.u32 %v5487_v19, 16  ;;  %v3672_v38 = vshrl.u32 %v7765_v57, 16  ;;  %v7790_v61 = vsel %vm6712_vm7, %v5578_v27, %v4354_v53  ;;  %v5490_v19 = vld [vmem:[%s6382_s26 + $0x3c] sm:$0xf] }
  0xe6   : > { %v3651_v41 = vor.u32 %v3650_v51, %v7760_v58  ;;  %v3628_v8 = vrot.slane %v3627_v39, 4  ;;  %v3656_v11 = vrot.slane %v3654_v52, 5  ;;  %v5579_v51 = vrot.slane %v5563_v16, 9  ;;  %v7804_v39 = vld [vmem:[%s6382_s26 + $0x38] sm:$0x1] }
  0xe7   : > { %v7782_v20 = vpop.f32.mrf.mxu0  ;;  %v3618_v18 = vrot.slane %v3617_v22, 4  ;;  %v3642_v12 = vrot.slane %v3641_v34, 4  ;;  %v4364_v22 = vrot.slane %v7755_v63, 5  ;;  %v3674_v52 = vrot.slane %v3672_v38, 4 }
  0xe8   : > { %v3652_v27 = vrot.slane %v3651_v41, 4  ;;  %v3683_v34 = vshrl.u32 %v5490_v19, 16  ;;  %v3686_v16 = vshll.u32 %v5490_v19, 16  ;;  %v7817_v41 = vld [vmem:[%s6382_s26 + $0x40] sm:$0xf] }
  0xe9   : > { %6155 = vmatmul.mubr.msk.bf16.gmra.mxu0 %vm685_vm3, %v6306_v37  ;;  %v7801_v53 = vpop.f32.mrf.mxu0  ;;  %v3623_v63 = vsel %vm6426_vm4, %v3618_v18, %v7751_v26  ;;  %v3647_v26 = vsel %vm6426_vm4, %v3642_v12, %v7760_v58  ;;  %v5564_v18 = vld [vmem:[%s6382_s26 + $0x30] sm:$0xe]  ;;  %v3692_v24 = vshll.u32 %v7817_v41, 16  ;;  %v3696_v33 = vshrl.u32 %v7817_v41, 16 }
  0xea   : > { %6158 = vmatprep.mubr.msk.bf16.mxu0 %vm685_vm3, %v6307_v44  ;;  %v7773_v37 = vpop.f32.mrf.mxu1  ;;  %v4361_v44 = vrot.slane %v7739_v36, 5  ;;  %v3632_v36 = vrot.slane %v3630_v45, 5  ;;  %v3661_v45 = vrot.slane %v3659_v17, 4  ;;  %v3657_v58 = vsel %vm6426_vm4, %v3652_v27, %v3656_v11 }
  0xeb   : > { %9097 = vst [vmem:[#allocation4_spill] sm:$0xff] %v7773_v37  ;;  %v7846_v12 = vpop.f32.mrf.mxu0  ;;  %v3688_v19 = vrot.slane %v3686_v16, 5  ;;  %v3720_v11 = vshrl.u32 %v7839_v7, 16 }
  0xec   : > { %6121 = vmatmul.mubr.msk.bf16.gmra.mxu1 %vm685_vm3, %v5387_v48  ;;  %v3668_v48 = vshll.u32 %v7765_v57, 16  ;;  %v7797_v6 = vpop.f32.mrf.mxu1  ;;  %v4363_v4 = vrot.slane %v4361_v44, 4  ;;  %v3633_v17 = vsel %vm6426_vm4, %v3628_v8, %v3632_v36  ;;  %v4368_v36 = vrot.slane %v7765_v57, 5  ;;  %v6311_v8 = vld [vmem:[%s6382_s26 + $0x78] sm:$0xff]  }
  0xed   : > { %6124 = vmatprep.mubr.msk.bf16.mxu1 %vm685_vm3, %v5388_v40  ;;  %v7794_v40 = vsel %vm6712_vm7, %v4356_v49, %v4357_v46  ;;  %9098 = vst [vmem:[#allocation3_spill] sm:$0xff] %v7797_v6  ;;  %v3664_v49 = vrot.slane %v3662_v10, 5  ;;  %v7860_v27 = vcombine.low %v3623_v63, %v3633_v17  ;;  %v7862_v57 = vcombine.low %v3647_v26, %v3657_v58  ;;  %v7876_v17 = vld [vmem:[%s6382_s26 + $0x58] sm:$0xf]  ;;  %v7882_v58 = vld [vmem:[%s6382_s26 + $0x44] sm:$0x1] }
  0xee   : > { %v7806_v46 = vrot.slane %v3668_v48, 5  ;;  %v7823_v10 = vpop.f32.mrf.mxu1  ;;  %v7830_v48 = vsel %vm6712_vm7, %v5579_v51, %v4361_v44  ;;  %v7834_v38 = vsel %vm6712_vm7, %v4363_v4, %v4364_v22  ;;  %v3685_v51 = vrot.slane %v3683_v34, 4  ;;  %v5496_v34 = vld [vmem:[%s6382_s26 + $0x54] sm:$0xf] }
  0xef   : > { %9099 = vst [vmem:[#allocation6_spill] sm:$0xff] %v7823_v10  ;;  %v3665_v44 = vor.u32 %v3664_v49, %v3661_v45  ;;  %v3710_v22 = vshll.u32 %v5493_v3, 16  ;;  %v4370_v13 = vrot.slane %v4368_v36, 4  ;;  %v4371_v63 = vrot.slane %v7804_v39, 5  ;;  %v5565_v49 = vld [vmem:[%s6382_s26 + $0x3c] sm:$0xe] }
  0xf0   : > { %v3675_v4 = vor.u32 %v3674_v52, %v7806_v46  ;;  %v7858_v45 = vpop.f32.mrf.mxu1  ;;  %v5580_v52 = vrot.slane %v5564_v18, 9  ;;  %v3689_v18 = vor.u32 %v3688_v19, %v3685_v51  ;;  %v9102_v6 = vcombine.low %v7571_v28, %v7587_v1 }
  0xf1   : > { %6159 = vmatmul.mubr.msk.bf16.gmra.mxu0 %vm685_vm3, %v6308_v21  ;;  %v3716_v21 = vshll.u32 %v7839_v7, 16  ;;  %9100 = vst [vmem:[#allocation5_spill] sm:$0xff] %v7858_v45  ;;  %v3712_v45 = vrot.slane %v3710_v22, 5  ;;  %v3731_v51 = vshrl.u32 %v5496_v34, 16  ;;  %v3734_v19 = vshll.u32 %v5496_v34, 16 }
  0xf2   : > { %6162 = vmatprep.mubr.msk.bf16.mxu0 %vm685_vm3, %v6309_v60  ;;  %v3678_v60 = vshll.u32 %v7804_v39, 16  ;;  %v7879_v26 = vrot.slane %v3675_v4, 4  ;;  %v3722_v39 = vrot.slane %v3720_v11, 4  ;;  %v7917_v22 = vsel %vm6712_vm7, %v4370_v13, %v4371_v63 }
  0xf3   : > { %v7887_v10 = vrot.slane %v3716_v21, 5  ;;  %v9104_v21 = vcombine.low %v7580_v25, %v7599_v14  ;;  %v4375_v25 = vrot.slane %v7817_v41, 5  ;;  %v6313_v14 = vld [vmem:[%s6382_s26 + $0x90] sm:$0xff]   ;;  %v5581_v1 = vrot.slane %v5565_v49, 9  ;;  %v5499_v41 = vld [vmem:[%s6382_s26 + $0x60] sm:$0xf] }
  0xf4   : > { %6125 = vmatmul.mubr.msk.bf16.gmra.mxu1 %vm685_vm3, %v5389_v35  ;;  %v6310_v35 = vld [vmem:[%s6382_s26 + $0x6c] sm:$0xff]   ;;  %v7872_v62 = vrot.slane %v3678_v60, 5  ;;  %v3733_v37 = vrot.slane %v3731_v51, 4 }
  0xf5   : > { %6128 = vmatprep.mubr.msk.bf16.mxu1 %vm685_vm3, %v5390_v23  ;;  %v3707_v23 = vshrl.u32 %v5493_v3, 16  ;;  %v7870_v3 = vrot.slane %v3665_v44, 4  ;;  %v3698_v44 = vrot.slane %v3696_v33, 4  ;;  %v3744_v33 = vshrl.u32 %v7876_v17, 16 }
  0xf6   : > { %v7868_v16 = vpop.f32.mrf.mxu0  ;;  %v3723_v13 = vor.u32 %v3722_v39, %v7887_v10  ;;  %v4382_v39 = vrot.slane %v7839_v7, 5  ;;  %v9108_v7 = vcombine.low %v7591_v43, %v7608_v2  ;;  %v9110_v43 = vcombine.low %v7612_v59, %v7622_v50  ;;  %v6314_v2 = vld [vmem:[%s6382_s26 + $0x9c] sm:$0xff]  }
  0xf7   : > { %9101 = vst [vmem:[#allocation8_spill] sm:$0xff] %v7868_v16  ;;  %v3709_v60 = vrot.slane %v3707_v23, 4  ;;  %v6312_v23 = vld [vmem:[%s6382_s26 + $0x84] sm:$0xff]   ;;  %v7944_v16 = vld [vmem:[%s6382_s26 + $0x5c] sm:$0x1]  ;;  %v4389_v59 = vrot.slane %v7876_v17, 5 }
  0xf8   : > { %v7905_v28 = vpop.f32.mrf.mxu0 }
  0xf9   : > { %6163 = vmatmul.mubr.msk.bf16.gmra.mxu0 %vm685_vm3, %v6310_v35  ;;  %v7884_v35 = vrot.slane %v3692_v24, 5  ;;  %v3740_v24 = vshll.u32 %v7876_v17, 16  ;;  %9105 = vst [vmem:[#allocation12_spill] sm:$0xff] %v7905_v28  ;;  %v3736_v28 = vrot.slane %v3734_v19, 5 }
  0xfa   : > { %6166 = vmatprep.mubr.msk.bf16.mxu0 %vm685_vm3, %v6311_v8  ;;  %v7893_v4 = vpop.f32.mrf.mxu1  ;;  %v7896_v8 = vld [vmem:[%s6382_s26 + $0x50] sm:$0x1]  ;;  %v7937_v49 = vpop.f32.mrf.mxu0 }
  0xfb   : > { %9103 = vst [vmem:[#allocation7_spill] sm:$0xff] %v7893_v4  ;;  %v3699_v34 = vor.u32 %v3698_v44, %v7884_v35  ;;  %v7927_v4 = vrot.slane %v3689_v18, 4  ;;  %v7934_v11 = vrot.slane %v3740_v24, 5  ;;  %v3746_v44 = vrot.slane %v3744_v33, 4  ;;  %9107 = vst [vmem:[#allocation2_spill] sm:$0xff] %v7937_v49 }
  0xfc   : > { %6129 = vmatmul.mubr.msk.bf16.gmra.mxu1 %vm685_vm3, %v9102_v6  ;;  %v7913_v6 = vsel %vm6712_vm7, %v5580_v52, %v4368_v36  ;;  %v3713_v36 = vor.u32 %v3712_v45, %v3709_v60  ;;  %v3726_v52 = vshll.u32 %v7896_v8, 16  ;;  %v7932_v63 = vpop.f32.mrf.mxu1  ;;  %v4377_v18 = vrot.slane %v4375_v25, 4  ;;  %v5566_v24 = vld [vmem:[%s6382_s26 + $0x48] sm:$0xe] }
  0xfd   : > { %6132 = vmatprep.mubr.msk.bf16.mxu1 %vm685_vm3, %v9104_v21  ;;  %v3702_v21 = vshll.u32 %v7882_v58, 16  ;;  %9106 = vst [vmem:[#allocation10_spill] sm:$0xff] %v7932_v63  ;;  %v4378_v60 = vrot.slane %v7882_v58, 5  ;;  %v3700_v51 = vrot.slane %v3699_v34, 4  ;;  %v3755_v33 = vshrl.u32 %v5499_v41, 16 }
  0xfe   : > { %v7950_v63 = vsel %vm6712_vm7, %v5581_v1, %v4375_v25  ;;  %v3714_v45 = vrot.slane %v3713_v36, 4  ;;  %v3724_v49 = vrot.slane %v3723_v13, 4  ;;  %v3728_v58 = vrot.slane %v3726_v52, 5  ;;  %v7965_v36 = vld [vmem:[%s6382_s26 + $0x64] sm:$0xf]  ;;  %v7972_v13 = vpop.f32.mrf.mxu0 }
  0xff   : > { %v3704_v19 = vrot.slane %v3702_v21, 5  ;;  %v3695_v34 = vsel %vm6426_vm4, %v7927_v4, %v7884_v35  ;;  %v3737_v21 = vor.u32 %v3736_v28, %v3733_v37  ;;  %v3747_v1 = vor.u32 %v3746_v44, %v7934_v11  ;;  %9111 = vst [vmem:[#allocation14_spill] sm:$0xff] %v7972_v13  ;;  %v5567_v28 = vld [vmem:[%s6382_s26 + $0x54] sm:$0xe]  ;;  %v6318_v13 = vld [vmem:[%s6382_s26 + $0xcc] sm:$0xff]  }
 0x100   : > { %v3750_v25 = vshll.u32 %v7944_v16, 16  ;;  %v7976_v52 = vsel %vm6712_vm7, %v4377_v18, %v4378_v60  ;;  %v5582_v35 = vrot.slane %v5566_v24, 9  ;;  %v4384_v37 = vrot.slane %v4382_v39, 4 }
 0x101   : > { %6167 = vmatmul.mubr.msk.bf16.gmra.mxu0 %vm685_vm3, %v6312_v23  ;;  %v3758_v23 = vshll.u32 %v5499_v41, 16  ;;  %v4385_v4 = vrot.slane %v7896_v8, 5  ;;  %v6315_v41 = vld [vmem:[%s6382_s26 + $0xa8] sm:$0xff]   ;;  %v3705_v44 = vsel %vm6426_vm4, %v3700_v51, %v3704_v19  ;;  %v3757_v50 = vrot.slane %v3755_v33, 4 }
 0x102   : > { %6170 = vmatprep.mubr.msk.bf16.mxu0 %vm685_vm3, %v6313_v14  ;;  %v7956_v14 = vpop.f32.mrf.mxu1  ;;  %v3729_v18 = vsel %vm6426_vm4, %v3724_v49, %v3728_v58  ;;  %v3764_v60 = vshll.u32 %v7965_v36, 16  ;;  %v3768_v8 = vshrl.u32 %v7965_v36, 16  ;;  %v3748_v51 = vrot.slane %v3747_v1, 4  ;;  %v7994_v33 = vld [vmem:[%s6382_s26 + $0x68] sm:$0x1] }
 0x103   : > { %9109 = vst [vmem:[#allocation13_spill] sm:$0xff] %v7956_v14  ;;  %v3738_v14 = vrot.slane %v3737_v21, 4  ;;  %v3752_v17 = vrot.slane %v3750_v25, 5  ;;  %v5583_v19 = vrot.slane %v5567_v28, 9  ;;  %v9114_v49 = vsel %vm6426_vm4, %v7879_v26, %v7872_v62  ;;  %v5502_v25 = vld [vmem:[%s6382_s26 + $0x6c] sm:$0xf] }
 0x104   : > { %6133 = vmatmul.mubr.msk.bf16.gmra.mxu1 %vm685_vm3, %v9108_v7  ;;  %v3760_v7 = vrot.slane %v3758_v23, 5  ;;  %v7991_v24 = vpop.f32.mrf.mxu1  ;;  %v8015_v21 = vsel %vm6712_vm7, %v5582_v35, %v4382_v39  ;;  %v8019_v1 = vsel %vm6712_vm7, %v4384_v37, %v4385_v4  ;;  %v8022_v62 = vcombine.low %v3695_v34, %v3705_v44  ;;  %v5568_v4 = vld [vmem:[%s6382_s26 + $0x60] sm:$0xe]  ;;  %v5508_v44 = vld [vmem:[%s6382_s26 + $0x84] sm:$0xf] }
 0x105   : > { %6136 = vmatprep.mubr.msk.bf16.mxu1 %vm685_vm3, %v9110_v43  ;;  %v3719_v43 = vsel %vm6426_vm4, %v3714_v45, %v7887_v10  ;;  %9112 = vst [vmem:[#allocation15_spill] sm:$0xff] %v7991_v24  ;;  %v9115_v45 = vsel %vm6426_vm4, %v7870_v3, %v7806_v46  ;;  %v4391_v46 = vrot.slane %v4389_v59, 4  ;;  %v4392_v3 = vrot.slane %v7944_v16, 5 }
 0x106   : > { %v8009_v23 = vcombine.low %v9115_v45, %v9114_v49  ;;  %9116 = vst [vmem:[#allocation11_spill] sm:$0xff] %v8022_v62  ;;  %v3761_v26 = vor.u32 %v3760_v7, %v3757_v50  ;;  %v8029_v28 = vcombine.low %v3719_v43, %v3729_v18  ;;  %v8031_v39 = vrot.slane %v3764_v60, 5 }
 0x107   : > { %v7997_v10 = vpop.f32.mrf.mxu0  ;;  %v8033_v35 = vrot.slane %v3768_v8, 4  ;;  %v3774_v37 = vshll.u32 %v7994_v33, 16  ;;  %v9118_v34 = vcombine.low %v7630_v54, %v7645_v56  ;;  %v3743_v50 = vsel %vm6426_vm4, %v3738_v14, %v7934_v11  ;;  %v5505_v54 = vld [vmem:[%s6382_s26 + $0x78] sm:$0xf] }
 0x108   : > { %9113 = vst [vmem:[#allocation9_spill] sm:$0xff] %v7997_v10  ;;  %9117 = vst [vmem:[#allocation16_spill] sm:$0xff] %v8029_v28  ;;  %v3753_v7 = vsel %vm6426_vm4, %v3748_v51, %v3752_v17  ;;  %v8053_v43 = vsel %vm6712_vm7, %v5583_v19, %v4389_v59  ;;  %v9120_v56 = vcombine.low %v7637_v29, %v7658_v42  ;;  %v3779_v60 = vshrl.u32 %v5502_v25, 16  ;;  %v8065_v51 = vld [vmem:[%s6382_s26 + $0x7c] sm:$0xf]  ;;  %v6317_v59 = vld [vmem:[%s6382_s26 + $0xc0] sm:$0xff]  }
 0x109   : > { %6171 = vmatmul.mubr.msk.bf16.gmra.mxu0 %vm685_vm3, %v6314_v2  ;;  %v8027_v2 = vld [vmem:[%s6382_s26 + $0x70] sm:$0xf]  ;;  %v8060_v18 = vpop.f32.mrf.mxu0  ;;  %v3782_v8 = vshll.u32 %v5502_v25, 16  ;;  %v8070_v17 = vsel %vm6712_vm7, %v4391_v46, %v4392_v3  ;;  %v8072_v29 = vrot.slane %v3761_v26, 4  ;;  %v5584_v42 = vrot.slane %v5568_v4, 9 }
 0x10a   : > { %6174 = vmatprep.mubr.msk.bf16.mxu0 %vm685_vm3, %v6315_v41  ;;  %v6316_v41 = vld [vmem:[%s6382_s26 + $0xb4] sm:$0xff]   ;;  %9121 = vst [vmem:[#allocation18_spill] sm:$0xff] %v8060_v18  ;;  %v3788_v11 = vshll.u32 %v8027_v2, 16  ;;  %v3792_v14 = vshrl.u32 %v8027_v2, 16  ;;  %v4396_v19 = vrot.slane %v7965_v36, 5  ;;  %v8075_v49 = vcombine.low %v3743_v50, %v3753_v7 }
 0x10b   : > { %v3771_v45 = vor.u32 %v8033_v35, %v8031_v39  ;;  %v8079_v25 = vrot.slane %v3774_v37, 5  ;;  %v3803_v46 = vshrl.u32 %v5505_v54, 16  ;;  %v3806_v3 = vshll.u32 %v5505_v54, 16  ;;  %v8091_v4 = vld [vmem:[%s6382_s26 + $0x88] sm:$0xf]  ;;  %v8094_v35 = vpop.f32.mrf.mxu0 }
 0x10c   : > { %6137 = vmatmul.mubr.msk.bf16.gmra.mxu1 %vm685_vm3, %v9118_v34  ;;  %v8041_v16 = vpop.f32.mrf.mxu1  ;;  %9122 = vst [vmem:[#allocation19_spill] sm:$0xff] %v8075_v49  ;;  %v4399_v34 = vrot.slane %v7994_v33, 5  ;;  %v3812_v36 = vshll.u32 %v8065_v51, 16  ;;  %v3816_v26 = vshrl.u32 %v8065_v51, 16  ;;  %9124 = vst [vmem:[#allocation21_spill] sm:$0xff] %v8094_v35  ;;  %v3781_v33 = vrot.slane %v3779_v60, 4 }
 0x10d   : > { %9119 = vst [vmem:[#allocation17_spill] sm:$0xff] %v8041_v16  ;;  %6140 = vmatprep.mubr.msk.bf16.mxu1 %vm685_vm3, %v9120_v56  ;;  %v8083_v56 = vld [vmem:[%s6382_s26 + $0x74] sm:$0x1]  ;;  %v3784_v37 = vrot.slane %v3782_v8, 5  ;;  %v8096_v50 = vrot.slane %v3788_v11, 5  ;;  %v3794_v7 = vrot.slane %v3792_v14, 4  ;;  %v9125_v54 = vcombine.low %v7649_v30, %v7665_v55  ;;  %v8124_v49 = vpop.f32.mrf.mxu0 }
 0x10e   : > { %v8086_v58 = vpop.f32.mrf.mxu1  ;;  %v4398_v16 = vrot.slane %v4396_v19, 4  ;;  %v8109_v60 = vld [vmem:[%s6382_s26 + $0x80] sm:$0x1]  ;;  %v8112_v8 = vld [vmem:[%s6382_s26 + $0x6c] sm:$0xe]  ;;  %v3827_v11 = vshrl.u32 %v5508_v44, 16 }
 0x10f   : > { %9123 = vst [vmem:[#allocation20_spill] sm:$0xff] %v8086_v58  ;;  %v8105_v58 = vsel %vm6712_vm7, %v5584_v42, %v4396_v19  ;;  %v3830_v14 = vshll.u32 %v5508_v44, 16  ;;  %v3840_v24 = vshrl.u32 %v8091_v4, 16  ;;  %v3805_v19 = vrot.slane %v3803_v46, 4  ;;  %9127 = vst [vmem:[#allocation23_spill] sm:$0xff] %v8124_v49 }
 0x110   : > { %v8120_v42 = vpop.f32.mrf.mxu1  ;;  %v3808_v35 = vrot.slane %v3806_v3, 5  ;;  %v8122_v18 = vrot.slane %v3812_v36, 5  ;;  %v3818_v10 = vrot.slane %v3816_v26, 4  ;;  %v9128_v44 = vcombine.low %v7669_v15, %v7697_v32  ;;  %v8143_v32 = vld [vmem:[%s6382_s26 + $0x8c] sm:$0x1] }
 0x111   : > { %6175 = vmatmul.mubr.msk.bf16.gmra.mxu0 %vm685_vm3, %v6316_v41  ;;  %v3798_v41 = vshll.u32 %v8083_v56, 16  ;;  %9126 = vst [vmem:[#allocation22_spill] sm:$0xff] %v8120_v42  ;;  %v3785_v30 = vor.u32 %v3784_v37, %v3781_v33  ;;  %v3795_v55 = vor.u32 %v3794_v7, %v8096_v50  ;;  %v3822_v46 = vshll.u32 %v8109_v60, 16  ;;  %v5570_v33 = vld [vmem:[%s6382_s26 + $0x78] sm:$0xe] }
 0x112   : > { %6178 = vmatprep.mubr.msk.bf16.mxu0 %vm685_vm3, %v6317_v59  ;;  %v3836_v59 = vshll.u32 %v8091_v4, 16  ;;  %v8134_v3 = vrot.slane %v3771_v45, 4  ;;  %v8138_v36 = vsel %vm6712_vm7, %v4398_v16, %v4399_v34  ;;  %v5585_v26 = vrot.slane %v8112_v8, 9  ;;  %v8148_v42 = vpop.f32.mrf.mxu1  ;;  %v5511_v8 = vld [vmem:[%s6382_s26 + $0x90] sm:$0xf] }
 0x113   : > { %v4410_v15 = vrot.slane %v8065_v51, 5  ;;  %v3829_v37 = vrot.slane %v3827_v11, 4  ;;  %v3832_v7 = vrot.slane %v3830_v14, 5  ;;  %9129 = vst [vmem:[#allocation24_spill] sm:$0xff] %v8148_v42  ;;  %v3800_v45 = vrot.slane %v3798_v41, 5 }
 0x114   : > { %6141 = vmatmul.mubr.msk.bf16.gmra.mxu1 %vm685_vm3, %v9125_v54  ;;  %v4403_v54 = vrot.slane %v8027_v2, 5  ;;  %v8146_v2 = vrot.slane %v3836_v59, 5  ;;  %v4406_v49 = vrot.slane %v8083_v56, 5  ;;  %v3809_v16 = vor.u32 %v3808_v35, %v3805_v19  ;;  %v8157_v59 = vld [vmem:[%s6382_s26 + $0x94] sm:$0xf] }
 0x115   : > { %6144 = vmatprep.mubr.msk.bf16.mxu1 %vm685_vm3, %v9128_v44  ;;  %v3842_v44 = vrot.slane %v3840_v24, 4  ;;  %v3819_v34 = vor.u32 %v3818_v10, %v8122_v18  ;;  %v3786_v51 = vrot.slane %v3785_v30, 4  ;;  %v3796_v11 = vrot.slane %v3795_v55, 4 }
 0x116   : > { %v4405_v62 = vrot.slane %v4403_v54, 4  ;;  %v3824_v14 = vrot.slane %v3822_v46, 5  ;;  %v9130_v24 = vcombine.low %v7790_v61, %v7794_v40  ;;  %v5586_v56 = vrot.slane %v5570_v33, 9 }
 0x117   : > { %v4412_v35 = vrot.slane %v4410_v15, 4  ;;  %v4413_v10 = vrot.slane %v8109_v60, 5  ;;  %v3846_v41 = vshll.u32 %v8143_v32, 16  ;;  %v3843_v30 = vor.u32 %v3842_v44, %v8146_v2 }
 0x118   : > { %v3851_v55 = vshrl.u32 %v5511_v8, 16  ;;  %v3854_v46 = vshll.u32 %v5511_v8, 16  ;;  %v9132_v61 = vcombine.low %v7709_v9, %v7714_v47  ;;  %v3810_v40 = vrot.slane %v3809_v16, 4 }
 0x119   : > { %v8153_v28 = vpop.f32.mrf.mxu0  ;;  %6179 = vmatmul.mubr.msk.bf16.gmra.mxu0 %vm685_vm3, %v6318_v13  ;;  %v3833_v13 = vor.u32 %v3832_v7, %v3829_v37  ;;  %v3820_v33 = vrot.slane %v3819_v34, 4  ;;  %v3860_v60 = vshll.u32 %v8157_v59, 16  ;;  %v3777_v37 = vsel %vm6426_vm4, %v8134_v3, %v8079_v25 }
 0x11a   : > { %6218 = vmatprep.mubr.msk.bf16.mxu0 %vm685_vm3, %v9130_v24  ;;  %v3864_v24 = vshrl.u32 %v8157_v59, 16  ;;  %v3791_v9 = vsel %vm6426_vm4, %v3786_v51, %v8096_v50  ;;  %v8189_v47 = vsel %vm6712_vm7, %v5585_v26, %v4403_v54  ;;  %v8193_v7 = vsel %vm6712_vm7, %v4405_v62, %v4406_v49  ;;  %v5571_v54 = vld [vmem:[%s6382_s26 + $0x84] sm:$0xe]  ;;  %v9171_v31 = vld [vmem:[#allocation24_spill] sm:$0xff] }
 0x11b   : > { %v8165_v19 = vpop.f32.mrf.mxu0  ;;  %v8201_v25 = vsel %vm6712_vm7, %v5586_v56, %v4410_v15  ;;  %v8205_v50 = vsel %vm6712_vm7, %v4412_v35, %v4413_v10  ;;  %v3848_v3 = vrot.slane %v3846_v41, 5  ;;  %v3834_v62 = vrot.slane %v3833_v13, 4  ;;  %v8229_v13 = vld [vmem:[%s6382_s26 + $0x98] sm:$0x1] }
 0x11c   : > { %9131 = vst [vmem:[#allocation25_spill] sm:$0xff] %v8165_v19  ;;  %v8168_v42 = vpop.f32.mrf.mxu1  ;;  %6145 = vmatmul.mubr.msk.bf16.gmra.mxu1 %vm685_vm3, %v9132_v61  ;;  %v3844_v49 = vrot.slane %v3843_v30, 4  ;;  %v3853_v16 = vrot.slane %v3851_v55, 4  ;;  %v3856_v34 = vrot.slane %v3854_v46, 5  ;;  %v3815_v15 = vsel %vm6426_vm4, %v3810_v40, %v8122_v18  ;;  %v5514_v30 = vld [vmem:[%s6382_s26 + $0x9c] sm:$0xf] }
 0x11d   : > { %v8176_v19 = vpop.f32.mrf.mxu0  ;;  %6184 = vmatprep.mubr.msk.bf16.mxu1 %vm685_vm3, %v7860_v27  ;;  %v3801_v27 = vsel %vm6426_vm4, %v3796_v11, %v3800_v45  ;;  %v3825_v45 = vsel %vm6426_vm4, %v3820_v33, %v3824_v14  ;;  %v8217_v51 = vrot.slane %v3860_v60, 5  ;;  %v3866_v11 = vrot.slane %v3864_v24, 4  ;;  %v8260_v24 = vld [vmem:[%s6382_s26 + $0xa0] sm:$0xf] }
 0x11e   : > { %v8195_v44 = vpop.f32.mrf.mxu1  ;;  %v9133_v35 = vcombine.low %v7830_v48, %v7834_v38  ;;  %v5600_v10 = vcombine.low %v8053_v43, %v8070_v17  ;;  %v5601_v41 = vcombine.low %v8105_v58, %v8138_v36  ;;  %v5587_v18 = vrot.slane %v5571_v54, 9 }
 0x11f   : > { %v8208_v26 = vpop.f32.mrf.mxu0  ;;  %v4417_v14 = vrot.slane %v8091_v4, 5  ;;  %v9134_v48 = vcombine.low %v7913_v6, %v7917_v22  ;;  %v9135_v38 = vsel %vm6426_vm4, %v8072_v29, %v8031_v39  ;;  %v8245_v61 = vcombine.low %v3791_v9, %v3801_v27  ;;  %v5572_v29 = vld [vmem:[%s6382_s26 + $0x90] sm:$0xe]  ;;  %v9142_v4 = vld [vmem:[#allocation2_spill] sm:$0xff] }
 0x120   : > { %v8210_v8 = vpop.f32.mrf.mxu1  ;;  %v8243_v46 = vcombine.low %v9135_v38, %v3777_v37  ;;  %v8251_v60 = vcombine.low %v3815_v15, %v3825_v45  ;;  %v3839_v6 = vsel %vm6426_vm4, %v3834_v62, %v8146_v2  ;;  %v3849_v22 = vsel %vm6426_vm4, %v3844_v49, %v3848_v3 }
 0x121   : > { %v6016_v56 = vpop.f32.mrf.mxu0  ;;  %6219 = vmatmul.mubr.msk.bf16.vlgmr.msra.gmra.mxu0 %vm685_vm3, %v9133_v35  ;;  %v3857_v39 = vor.u32 %v3856_v34, %v3853_v16  ;;  %v3867_v9 = vor.u32 %v3866_v11, %v8217_v51  ;;  %v3870_v27 = vshll.u32 %v8229_v13, 16  ;;  %v3875_v54 = vshrl.u32 %v5514_v30, 16 }
 0x122   : > { %v8232_v55 = vpop.f32.mrf.mxu1  ;;  %6222 = vmatprep.mubr.msk.bf16.mxu0 %vm685_vm3, %v9134_v48  ;;  %v3878_v15 = vshll.u32 %v5514_v30, 16  ;;  %v8271_v3 = vsel %vm6712_vm7, %v5587_v18, %v4417_v14  ;;  %v4419_v62 = vrot.slane %v4417_v14, 4  ;;  %v4420_v49 = vrot.slane %v8143_v32, 5 }
 0x123   : > { %v1489_v33 = vpop.f32.mrf.mxu0  ;;  %v5588_v16 = vrot.slane %v5572_v29, 9  ;;  %v4424_v34 = vrot.slane %v8157_v59, 5  ;;  %v3884_v11 = vshll.u32 %v8260_v24, 16  ;;  %v3888_v35 = vshrl.u32 %v8260_v24, 16 }
 0x124   : > { %v5982_v37 = vpop.f32.mrf.mxu1  ;;  %6185 = vmatmul.mubr.msk.bf16.vlgmr.msra.gmra.mxu1 %vm685_vm3, %v7862_v57  ;;  %v8280_v48 = vcombine.low %v3839_v6, %v3849_v22  ;;  %v8282_v18 = vrot.slane %v3857_v39, 4  ;;  %v3868_v32 = vrot.slane %v3867_v9, 4  ;;  %v3872_v38 = vrot.slane %v3870_v27, 5  ;;  %v5517_v22 = vld [vmem:[%s6382_s26 + $0xa8] sm:$0xf] }
 0x125   : > { %v1073_v45 = vadd.f32 %v5982_v37, %v7758_v5  ;;  %v6017_v2 = vpop.f32.mrf.mxu0  ;;  %6188 = vmatprep.mubr.msk.bf16.mxu1 %vm685_vm3, %v8009_v23  ;;  %v3877_v29 = vrot.slane %v3875_v54, 4  ;;  %v3880_v59 = vrot.slane %v3878_v15, 5  ;;  %v4427_v6 = vrot.slane %v8229_v13, 5  ;;  %v8308_v27 = vld [vmem:[%s6382_s26 + $0xac] sm:$0xf] }
 0x126   : > { %v1064_v57 = vpop.f32.mrf.mxu1  ;;  %v3890_v9 = vrot.slane %v3888_v35, 4  ;;  %v9139_v35 = vld [vmem:[#allocation8_spill] sm:$0xff] }
 0x127   : > { %v8277_v5 = vadd.f32 %v6016_v56, %v1073_v45  ;;  %v1065_v23 = vadd.f32 %v1064_v57, %v7782_v20  ;;  %v1492_v30 = vpop.f32.mrf.mxu0  ;;  %v9136_v45 = vcombine.low %v7950_v63, %v7976_v52  ;;  %v8293_v20 = vsel %vm6712_vm7, %v4419_v62, %v4420_v49  ;;  %v5573_v62 = vld [vmem:[%s6382_s26 + $0x9c] sm:$0xe] }
 0x128   : > { %v5983_v14 = vpop.f32.mrf.mxu1  ;;  %v4426_v63 = vrot.slane %v4424_v34, 4  ;;  %v8305_v52 = vrot.slane %v3884_v11, 5  ;;  %v4431_v49 = vrot.slane %v8260_v24, 5  ;;  %v3908_v24 = vshll.u32 %v8308_v27, 16 }
 0x129   : > { %v8284_v37 = vadd.f32 %v1489_v33, %v1065_v23  ;;  %v1076_v40 = vadd.f32 %v5983_v14, %v7801_v53  ;;  %v6020_v56 = vpop.f32.mrf.mxu0  ;;  %6223 = vmatmul.mubr.msk.bf16.gmra.mxu0 %vm685_vm3, %v9136_v45  ;;  %v9137_v33 = vcombine.low %v8015_v21, %v8019_v1  ;;  %v8303_v53 = vsel %vm6712_vm7, %v5588_v16, %v4424_v34  ;;  %v5516_v1 = vld [vmem:[%s6382_s26 + $0xa4] sm:$0x1]  ;;  %v9138_v16 = vld [vmem:[#allocation11_spill] sm:$0xff] }
 0x12a   : > { %v1067_v39 = vpop.f32.mrf.mxu1  ;;  %v3863_v21 = vsel %vm6426_vm4, %v8282_v18, %v8217_v51  ;;  %v3899_v34 = vshrl.u32 %v5517_v22, 16  ;;  %v9140_v51 = vld [vmem:[#allocation16_spill] sm:$0xff]  ;;  %v3912_v18 = vshrl.u32 %v8308_v27, 16 }
 0x12b   : > { %6226 = vmatprep.mubr.msk.bf16.mxu0 %vm685_vm3, %v9137_v33  ;;  %v8310_v54 = vadd.f32 %v6017_v2, %v1076_v40  ;;  %v1068_v13 = vadd.f32 %v1067_v39, %v7846_v12  ;;  %v1505_v15 = vpop.f32.mrf.mxu0  ;;  %v3873_v40 = vsel %vm6426_vm4, %v3868_v32, %v3872_v38  ;;  %v3881_v2 = vor.u32 %v3880_v59, %v3877_v29  ;;  %v9141_v59 = vld [vmem:[#allocation12_spill] sm:$0xff] }
 0x12c   : > { %v5986_v57 = vpop.f32.mrf.mxu1  ;;  %6189 = vmatmul.mubr.msk.bf16.gmra.mxu1 %vm685_vm3, %v9138_v16  ;;  %v3902_v12 = vshll.u32 %v5517_v22, 16  ;;  %v8333_v39 = vsel %vm6712_vm7, %v4426_v63, %v4427_v6  ;;  %v3891_v32 = vor.u32 %v3890_v9, %v8305_v52  ;;  %v3894_v38 = vshll.u32 %v5516_v1, 16 }
 0x12d   : > { %v8324_v11 = vadd.f32 %v1492_v30, %v1068_v13  ;;  %v1089_v23 = vadd.f32 %v5986_v57, %v9139_v35  ;;  %v6021_v14 = vpop.f32.mrf.mxu0  ;;  %6192 = vmatprep.mubr.msk.bf16.mxu1 %vm685_vm3, %v9140_v51  ;;  %v5589_v30 = vrot.slane %v5573_v62, 9  ;;  %v4433_v13 = vrot.slane %v4431_v49, 4 }
 0x12e   : > { %v1080_v45 = vpop.f32.mrf.mxu1  ;;  %v4434_v57 = vrot.slane %v5516_v1, 5  ;;  %v8341_v51 = vrot.slane %v3881_v2, 4  ;;  %v3901_v6 = vrot.slane %v3899_v34, 4  ;;  %v3904_v63 = vrot.slane %v3902_v12, 5  ;;  %v8351_v1 = vld [vmem:[%s6382_s26 + $0xb0] sm:$0x1] }
 0x12f   : > { %v8336_v29 = vadd.f32 %v6020_v56, %v1089_v23  ;;  %v1081_v22 = vadd.f32 %v1080_v45, %v9141_v59  ;;  %v1508_v33 = vpop.f32.mrf.mxu0  ;;  %v8353_v23 = vrot.slane %v3908_v24, 5  ;;  %v3914_v2 = vrot.slane %v3912_v18, 4  ;;  %v9143_v12 = vld [vmem:[#allocation14_spill] sm:$0xff] }
 0x130   : > { %v5987_v16 = vpop.f32.mrf.mxu1  ;;  %v8363_v43 = vrot.slane %v3891_v32, 4  ;;  %v8365_v17 = vrot.slane %v3894_v38, 5  ;;  %v8373_v58 = vsel %vm6712_vm7, %v5589_v30, %v4431_v49  ;;  %v8377_v36 = vsel %vm6712_vm7, %v4433_v13, %v4434_v57  ;;  %v8389_v30 = vld [vmem:[%s6382_s26 + $0xb8] sm:$0xf] }
 0x131   : > { %v8343_v9 = vadd.f32 %v1505_v15, %v1081_v22  ;;  %v1092_v62 = vadd.f32 %v5987_v16, %v9142_v4  ;;  %v6024_v56 = vpop.f32.mrf.mxu0  ;;  %6227 = vmatmul.mubr.msk.bf16.gmra.mxu0 %vm685_vm3, %v5600_v10  ;;  %v8359_v15 = vcombine.low %v3863_v21, %v3873_v40  ;;  %v5574_v10 = vld [vmem:[%s6382_s26 + $0xa8] sm:$0xe]  ;;  %v3905_v32 = vor.u32 %v3904_v63, %v3901_v6  ;;  %v9145_v22 = vld [vmem:[#allocation9_spill] sm:$0xff] }
 0x132   : > { %v1083_v45 = vpop.f32.mrf.mxu1  ;;  %6230 = vmatprep.mubr.msk.bf16.mxu0 %vm685_vm3, %v5601_v41  ;;  %v5520_v41 = vld [vmem:[%s6382_s26 + $0xb4] sm:$0xf]  ;;  %v9144_v40 = vld [vmem:[#allocation19_spill] sm:$0xff]  ;;  %v3918_v38 = vshll.u32 %v8351_v1, 16  ;;  %v4438_v49 = vrot.slane %v8308_v27, 5  ;;  %v3915_v16 = vor.u32 %v3914_v2, %v8353_v23  ;;  %v3897_v27 = vsel %vm6426_vm4, %v8363_v43, %v8365_v17 }
 0x133   : > { %v8368_v34 = vadd.f32 %v6021_v14, %v1092_v62  ;;  %v1084_v24 = vadd.f32 %v1083_v45, %v9143_v12  ;;  %v1521_v18 = vpop.f32.mrf.mxu0  ;;  %v5590_v62 = vrot.slane %v5574_v10, 9  ;;  %v3923_v6 = vshrl.u32 %v5520_v41, 16 }
 0x134   : > { %v5990_v21 = vpop.f32.mrf.mxu1  ;;  %6193 = vmatmul.mubr.msk.bf16.gmra.mxu1 %vm685_vm3, %v9144_v40  ;;  %v3926_v63 = vshll.u32 %v5520_v41, 16  ;;  %v3932_v2 = vshll.u32 %v8389_v30, 16  ;;  %v3936_v10 = vshrl.u32 %v8389_v30, 16  ;;  %v5523_v40 = vld [vmem:[%s6382_s26 + $0xc0] sm:$0xf]  ;;  %v3906_v4 = vrot.slane %v3905_v32, 4 }
 0x135   : > { %v8391_v59 = vadd.f32 %v1508_v33, %v1084_v24  ;;  %v1105_v13 = vadd.f32 %v5990_v21, %v9145_v22  ;;  %v6025_v57 = vpop.f32.mrf.mxu0  ;;  %6196 = vmatprep.mubr.msk.bf16.mxu1 %vm685_vm3, %v8243_v46  ;;  %v9147_v24 = vld [vmem:[#allocation18_spill] sm:$0xff]  ;;  %v3920_v43 = vrot.slane %v3918_v38, 5  ;;  %v4440_v17 = vrot.slane %v4438_v49, 4 }
 0x136   : > { %v1096_v45 = vpop.f32.mrf.mxu1  ;;  %v4441_v33 = vrot.slane %v8351_v1, 5  ;;  %v8419_v14 = vsel %vm6712_vm7, %v5590_v62, %v4438_v49  ;;  %v8422_v32 = vld [vmem:[%s6382_s26 + $0xc4] sm:$0xf]  ;;  %v9151_v1 = vcombine.low %v8201_v25, %v8205_v50  ;;  %v8434_v62 = vrot.slane %v3932_v2, 5 }
 0x137   : > { %v8403_v12 = vadd.f32 %v6024_v56, %v1105_v13  ;;  %v1097_v21 = vadd.f32 %v1096_v45, %v9147_v24  ;;  %v1524_v46 = vpop.f32.mrf.mxu0  ;;  %v9149_v56 = vld [vmem:[#allocation21_spill] sm:$0xff]  ;;  %v9150_v45 = vcombine.low %v8189_v47, %v8193_v7  ;;  %v3916_v24 = vrot.slane %v3915_v16, 4  ;;  %v9152_v16 = vld [vmem:[#allocation23_spill] sm:$0xff] }
 0x138   : > { %v5991_v22 = vpop.f32.mrf.mxu1  ;;  %v3947_v47 = vshrl.u32 %v5523_v40, 16  ;;  %v3950_v7 = vshll.u32 %v5523_v40, 16  ;;  %v3911_v25 = vsel %vm6426_vm4, %v3906_v4, %v8353_v23  ;;  %v8443_v50 = vsel %vm6712_vm7, %v4440_v17, %v4441_v33  ;;  %v5575_v40 = vld [vmem:[%s6382_s26 + $0xb4] sm:$0xe] }
 0x139   : > { %9146 = vst [vmem:[#allocation11_spill] sm:$0xff] %v8403_v12  ;;  %v8410_v35 = vadd.f32 %v1521_v18, %v1097_v21  ;;  %v1108_v41 = vadd.f32 %v5991_v22, %v9149_v56  ;;  %v6028_v13 = vpop.f32.mrf.mxu0  ;;  %6231 = vmatmul.mubr.msk.bf16.gmra.mxu0 %vm685_vm3, %v9150_v45  ;;  %v8429_v18 = vld [vmem:[%s6382_s26 + $0xbc] sm:$0x1]  ;;  %v3925_v21 = vrot.slane %v3923_v6, 4  ;;  %v3928_v22 = vrot.slane %v3926_v63, 5 }
 0x13a   : > { %v1099_v38 = vpop.f32.mrf.mxu1  ;;  %6234 = vmatprep.mubr.msk.bf16.mxu0 %vm685_vm3, %v9151_v1  ;;  %v3960_v6 = vshrl.u32 %v8422_v32, 16  ;;  %v3942_v23 = vshll.u32 %v8429_v18, 16  ;;  %v4445_v17 = vrot.slane %v8389_v30, 5  ;;  %v9153_v1 = vld [vmem:[#allocation25_spill] sm:$0xff] }
 0x13b   : > { %9148 = vst [vmem:[#allocation8_spill] sm:$0xff] %v8410_v35  ;;  %v8431_v56 = vadd.f32 %v6025_v57, %v1108_v41  ;;  %v1100_v45 = vadd.f32 %v1099_v38, %v9152_v16  ;;  %v1537_v49 = vpop.f32.mrf.mxu0  ;;  %v3938_v35 = vrot.slane %v3936_v10, 4  ;;  %v3956_v57 = vshll.u32 %v8422_v32, 16 }
 0x13c   : > { %v5994_v12 = vpop.f32.mrf.mxu1  ;;  %6197 = vmatmul.mubr.msk.bf16.gmra.mxu1 %vm685_vm3, %v8245_v61  ;;  %v3921_v61 = vsel %vm6426_vm4, %v3916_v24, %v3920_v43  ;;  %v3929_v33 = vor.u32 %v3928_v22, %v3925_v21  ;;  %v3949_v41 = vrot.slane %v3947_v47, 4  ;;  %v3952_v38 = vrot.slane %v3950_v7, 5 }
 0x13d   : > { %v8447_v63 = vadd.f32 %v1524_v46, %v1100_v45  ;;  %v1121_v2 = vadd.f32 %v5994_v12, %v8153_v28  ;;  %v6029_v10 = vpop.f32.mrf.mxu0  ;;  %6200 = vmatprep.mubr.msk.bf16.mxu1 %vm685_vm3, %v8251_v60  ;;  %v9154_v60 = vsel %vm6426_vm4, %v8341_v51, %v8305_v52  ;;  %v3939_v24 = vor.u32 %v3938_v35, %v8434_v62 }
 0x13e   : > { %v1112_v4 = vpop.f32.mrf.mxu1  ;;  %v8465_v43 = vcombine.low %v9154_v60, %v3897_v27  ;;  %v8468_v30 = vcombine.low %v3911_v25, %v3921_v61  ;;  %v8472_v22 = vrot.slane %v3956_v57, 5  ;;  %v3962_v47 = vrot.slane %v3960_v6, 4  ;;  %v5525_v27 = vld [vmem:[%s6382_s26 + $0xc8] sm:$0x1] }
 0x13f   : > { %v8457_v46 = vadd.f32 %v6028_v13, %v1121_v2  ;;  %v1113_v28 = vadd.f32 %v1112_v4, %v9153_v1  ;;  %v1540_v12 = vpop.f32.mrf.mxu0  ;;  %v5607_v13 = vcombine.low %v8419_v14, %v8443_v50  ;;  %v9155_v52 = vcombine.low %v8271_v3, %v8293_v20  ;;  %v5526_v14 = vld [vmem:[%s6382_s26 + $0xcc] sm:$0xf]  ;;  %v8493_v20 = vld [vmem:[%s6382_s26 + $0xd0] sm:$0xf]  ;;  %v5576_v4 = vld [vmem:[%s6382_s26 + $0xc0] sm:$0xe] }
 0x140   : > { %v5995_v21 = vpop.f32.mrf.mxu1  ;;  %v8481_v35 = vrot.slane %v3942_v23, 5  ;;  %v5591_v51 = vrot.slane %v5575_v40, 9  ;;  %v9156_v50 = vcombine.low %v8303_v53, %v8333_v39  ;;  %v4448_v57 = vrot.slane %v8429_v18, 5 }
 0x141   : > { %v8474_v7 = vadd.f32 %v1537_v49, %v1113_v28  ;;  %v1124_v16 = vadd.f32 %v5995_v21, %v8176_v19  ;;  %v6032_v45 = vpop.f32.mrf.mxu0  ;;  %6235 = vmatmul.mubr.msk.bf16.gmra.mxu0 %vm685_vm3, %v9155_v52  ;;  %v8489_v49 = vrot.slane %v3929_v33, 4  ;;  %v4447_v19 = vrot.slane %v4445_v17, 4 }
 0x142   : > { %v1115_v25 = vpop.f32.mrf.mxu1  ;;  %6238 = vmatprep.mubr.msk.bf16.mxu0 %vm685_vm3, %v9156_v50  ;;  %v3953_v3 = vor.u32 %v3952_v38, %v3949_v41  ;;  %v8498_v23 = vrot.slane %v3939_v24, 4  ;;  %v4452_v53 = vrot.slane %v8422_v32, 5  ;;  %v3963_v33 = vor.u32 %v3962_v47, %v8472_v22 }
 0x143   : > { %v8495_v6 = vadd.f32 %v6029_v10, %v1124_v16  ;;  %v1116_v2 = vadd.f32 %v1115_v25, %v8208_v26  ;;  %v1553_v61 = vpop.f32.mrf.mxu0  ;;  %v3966_v18 = vshll.u32 %v5525_v27, 16  ;;  %v3971_v40 = vshrl.u32 %v5526_v14, 16  ;;  %v9159_v10 = vld [vmem:[#allocation4_spill] sm:$0xff]  ;;  %v9160_v16 = vld [vmem:[#allocation3_spill] sm:$0xff] }
 0x144   : > { %v5998_v39 = vpop.f32.mrf.mxu1  ;;  %6201 = vmatmul.mubr.msk.bf16.gmra.mxu1 %vm685_vm3, %v8280_v48  ;;  %v3974_v41 = vshll.u32 %v5526_v14, 16  ;;  %v3980_v28 = vshll.u32 %v8493_v20, 16  ;;  %v3984_v32 = vshrl.u32 %v8493_v20, 16  ;;  %v4446_v48 = vsel %vm6712_vm7, %v5591_v51, %v4445_v17  ;;  %v9161_v17 = vld [vmem:[#allocation6_spill] sm:$0xff] }
 0x145   : > { %9157 = vst [vmem:[#allocation16_spill] sm:$0xff] %v8495_v6  ;;  %v8505_v38 = vadd.f32 %v1540_v12, %v1116_v2  ;;  %v1137_v1 = vadd.f32 %v5998_v39, %v9159_v10  ;;  %v6033_v26 = vpop.f32.mrf.mxu0  ;;  %6204 = vmatprep.mubr.msk.bf16.mxu1 %vm685_vm3, %v8359_v15  ;;  %v4449_v24 = vsel %vm6712_vm7, %v4447_v19, %v4448_v57  ;;  %v3954_v21 = vrot.slane %v3953_v3, 4 }
 0x146   : > { %v1128_v60 = vpop.f32.mrf.mxu1  ;;  %v5592_v12 = vrot.slane %v5576_v4, 9  ;;  %v4454_v25 = vrot.slane %v4452_v53, 4  ;;  %v4455_v15 = vrot.slane %v5525_v27, 5  ;;  %v3964_v2 = vrot.slane %v3963_v33, 4  ;;  %v5528_v33 = vld [vmem:[%s6382_s26 + $0xd4] sm:$0x1] }
 0x147   : > { %9158 = vst [vmem:[#allocation12_spill] sm:$0xff] %v8505_v38  ;;  %v8516_v47 = vadd.f32 %v6032_v45, %v1137_v1  ;;  %v1129_v52 = vadd.f32 %v1128_v60, %v9160_v16  ;;  %v1556_v14 = vpop.f32.mrf.mxu0  ;;  %v3968_v39 = vrot.slane %v3966_v18, 5  ;;  %v3973_v10 = vrot.slane %v3971_v40, 4  ;;  %v9163_v18 = vld [vmem:[#allocation5_spill] sm:$0xff] }
 0x148   : > { %v5999_v50 = vpop.f32.mrf.mxu1  ;;  %v3976_v38 = vrot.slane %v3974_v41, 5  ;;  %v9162_v45 = vcombine.low %v8373_v58, %v8377_v36  ;;  %v8526_v57 = vrot.slane %v3980_v28, 5  ;;  %v3986_v27 = vrot.slane %v3984_v32, 4 }
 0x149   : > { %v8519_v6 = vadd.f32 %v1553_v61, %v1129_v52  ;;  %v1140_v51 = vadd.f32 %v5999_v50, %v9161_v17  ;;  %v6036_v19 = vpop.f32.mrf.mxu0  ;;  %v3935_v61 = vsel %vm6426_vm4, %v8489_v49, %v8434_v62  ;;  %v3945_v4 = vsel %vm6426_vm4, %v8498_v23, %v8481_v35  ;;  %v5577_v62 = vld [vmem:[%s6382_s26 + $0xcc] sm:$0xe] }
 0x14a   : > { %6239 = vmatmul.mubr.msk.bf16.gmra.mxu0 %vm685_vm3, %v9162_v45  ;;  %v1131_v3 = vpop.f32.mrf.mxu1  ;;  %v4459_v58 = vrot.slane %v8493_v20, 5  ;;  %v4456_v1 = vsel %vm6712_vm7, %v4454_v25, %v4455_v15  ;;  %v5608_v35 = vcombine.low %v4446_v48, %v4449_v24  ;;  %v3959_v20 = vsel %vm6426_vm4, %v3954_v21, %v8472_v22  ;;  %v9165_v25 = vld [vmem:[#allocation10_spill] sm:$0xff] }
 0x14b   : > { %6242 = vmatprep.mubr.msk.bf16.mxu0 %vm685_vm3, %v5607_v13  ;;  %v8539_v36 = vadd.f32 %v6033_v26, %v1140_v51  ;;  %v1132_v40 = vadd.f32 %v1131_v3, %v9163_v18  ;;  %v1569_v41 = vpop.f32.mrf.mxu0  ;;  %v4453_v13 = vsel %vm6712_vm7, %v5592_v12, %v4452_v53  ;;  %v3969_v23 = vsel %vm6426_vm4, %v3964_v2, %v3968_v39  ;;  %v9164_v53 = vld [vmem:[#allocation7_spill] sm:$0xff] }
 0x14c   : > { %v6002_v49 = vpop.f32.mrf.mxu1  ;;  %6205 = vmatmul.mubr.msk.bf16.gmra.mxu1 %vm685_vm3, %v8465_v43  ;;  %v3977_v26 = vor.u32 %v3976_v38, %v3973_v10  ;;  %v3987_v12 = vor.u32 %v3986_v27, %v8526_v57  ;;  %v3990_v43 = vshll.u32 %v5528_v33, 16  ;;  %v5609_v24 = vcombine.low %v4453_v13, %v4456_v1 }
 0x14d   : > { %v8554_v28 = vadd.f32 %v1556_v14, %v1132_v40  ;;  %v1153_v32 = vadd.f32 %v6002_v49, %v9164_v53  ;;  %v6037_v60 = vpop.f32.mrf.mxu0  ;;  %6208 = vmatprep.mubr.msk.bf16.mxu1 %vm685_vm3, %v8468_v30  ;;  %v5593_v16 = vrot.slane %v5577_v62, 9  ;;  %v4461_v52 = vrot.slane %v4459_v58, 4  ;;  %v9166_v30 = vld [vmem:[#allocation13_spill] sm:$0xff] }
 0x14e   : > { %v1144_v48 = vpop.f32.mrf.mxu1  ;;  %v4462_v22 = vrot.slane %v5528_v33, 5  ;;  %v5543_v50 = vcombine.low %v3935_v61, %v3945_v4  ;;  %v5544_v2 = vcombine.low %v3959_v20, %v3969_v23  ;;  %v3978_v39 = vrot.slane %v3977_v26, 4  ;;  %v9167_v33 = vld [vmem:[#allocation15_spill] sm:$0xff]  ;;  %v9168_v62 = vld [vmem:[#allocation17_spill] sm:$0xff]  ;;  %v9169_v26 = vld [vmem:[#allocation20_spill] sm:$0xff] }
 0x14f   : > { %v8560_v21 = vadd.f32 %v6036_v19, %v1153_v32  ;;  %v1145_v38 = vadd.f32 %v1144_v48, %v9165_v25  ;;  %v1572_v14 = vpop.f32.mrf.mxu0  ;;  %v3988_v45 = vrot.slane %v3987_v12, 4  ;;  %v3992_v27 = vrot.slane %v3990_v43, 5  ;;  %v9170_v43 = vld [vmem:[#allocation22_spill] sm:$0xff] }
 0x150   : > { %v6003_v15 = vpop.f32.mrf.mxu1  ;;  %v4460_v19 = vsel %vm6712_vm7, %v5593_v16, %v4459_v58  ;;  %v4463_v61 = vsel %vm6712_vm7, %v4461_v52, %v4462_v22  ;;  %v3983_v13 = vsel %vm6426_vm4, %v3978_v39, %v8526_v57 }
 0x151   : > { %v8563_v10 = vadd.f32 %v1569_v41, %v1145_v38  ;;  %v1156_v17 = vadd.f32 %v6003_v15, %v9166_v30  ;;  %v6040_v51 = vpop.f32.mrf.mxu0  ;;  %v3993_v0 = vsel %vm6426_vm4, %v3988_v45, %v3992_v27 }
 0x152   : > { %6243 = vmatmul.mubr.msk.bf16.gmra.mxu0 %vm685_vm3, %v5608_v35  ;;  %v1147_v3 = vpop.f32.mrf.mxu1  ;;  %v5610_v35 = vcombine.low %v4460_v19, %v4463_v61  ;;  %v5545_v12 = vcombine.low %v3983_v13, %v3993_v0 }
 0x153   : > { %6246 = vmatprep.mubr.msk.bf16.mxu0 %vm685_vm3, %v5609_v24  ;;  %v8572_v4 = vadd.f32 %v6037_v60, %v1156_v17  ;;  %v1148_v18 = vadd.f32 %v1147_v3, %v9167_v33  ;;  %v1585_v40 = vpop.f32.mrf.mxu0 }
 0x154   : > { %v6006_v41 = vpop.f32.mrf.mxu1  ;;  %6209 = vmatmul.mubr.msk.bf16.gmra.mxu1 %vm685_vm3, %v5543_v50 }
 0x155   : > { %v8579_v1 = vadd.f32 %v1572_v14, %v1148_v18  ;;  %v1169_v49 = vadd.f32 %v6006_v41, %v9168_v62  ;;  %v6041_v58 = vpop.f32.mrf.mxu0  ;;  %6212 = vmatprep.mubr.msk.bf16.mxu1 %vm685_vm3, %v5544_v2 }
 0x156   : > { %v1160_v20 = vpop.f32.mrf.mxu1 }
 0x157   : > { %v8585_v23 = vadd.f32 %v6040_v51, %v1169_v49  ;;  %v1161_v53 = vadd.f32 %v1160_v20, %v9169_v26  ;;  %v1588_v32 = vpop.f32.mrf.mxu0 }
 0x158   : > { %v6007_v60 = vpop.f32.mrf.mxu1 }
 0x159   : > { %v8588_v57 = vadd.f32 %v1585_v40, %v1161_v53  ;;  %v1172_v48 = vadd.f32 %v6007_v60, %v9170_v43  ;;  %v6044_v24 = vpop.f32.mrf.mxu0 }
 0x15a   : > { %6247 = vmatmul.mubr.msk.bf16.gmra.mxu0 %vm685_vm3, %v5610_v35  ;;  %v1163_v16 = vpop.f32.mrf.mxu1 }
 0x15b   : > { %v8592_v52 = vadd.f32 %v6041_v58, %v1172_v48  ;;  %v1164_v22 = vadd.f32 %v1163_v16, %v9171_v31  ;;  %v1601_v25 = vpop.f32.mrf.mxu0 }
 0x15c   : > { %v6010_v38 = vpop.f32.mrf.mxu1  ;;  %6213 = vmatmul.mubr.msk.bf16.gmra.mxu1 %vm685_vm3, %v5545_v12 }
 0x15d   : > { %v8596_v14 = vadd.f32 %v1588_v32, %v1164_v22  ;;  %v1185_v15 = vadd.f32 %v6010_v38, %v8168_v42  ;;  %v6045_v50 = vpop.f32.mrf.mxu0 }
 0x15e   : > { %v1176_v2 = vpop.f32.mrf.mxu1 }
 0x15f   : > { %v8599_v39 = vadd.f32 %v6044_v24, %v1185_v15  ;;  %v1177_v30 = vadd.f32 %v1176_v2, %v8195_v44  ;;  %v1604_v17 = vpop.f32.mrf.mxu0 }
 0x160   : > { %v6011_v51 = vpop.f32.mrf.mxu1 }
 0x161   : > { %v8602_v45 = vadd.f32 %v1601_v25, %v1177_v30  ;;  %v1188_v27 = vadd.f32 %v6011_v51, %v8210_v8  ;;  %v6084_v3 = vpop.f32.mrf.mxu0  ;;  %v9172_v30 = vld [vmem:[#allocation11_spill] sm:$0xff] }
 0x162   : > { %v1179_v19 = vpop.f32.mrf.mxu1 }
 0x163   : > { %v8605_v61 = vadd.f32 %v6045_v50, %v1188_v27  ;;  %v1180_v33 = vadd.f32 %v1179_v19, %v8232_v55  ;;  %v2574_v18 = vpop.f32.mrf.mxu0 }
 0x164   : > { %v6050_v42 = vpop.f32.mrf.mxu1 }
 0x165   : > { %v8608_v40 = vadd.f32 %v1604_v17, %v1180_v33  ;;  %v1977_v41 = vadd.f32 %v6050_v42, %v8277_v5  ;;  %v6085_v13 = vpop.f32.mrf.mxu0 }
 0x166   : > { %v1848_v44 = vpop.f32.mrf.mxu1 }
 0x167   : > { %v8611_v62 = vadd.f32 %v6084_v3, %v1977_v41  ;;  %v1975_v49 = vadd.f32 %v1848_v44, %v8284_v37  ;;  %v2577_v58 = vpop.f32.mrf.mxu0  ;;  %v9173_v3 = vld [vmem:[#allocation8_spill] sm:$0xff] }
 0x168   : > { %v6051_v8 = vpop.f32.mrf.mxu1 }
 0x169   : > { %v8614_v0 = vadd.f32 %v2574_v18, %v1975_v49  ;;  %v1978_v35 = vadd.f32 %v6051_v8, %v8310_v54  ;;  %v6088_v20 = vpop.f32.mrf.mxu0 }
 0x16a   : > { %v1851_v55 = vpop.f32.mrf.mxu1 }
 0x16b   : > { %v8617_v26 = vadd.f32 %v6085_v13, %v1978_v35  ;;  %v1976_v53 = vadd.f32 %v1851_v55, %v8324_v11  ;;  %v2590_v32 = vpop.f32.mrf.mxu0 }
 0x16c   : > { %v6054_v5 = vpop.f32.mrf.mxu1 }
 0x16d   : > { %v8620_v60 = vadd.f32 %v2577_v58, %v1976_v53  ;;  %v1981_v12 = vadd.f32 %v6054_v5, %v8336_v29  ;;  %v6089_v43 = vpop.f32.mrf.mxu0 }
 0x16e   : > { %v1864_v37 = vpop.f32.mrf.mxu1 }
 0x16f   : > { %v8623_v48 = vadd.f32 %v6088_v20, %v1981_v12  ;;  %v1979_v24 = vadd.f32 %v1864_v37, %v8343_v9  ;;  %v2593_v16 = vpop.f32.mrf.mxu0 }
 0x170   : > { %v6055_v54 = vpop.f32.mrf.mxu1 }
 0x171   : > { %v8626_v31 = vadd.f32 %v2590_v32, %v1979_v24  ;;  %v1982_v22 = vadd.f32 %v6055_v54, %v8368_v34  ;;  %v6092_v25 = vpop.f32.mrf.mxu0  ;;  %v9175_v54 = vld [vmem:[#allocation12_spill] sm:$0xff] }
 0x172   : > { %v1867_v11 = vpop.f32.mrf.mxu1 }
 0x173   : > { %v8629_v38 = vadd.f32 %v6089_v43, %v1982_v22  ;;  %v1980_v15 = vadd.f32 %v1867_v11, %v8391_v59  ;;  %v2606_v50 = vpop.f32.mrf.mxu0  ;;  %v9174_v43 = vld [vmem:[#allocation16_spill] sm:$0xff] }
 0x174   : > { %v6058_v29 = vpop.f32.mrf.mxu1 }
 0x175   : > { %v8632_v2 = vadd.f32 %v2593_v16, %v1980_v15  ;;  %v1985_v17 = vadd.f32 %v6058_v29, %v9172_v30  ;;  %v6093_v51 = vpop.f32.mrf.mxu0 }
 0x176   : > { %v1880_v9 = vpop.f32.mrf.mxu1 }
 0x177   : > { %v8635_v27 = vadd.f32 %v6092_v25, %v1985_v17  ;;  %v1983_v19 = vadd.f32 %v1880_v9, %v9173_v3  ;;  %v2609_v33 = vpop.f32.mrf.mxu0 }
 0x178   : > { %v6059_v34 = vpop.f32.mrf.mxu1 }
 0x179   : > { %v8638_v18 = vadd.f32 %v2606_v50, %v1983_v19  ;;  %v1986_v42 = vadd.f32 %v6059_v34, %v8431_v56  ;;  %v6096_v41 = vpop.f32.mrf.mxu0 }
 0x17a   : > { %v1883_v59 = vpop.f32.mrf.mxu1 }
 0x17b   : > { %v8641_v13 = vadd.f32 %v6093_v51, %v1986_v42  ;;  %v1984_v44 = vadd.f32 %v1883_v59, %v8447_v63  ;;  %v2622_v49 = vpop.f32.mrf.mxu0 }
 0x17c   : > { %v6062_v58 = vpop.f32.mrf.mxu1 }
 0x17d   : > { %v8644_v8 = vadd.f32 %v2609_v33, %v1984_v44  ;;  %v1989_v35 = vadd.f32 %v6062_v58, %v8457_v46  ;;  %v6097_v20 = vpop.f32.mrf.mxu0 }
 0x17e   : > { %v1896_v55 = vpop.f32.mrf.mxu1 }
 0x17f   : > { %v8647_v53 = vadd.f32 %v6096_v41, %v1989_v35  ;;  %v1987_v32 = vadd.f32 %v1896_v55, %v8474_v7  ;;  %v2625_v5 = vpop.f32.mrf.mxu0 }
 0x180   : > { %v6063_v56 = vpop.f32.mrf.mxu1 }
 0x181   : > { %v8650_v12 = vadd.f32 %v2622_v49, %v1987_v32  ;;  %v1990_v37 = vadd.f32 %v6063_v56, %v9174_v43  ;;  %v6100_v24 = vpop.f32.mrf.mxu0 }
 0x182   : > { %v1899_v63 = vpop.f32.mrf.mxu1 }
 0x183   : > { %v8653_v16 = vadd.f32 %v6097_v20, %v1990_v37  ;;  %v1988_v22 = vadd.f32 %v1899_v63, %v9175_v54  ;;  %v2638_v25 = vpop.f32.mrf.mxu0 }
 0x184   : > { %v6066_v46 = vpop.f32.mrf.mxu1 }
 0x185   : > { %v8656_v11 = vadd.f32 %v2625_v5, %v1988_v22  ;;  %v1993_v15 = vadd.f32 %v6066_v46, %v8516_v47  ;;  %v6101_v50 = vpop.f32.mrf.mxu0 }
 0x186   : > { %v1912_v7 = vpop.f32.mrf.mxu1 }
 0x187   : > { %v8659_v29 = vadd.f32 %v6100_v24, %v1993_v15  ;;  %v1991_v30 = vadd.f32 %v1912_v7, %v8519_v6  ;;  %v2641_v17 = vpop.f32.mrf.mxu0 }
 0x188   : > { %v6067_v51 = vpop.f32.mrf.mxu1 }
 0x189   : > { %v8662_v9 = vadd.f32 %v2638_v25, %v1991_v30  ;;  %v1994_v3 = vadd.f32 %v6067_v51, %v8539_v36  ;;  %v6104_v19 = vpop.f32.mrf.mxu0 }
 0x18a   : > { %v1915_v33 = vpop.f32.mrf.mxu1 }
 0x18b   : > { %v8665_v34 = vadd.f32 %v6101_v50, %v1994_v3  ;;  %v1992_v42 = vadd.f32 %v1915_v33, %v8554_v28  ;;  %v2654_v41 = vpop.f32.mrf.mxu0 }
 0x18c   : > { %v6070_v47 = vpop.f32.mrf.mxu1 }
 0x18d   : > { %v8668_v59 = vadd.f32 %v2641_v17, %v1992_v42  ;;  %v1997_v44 = vadd.f32 %v6070_v47, %v8560_v21  ;;  %v6105_v49 = vpop.f32.mrf.mxu0 }
 0x18e   : > { %v1928_v6 = vpop.f32.mrf.mxu1 }
 0x18f   : > { %v8671_v58 = vadd.f32 %v6104_v19, %v1997_v44  ;;  %v1995_v35 = vadd.f32 %v1928_v6, %v8563_v10  ;;  %v2657_v20 = vpop.f32.mrf.mxu0 }
 0x190   : > { %v6071_v36 = vpop.f32.mrf.mxu1 }
 0x191   : > { %v8674_v55 = vadd.f32 %v2654_v41, %v1995_v35  ;;  %v1998_v32 = vadd.f32 %v6071_v36, %v8572_v4  ;;  %v6108_v5 = vpop.f32.mrf.mxu0 }
 0x192   : > { %v1931_v28 = vpop.f32.mrf.mxu1 }
 0x193   : > { %v8677_v56 = vadd.f32 %v6105_v49, %v1998_v32  ;;  %v1996_v43 = vadd.f32 %v1931_v28, %v8579_v1  ;;  %v2670_v37 = vpop.f32.mrf.mxu0 }
 0x194   : > { %v6074_v21 = vpop.f32.mrf.mxu1 }
 0x195   : > { %v8680_v24 = vadd.f32 %v2657_v20, %v1996_v43  ;;  %v2001_v63 = vadd.f32 %v6074_v21, %v8585_v23  ;;  %v6109_v54 = vpop.f32.mrf.mxu0 }
 0x196   : > { %v1944_v10 = vpop.f32.mrf.mxu1 }
 0x197   : > { %v8683_v22 = vadd.f32 %v6108_v5, %v2001_v63  ;;  %v1999_v25 = vadd.f32 %v1944_v10, %v8588_v57  ;;  %v2673_v46 = vpop.f32.mrf.mxu0 }
 0x198   : > { %v6075_v4 = vpop.f32.mrf.mxu1 }
 0x199   : > { %v8686_v15 = vadd.f32 %v2670_v37, %v1999_v25  ;;  %v2002_v50 = vadd.f32 %v6075_v4, %v8592_v52  ;;  %v6112_v7 = vpop.f32.mrf.mxu0 }
 0x19a   : > { %v1947_v1 = vpop.f32.mrf.mxu1 }
 0x19b   : > { %v8689_v30 = vadd.f32 %v6109_v54, %v2002_v50  ;;  %v2000_v17 = vadd.f32 %v1947_v1, %v8596_v14  ;;  %v2686_v51 = vpop.f32.mrf.mxu0 }
 0x19c   : > { %v6078_v23 = vpop.f32.mrf.mxu1 }
 0x19d   : > { %9176 = vst [vmem:[#allocation2_spill] sm:$0xff] %v8689_v30  ;;  %v8692_v3 = vadd.f32 %v2673_v46, %v2000_v17  ;;  %v2005_v19 = vadd.f32 %v6078_v23, %v8599_v39  ;;  %v6113_v33 = vpop.f32.mrf.mxu0 }
 0x19e   : > { %v1960_v57 = vpop.f32.mrf.mxu1 }
 0x19f   : > { %9177 = vst [vmem:[#allocation14_spill] sm:$0xff] %v8692_v3  ;;  %v8695_v42 = vadd.f32 %v6112_v7, %v2005_v19  ;;  %v2003_v41 = vadd.f32 %v1960_v57, %v8602_v45  ;;  %v2689_v47 = vpop.f32.mrf.mxu0 }
 0x1a0   : > { %v6079_v52 = vpop.f32.mrf.mxu1 }
 0x1a1   : > { %v8698_v44 = vadd.f32 %v2686_v51, %v2003_v41  ;;  %v2006_v49 = vadd.f32 %v6079_v52, %v8605_v61  ;;  %v6152_v6 = vpop.f32.mrf.mxu0 }
 0x1a2   : > { %v1963_v14 = vpop.f32.mrf.mxu1 }
 0x1a3   : > { %v8701_v35 = vadd.f32 %v6113_v33, %v2006_v49  ;;  %v2004_v20 = vadd.f32 %v1963_v14, %v8608_v40  ;;  %v3403_v36 = vpop.f32.mrf.mxu0 }
 0x1a4   : > { %v6118_v39 = vpop.f32.mrf.mxu1 }
 0x1a5   : > { %9178 = vst [vmem:[#allocation19_spill] sm:$0xff] %v8701_v35  ;;  %v8704_v32 = vadd.f32 %v2689_v47, %v2004_v20  ;;  %v3173_v5 = vadd.f32 %v6118_v39, %v8611_v62  ;;  %v8707_v28 = vpop.f32.mrf.mxu0 }
 0x1a6   : > { %v3044_v45 = vpop.f32.mrf.mxu1 }
 0x1a7   : > { %9179 = vst [vmem:[#allocation9_spill] sm:$0xff] %v8704_v32  ;;  %v8709_v43 = vadd.f32 %v6152_v6, %v3173_v5  ;;  %v3171_v37 = vadd.f32 %v3044_v45, %v8614_v0  ;;  %v8712_v61 = vpop.f32.mrf.mxu0 }
 0x1a8   : > { %v8714_v21 = vpop.f32.mrf.mxu1 }
 0x1a9   : > { %v8716_v63 = vadd.f32 %v3403_v36, %v3171_v37  ;;  %v6156_v40 = vpop.f32.mrf.mxu0 }
 0x1aa   : > { %v8718_v54 = vpop.f32.mrf.mxu1 }
 0x1ab   : > { %v3419_v10 = vpop.f32.mrf.mxu0 }
 0x1ac   : > { %v6122_v25 = vpop.f32.mrf.mxu1 }
 0x1ad   : > { %v3177_v62 = vadd.f32 %v6122_v25, %v8623_v48  ;;  %v8721_v46 = vpop.f32.mrf.mxu0 }
 0x1ae   : > { %v3060_v4 = vpop.f32.mrf.mxu1 }
 0x1af   : > { %v8723_v50 = vadd.f32 %v6156_v40, %v3177_v62  ;;  %v3175_v0 = vadd.f32 %v3060_v4, %v8626_v31  ;;  %v8726_v7 = vpop.f32.mrf.mxu0 }
 0x1b0   : > { %v8728_v1 = vpop.f32.mrf.mxu1 }
 0x1b1   : > { %v8730_v17 = vadd.f32 %v3419_v10, %v3175_v0  ;;  %v6160_v51 = vpop.f32.mrf.mxu0 }
 0x1b2   : > { %v8732_v23 = vpop.f32.mrf.mxu1 }
 0x1b3   : > { %v3435_v19 = vpop.f32.mrf.mxu0 }
 0x1b4   : > { %v6126_v33 = vpop.f32.mrf.mxu1 }
 0x1b5   : > { %v3181_v48 = vadd.f32 %v6126_v33, %v8635_v27  ;;  %v8735_v57 = vpop.f32.mrf.mxu0 }
 0x1b6   : > { %v3076_v41 = vpop.f32.mrf.mxu1 }
 0x1b7   : > { %v8737_v47 = vadd.f32 %v6160_v51, %v3181_v48  ;;  %v3179_v31 = vadd.f32 %v3076_v41, %v8638_v18  ;;  %v8740_v52 = vpop.f32.mrf.mxu0 }
 0x1b8   : > { %v8742_v49 = vpop.f32.mrf.mxu1 }
 0x1b9   : > { %v8744_v6 = vadd.f32 %v3435_v19, %v3179_v31  ;;  %v6164_v14 = vpop.f32.mrf.mxu0 }
 0x1ba   : > { %v8746_v20 = vpop.f32.mrf.mxu1 }
 0x1bb   : > { %v3451_v36 = vpop.f32.mrf.mxu0 }
 0x1bc   : > { %v6130_v39 = vpop.f32.mrf.mxu1 }
 0x1bd   : > { %v3185_v27 = vadd.f32 %v6130_v39, %v8647_v53  ;;  %v8749_v5 = vpop.f32.mrf.mxu0 }
 0x1be   : > { %v3092_v45 = vpop.f32.mrf.mxu1 }
 0x1bf   : > { %v8751_v37 = vadd.f32 %v6164_v14, %v3185_v27  ;;  %v3183_v18 = vadd.f32 %v3092_v45, %v8650_v12  ;;  %v8754_v40 = vpop.f32.mrf.mxu0 }
 0x1c0   : > { %v8756_v10 = vpop.f32.mrf.mxu1 }
 0x1c1   : > { %v8758_v25 = vadd.f32 %v3451_v36, %v3183_v18  ;;  %v6168_v62 = vpop.f32.mrf.mxu0 }
 0x1c2   : > { %v8760_v4 = vpop.f32.mrf.mxu1 }
 0x1c3   : > { %v3467_v0 = vpop.f32.mrf.mxu0 }
 0x1c4   : > { %v6134_v51 = vpop.f32.mrf.mxu1 }
 0x1c5   : > { %v3189_v53 = vadd.f32 %v6134_v51, %v8659_v29  ;;  %v8763_v19 = vpop.f32.mrf.mxu0 }
 0x1c6   : > { %v3108_v33 = vpop.f32.mrf.mxu1 }
 0x1c7   : > { %v8765_v48 = vadd.f32 %v6168_v62, %v3189_v53  ;;  %v3187_v12 = vadd.f32 %v3108_v33, %v8662_v9  ;;  %v8768_v41 = vpop.f32.mrf.mxu0 }
 0x1c8   : > { %v8770_v31 = vpop.f32.mrf.mxu1 }
 0x1c9   : > { %v8772_v14 = vadd.f32 %v3467_v0, %v3187_v12  ;;  %v6172_v36 = vpop.f32.mrf.mxu0 }
 0x1ca   : > { %v8774_v39 = vpop.f32.mrf.mxu1 }
 0x1cb   : > { %v3483_v27 = vpop.f32.mrf.mxu0 }
 0x1cc   : > { %v6138_v45 = vpop.f32.mrf.mxu1 }
 0x1cd   : > { %v3193_v29 = vadd.f32 %v6138_v45, %v8671_v58  ;;  %v8777_v18 = vpop.f32.mrf.mxu0 }
 0x1ce   : > { %9180 = vst [vmem:[#allocation18_spill] sm:$0xff] %v8777_v18  ;;  %v3124_v51 = vpop.f32.mrf.mxu1 }
 0x1cf   : > { %v8779_v62 = vadd.f32 %v6172_v36, %v3193_v29  ;;  %v3191_v9 = vadd.f32 %v3124_v51, %v8674_v55  ;;  %v8782_v53 = vpop.f32.mrf.mxu0 }
 0x1d0   : > { %9181 = vst [vmem:[#allocation21_spill] sm:$0xff] %v8782_v53  ;;  %v8784_v33 = vpop.f32.mrf.mxu1 }
 0x1d1   : > { %v8786_v0 = vadd.f32 %v3483_v27, %v3191_v9  ;;  %v6176_v12 = vpop.f32.mrf.mxu0 }
 0x1d2   : > { %v8788_v32 = vpop.f32.mrf.mxu1 }
 0x1d3   : > { %9182 = vst [vmem:[#allocation23_spill] sm:$0xff] %v8786_v0  ;;  %v3499_v35 = vpop.f32.mrf.mxu0 }
 0x1d4   : > { %v6142_v3 = vpop.f32.mrf.mxu1 }
 0x1d5   : > { %v3197_v58 = vadd.f32 %v6142_v3, %v8683_v22  ;;  %v8791_v45 = vpop.f32.mrf.mxu0 }
 0x1d6   : > { %9183 = vst [vmem:[#allocation25_spill] sm:$0xff] %v8791_v45  ;;  %v3140_v30 = vpop.f32.mrf.mxu1 }
 0x1d7   : > { %v8793_v36 = vadd.f32 %v6176_v12, %v3197_v58  ;;  %v3195_v55 = vadd.f32 %v3140_v30, %v8686_v15  ;;  %v8796_v29 = vpop.f32.mrf.mxu0 }
 0x1d8   : > { %9184 = vst [vmem:[#allocation4_spill] sm:$0xff] %v8796_v29  ;;  %v8798_v51 = vpop.f32.mrf.mxu1 }
 0x1d9   : > { %v8800_v27 = vadd.f32 %v3499_v35, %v3195_v55  ;;  %v6180_v9 = vpop.f32.mrf.mxu0 }
 0x1da   : > { %v8802_v53 = vpop.f32.mrf.mxu1 }
 0x1db   : > { %9185 = vst [vmem:[#allocation3_spill] sm:$0xff] %v8800_v27  ;;  %v3515_v0 = vpop.f32.mrf.mxu0  ;;  %v3174_v27 = vadd.f32 %v8714_v21, %v8617_v26 }
 0x1dc   : > { %v6146_v18 = vpop.f32.mrf.mxu1 }
 0x1dd   : > { %v3201_v22 = vadd.f32 %v6146_v18, %v8695_v42  ;;  %v8805_v3 = vpop.f32.mrf.mxu0 }
 0x1de   : > { %9186 = vst [vmem:[#allocation6_spill] sm:$0xff] %v8805_v3  ;;  %v3156_v45 = vpop.f32.mrf.mxu1 }
 0x1df   : > { %v8807_v12 = vadd.f32 %v6180_v9, %v3201_v22  ;;  %v3199_v15 = vadd.f32 %v3156_v45, %v8698_v44  ;;  %v8810_v30 = vpop.f32.mrf.mxu0  ;;  %v3172_v9 = vadd.f32 %v8718_v54, %v8620_v60  ;;  %v8826_v45 = vld [vmem:[%s8983_s2] ss:$0 sm:$0xff] }
 0x1e0   : > { %9188 = vst [vmem:[#allocation7_spill] sm:$0xff] %v8810_v30  ;;  %v8812_v58 = vpop.f32.mrf.mxu1 }
 0x1e1   : > { %9187 = vst [vmem:[#allocation5_spill] sm:$0xff] %v8807_v12  ;;  %9189 = vst [vmem:[#allocation10_spill] sm:$0xff] %v8812_v58  ;;  %v8814_v35 = vadd.f32 %v3515_v0, %v3199_v15  ;;  %v6220_v55 = vpop.f32.mrf.mxu0  ;;  %v3533_v15 = vadd.f32 %v8707_v28, %v3174_v27  ;;  %v3531_v3 = vadd.f32 %v8712_v61, %v3172_v9 }
 0x1e2   : > { %v8816_v29 = vpop.f32.mrf.mxu1  ;;  %v3178_v28 = vadd.f32 %v8728_v1, %v8629_v38 }
 0x1e3   : > { %9190 = vst [vmem:[#allocation13_spill] sm:$0xff] %v8814_v35  ;;  %9191 = vst [vmem:[#allocation15_spill] sm:$0xff] %v8816_v29  ;;  %v4599_v42 = vpop.f32.mrf.mxu0 }
 0x1e4   : > { %v6186_v18 = vpop.f32.mrf.mxu1  ;;  %v3537_v1 = vadd.f32 %v8721_v46, %v3178_v28  ;;  %v3182_v46 = vadd.f32 %v8742_v49, %v8641_v13 }
 0x1e5   : > { %v4258_v22 = vadd.f32 %v6186_v18, %v8709_v43  ;;  %v6221_v44 = vpop.f32.mrf.mxu0  ;;  %v8835_v43 = vld [vmem:[%s8984_s3] ss:$0 sm:$0xff] }
 0x1e6   : > { %v4129_v0 = vpop.f32.mrf.mxu1 }
 0x1e7   : > { %v4728_v30 = vadd.f32 %v6220_v55, %v4258_v22  ;;  %v4256_v35 = vadd.f32 %v4129_v0, %v8716_v63  ;;  %v4602_v26 = vpop.f32.mrf.mxu0 }
 0x1e8   : > { %v6187_v21 = vpop.f32.mrf.mxu1 }
 0x1e9   : > { %v4767_v60 = vmul.f32 %v8826_v45, %v4728_v30  ;;  %v4726_v54 = vadd.f32 %v4599_v42, %v4256_v35  ;;  %v4259_v18 = vadd.f32 %v6187_v21, %v3533_v15  ;;  %v6224_v29 = vpop.f32.mrf.mxu0  ;;  %v3176_v35 = vadd.f32 %v8732_v23, %v8632_v2 }
 0x1ea   : > { %v4132_v12 = vpop.f32.mrf.mxu1 }
 0x1eb   : > { %v4765_v63 = vmul.f32 %v8826_v45, %v4726_v54  ;;  %v4729_v27 = vadd.f32 %v6221_v44, %v4259_v18  ;;  %v4257_v55 = vadd.f32 %v4132_v12, %v3531_v3  ;;  %v4615_v61 = vpop.f32.mrf.mxu0  ;;  %v4806_v30 = vadd.f32 %v8835_v43, %v4767_v60 }
 0x1ec   : > { %v6190_v9 = vpop.f32.mrf.mxu1 }
 0x1ed   : > { %v4768_v22 = vmul.f32 %v8826_v45, %v4729_v27  ;;  %v4727_v0 = vadd.f32 %v4602_v26, %v4257_v55  ;;  %v6225_v58 = vpop.f32.mrf.mxu0  ;;  %v4804_v42 = vadd.f32 %v8835_v43, %v4765_v63  ;;  %v4262_v15 = vadd.f32 %v6190_v9, %v8723_v50 }
 0x1ee   : > { %v4145_v38 = vpop.f32.mrf.mxu1  ;;  %v4838_v26 = vmax.f32 %v4806_v30, 0.0  ;;  %v3535_v27 = vadd.f32 %v8726_v7, %v3176_v35 }
 0x1ef   : > { %v4807_v3 = vadd.f32 %v8835_v43, %v4768_v22  ;;  %v4766_v12 = vmul.f32 %v8826_v45, %v4727_v0  ;;  %v4260_v44 = vadd.f32 %v4145_v38, %v8730_v17  ;;  %v4618_v21 = vpop.f32.mrf.mxu0  ;;  %v4732_v60 = vadd.f32 %v6224_v29, %v4262_v15 }
 0x1f0   : > { %v6191_v54 = vpop.f32.mrf.mxu1  ;;  %v4836_v28 = vmax.f32 %v4804_v42, 0.0  ;;  %v3541_v38 = vadd.f32 %v8735_v57, %v3182_v46 }
 0x1f1   : > { %v4839_v18 = vmax.f32 %v4807_v3, 0.0  ;;  %v4805_v2 = vadd.f32 %v8835_v43, %v4766_v12  ;;  %v4730_v23 = vadd.f32 %v4615_v61, %v4260_v44  ;;  %v4263_v63 = vadd.f32 %v6191_v54, %v3537_v1  ;;  %v6228_v50 = vpop.f32.mrf.mxu0 }
 0x1f2   : > { %v4771_v17 = vmul.f32 %v8826_v45, %v4732_v60  ;;  %v4148_v29 = vpop.f32.mrf.mxu1  ;;  %v3180_v1 = vadd.f32 %v8746_v20, %v8644_v8 }
 0x1f3   : > { %v5704_v55 = vpack.c.bf16 %v4839_v18, %v4838_v26  ;;  %v4837_v30 = vmax.f32 %v4805_v2, 0.0  ;;  %v4769_v61 = vmul.f32 %v8826_v45, %v4730_v23  ;;  %v4733_v9 = vadd.f32 %v6225_v58, %v4263_v63  ;;  %v4631_v7 = vpop.f32.mrf.mxu0 }
 0x1f4   : > { %v4810_v22 = vadd.f32 %v8835_v43, %v4771_v17  ;;  %v4261_v13 = vadd.f32 %v4148_v29, %v3535_v27  ;;  %v6194_v49 = vpop.f32.mrf.mxu1 }
 0x1f5   : > { %5776 = vst [vmem:[%s8858_s21 + $0x8] sm:$0xff] %v5704_v55   ;;  %v5699_v0 = vpack.c.bf16 %v4837_v30, %v4836_v28  ;;  %v4772_v35 = vmul.f32 %v8826_v45, %v4733_v9  ;;  %v4266_v42 = vadd.f32 %v6194_v49, %v8737_v47  ;;  %v6229_v15 = vpop.f32.mrf.mxu0  ;;  %v4808_v58 = vadd.f32 %v8835_v43, %v4769_v61 }
 0x1f6   : > { %v4731_v3 = vadd.f32 %v4618_v21, %v4261_v13  ;;  %v4161_v12 = vpop.f32.mrf.mxu1  ;;  %v4842_v18 = vmax.f32 %v4810_v22, 0.0  ;;  %v3539_v21 = vadd.f32 %v8740_v52, %v3180_v1 }
 0x1f7   : > { %5700 = vst [vmem:[%s8858_s21] sm:$0xff] %v5699_v0   ;;  %v4811_v44 = vadd.f32 %v8835_v43, %v4772_v35  ;;  %v4736_v26 = vadd.f32 %v6228_v50, %v4266_v42  ;;  %v4264_v60 = vadd.f32 %v4161_v12, %v8744_v6  ;;  %v4634_v54 = vpop.f32.mrf.mxu0  ;;  %v3186_v6 = vadd.f32 %v8756_v10, %v8653_v16 }
 0x1f8   : > { %v4770_v47 = vmul.f32 %v8826_v45, %v4731_v3  ;;  %v6195_v2 = vpop.f32.mrf.mxu1  ;;  %v4840_v50 = vmax.f32 %v4808_v58, 0.0  ;;  %v3184_v16 = vadd.f32 %v8760_v4, %v8656_v11 }
 0x1f9   : > { %v4843_v23 = vmax.f32 %v4811_v44, 0.0  ;;  %v4775_v57 = vmul.f32 %v8826_v45, %v4736_v26  ;;  %v4734_v63 = vadd.f32 %v4631_v7, %v4264_v60  ;;  %v4267_v8 = vadd.f32 %v6195_v2, %v3541_v38  ;;  %v6232_v20 = vpop.f32.mrf.mxu0 }
 0x1fa   : > { %v4809_v27 = vadd.f32 %v8835_v43, %v4770_v47  ;;  %v4164_v46 = vpop.f32.mrf.mxu1  ;;  %v3545_v35 = vadd.f32 %v8749_v5, %v3186_v6  ;;  %v3543_v60 = vadd.f32 %v8754_v40, %v3184_v16  ;;  %v3188_v6 = vadd.f32 %v8774_v39, %v8668_v59 }
 0x1fb   : > { %v5714_v28 = vpack.c.bf16 %v4843_v23, %v4842_v18  ;;  %v4737_v17 = vadd.f32 %v6229_v15, %v4267_v8  ;;  %v4647_v29 = vpop.f32.mrf.mxu0  ;;  %v4814_v30 = vadd.f32 %v8835_v43, %v4775_v57  ;;  %v4773_v61 = vmul.f32 %v8826_v45, %v4734_v63 }
 0x1fc   : > { %v4841_v55 = vmax.f32 %v4809_v27, 0.0  ;;  %v4265_v9 = vadd.f32 %v4164_v46, %v3539_v21  ;;  %v6198_v7 = vpop.f32.mrf.mxu1  ;;  %v3547_v16 = vadd.f32 %v8768_v41, %v3188_v6 }
 0x1fd   : > { %5778 = vst [vmem:[%s8858_s21 + $0x18] sm:$0xff] %v5714_v28   ;;  %v4776_v52 = vmul.f32 %v8826_v45, %v4737_v17  ;;  %v4270_v22 = vadd.f32 %v6198_v7, %v8751_v37  ;;  %v6233_v13 = vpop.f32.mrf.mxu0  ;;  %v4846_v3 = vmax.f32 %v4814_v30, 0.0  ;;  %v4812_v12 = vadd.f32 %v8835_v43, %v4773_v61 }
 0x1fe   : > { %v5709_v10 = vpack.c.bf16 %v4841_v55, %v4840_v50  ;;  %v4735_v49 = vadd.f32 %v4634_v54, %v4265_v9  ;;  %v4177_v0 = vpop.f32.mrf.mxu1 }
 0x1ff   : > { %v4815_v42 = vadd.f32 %v8835_v43, %v4776_v52  ;;  %v4740_v15 = vadd.f32 %v6232_v20, %v4270_v22  ;;  %v4268_v38 = vadd.f32 %v4177_v0, %v8758_v25  ;;  %v4650_v1 = vpop.f32.mrf.mxu0  ;;  %v3190_v25 = vadd.f32 %v8770_v31, %v8665_v34 }
 0x200   : > { %5777 = vst [vmem:[%s8858_s21 + $0x10] sm:$0xff] %v5709_v10   ;;  %v4774_v37 = vmul.f32 %v8826_v45, %v4735_v49  ;;  %v6199_v58 = vpop.f32.mrf.mxu1  ;;  %v4844_v63 = vmax.f32 %v4812_v12, 0.0 }
 0x201   : > { %v4847_v44 = vmax.f32 %v4815_v42, 0.0  ;;  %v4779_v11 = vmul.f32 %v8826_v45, %v4740_v15  ;;  %v4738_v4 = vadd.f32 %v4647_v29, %v4268_v38  ;;  %v4271_v26 = vadd.f32 %v6199_v58, %v3545_v35  ;;  %v6236_v5 = vpop.f32.mrf.mxu0 }
 0x202   : > { %v4813_v54 = vadd.f32 %v8835_v43, %v4774_v37  ;;  %v4180_v18 = vpop.f32.mrf.mxu1  ;;  %v3549_v46 = vadd.f32 %v8763_v19, %v3190_v25 }
 0x203   : > { %v5724_v47 = vpack.c.bf16 %v4847_v44, %v4846_v3  ;;  %v4777_v2 = vmul.f32 %v8826_v45, %v4738_v4  ;;  %v4741_v23 = vadd.f32 %v6233_v13, %v4271_v26  ;;  %v4663_v57 = vpop.f32.mrf.mxu0  ;;  %v4818_v20 = vadd.f32 %v8835_v43, %v4779_v11  ;;  %v9192_v26 = vld [vmem:[#allocation18_spill] sm:$0xff] }
 0x204   : > { %v4845_v8 = vmax.f32 %v4813_v54, 0.0  ;;  %v4269_v21 = vadd.f32 %v4180_v18, %v3543_v60  ;;  %v6202_v27 = vpop.f32.mrf.mxu1  ;;  %v9193_v54 = vld [vmem:[#allocation23_spill] sm:$0xff] }
 0x205   : > { %5780 = vst [vmem:[%s8858_s21 + $0x28] sm:$0xff] %v5724_v47   ;;  %v4780_v40 = vmul.f32 %v8826_v45, %v4741_v23  ;;  %v4274_v34 = vadd.f32 %v6202_v27, %v8765_v48  ;;  %v6237_v31 = vpop.f32.mrf.mxu0  ;;  %v4816_v29 = vadd.f32 %v8835_v43, %v4777_v2  ;;  %v4850_v7 = vmax.f32 %v4818_v20, 0.0 }
 0x206   : > { %v5719_v50 = vpack.c.bf16 %v4845_v8, %v4844_v63  ;;  %v4739_v28 = vadd.f32 %v4650_v1, %v4269_v21  ;;  %v4193_v17 = vpop.f32.mrf.mxu1  ;;  %v9194_v21 = vld [vmem:[#allocation21_spill] sm:$0xff] }
 0x207   : > { %v4819_v55 = vadd.f32 %v8835_v43, %v4780_v40  ;;  %v4744_v30 = vadd.f32 %v6236_v5, %v4274_v34  ;;  %v4272_v61 = vadd.f32 %v4193_v17, %v8772_v14  ;;  %v4666_v9 = vpop.f32.mrf.mxu0  ;;  %v3194_v14 = vadd.f32 %v8784_v33, %v8677_v56  ;;  %v9195_v40 = vld [vmem:[#allocation2_spill] sm:$0xff] }
 0x208   : > { %5779 = vst [vmem:[%s8858_s21 + $0x20] sm:$0xff] %v5719_v50   ;;  %v4778_v48 = vmul.f32 %v8826_v45, %v4739_v28  ;;  %v6203_v52 = vpop.f32.mrf.mxu1  ;;  %v4848_v0 = vmax.f32 %v4816_v29, 0.0  ;;  %v3192_v56 = vadd.f32 %v8788_v32, %v8680_v24  ;;  %v3198_v34 = vadd.f32 %v8798_v51, %v9195_v40  ;;  %v9205_v40 = vld [vmem:[#allocation6_spill] sm:$0xff] }
 0x209   : > { %v4851_v19 = vmax.f32 %v4819_v55, 0.0  ;;  %v4783_v22 = vmul.f32 %v8826_v45, %v4744_v30  ;;  %v4742_v59 = vadd.f32 %v4663_v57, %v4272_v61  ;;  %v4275_v39 = vadd.f32 %v6203_v52, %v3549_v46  ;;  %v9196_v52 = vld [vmem:[#allocation25_spill] sm:$0xff] }
 0x20a   : > { %v6240_v13 = vpop.f32.mrf.mxu0  ;;  %v4817_v10 = vadd.f32 %v8835_v43, %v4778_v48  ;;  %v4196_v49 = vpop.f32.mrf.mxu1  ;;  %v3553_v5 = vadd.f32 %v9192_v26, %v3194_v14  ;;  %v3551_v27 = vadd.f32 %v9194_v21, %v3192_v56 }
 0x20b   : > { %v5734_v35 = vpack.c.bf16 %v4851_v19, %v4850_v7  ;;  %v4745_v42 = vadd.f32 %v6237_v31, %v4275_v39  ;;  %v4822_v1 = vadd.f32 %v8835_v43, %v4783_v22  ;;  %v4781_v3 = vmul.f32 %v8826_v45, %v4742_v59  ;;  %v9197_v22 = vld [vmem:[#allocation14_spill] sm:$0xff] }
 0x20c   : > { %v4679_v15 = vpop.f32.mrf.mxu0  ;;  %v4849_v38 = vmax.f32 %v4817_v10, 0.0  ;;  %v4273_v12 = vadd.f32 %v4196_v49, %v3547_v16  ;;  %v6206_v37 = vpop.f32.mrf.mxu1  ;;  %v3557_v19 = vadd.f32 %v9196_v52, %v3198_v34  ;;  %v3196_v59 = vadd.f32 %v8802_v53, %v9197_v22 }
 0x20d   : > { %5782 = vst [vmem:[%s8858_s21 + $0x38] sm:$0xff] %v5734_v35   ;;  %v4784_v41 = vmul.f32 %v8826_v45, %v4745_v42  ;;  %v4278_v58 = vadd.f32 %v6206_v37, %v8779_v62  ;;  %v4854_v2 = vmax.f32 %v4822_v1, 0.0  ;;  %v4820_v23 = vadd.f32 %v8835_v43, %v4781_v3 }
 0x20e   : > { %v6241_v44 = vpop.f32.mrf.mxu0  ;;  %v5729_v33 = vpack.c.bf16 %v4849_v38, %v4848_v0  ;;  %v4743_v11 = vadd.f32 %v4666_v9, %v4273_v12  ;;  %v4209_v4 = vpop.f32.mrf.mxu1  ;;  %v9198_v0 = vld [vmem:[#allocation3_spill] sm:$0xff] }
 0x20f   : > { %v4823_v60 = vadd.f32 %v8835_v43, %v4784_v41  ;;  %v4748_v25 = vadd.f32 %v6240_v13, %v4278_v58  ;;  %v4276_v18 = vadd.f32 %v4209_v4, %v9193_v54  ;;  %v4852_v29 = vmax.f32 %v4820_v23, 0.0  ;;  %v9199_v41 = vld [vmem:[#allocation4_spill] sm:$0xff] }
 0x210   : > { %v4682_v47 = vpop.f32.mrf.mxu0  ;;  %5781 = vst [vmem:[%s8858_s21 + $0x30] sm:$0xff] %v5729_v33   ;;  %v4782_v62 = vmul.f32 %v8826_v45, %v4743_v11  ;;  %v6207_v57 = vpop.f32.mrf.mxu1  ;;  %v3555_v58 = vadd.f32 %v9199_v41, %v3196_v59  ;;  %v9200_v33 = vld [vmem:[#allocation19_spill] sm:$0xff]  ;;  %v9201_v11 = vld [vmem:[#allocation10_spill] sm:$0xff] }
 0x211   : > { %v4855_v63 = vmax.f32 %v4823_v60, 0.0  ;;  %v4787_v24 = vmul.f32 %v8826_v45, %v4748_v25  ;;  %v4746_v32 = vadd.f32 %v4679_v15, %v4276_v18  ;;  %v4279_v8 = vadd.f32 %v6207_v57, %v3553_v5 }
 0x212   : > { %v6244_v20 = vpop.f32.mrf.mxu0  ;;  %v4821_v31 = vadd.f32 %v8835_v43, %v4782_v62  ;;  %v4212_v46 = vpop.f32.mrf.mxu1  ;;  %v3202_v4 = vadd.f32 %v9201_v11, %v9200_v33  ;;  %v9202_v62 = vld [vmem:[#allocation5_spill] sm:$0xff] }
 0x213   : > { %v5744_v6 = vpack.c.bf16 %v4855_v63, %v4854_v2  ;;  %v4785_v50 = vmul.f32 %v8826_v45, %v4746_v32  ;;  %v4749_v28 = vadd.f32 %v6241_v44, %v4279_v8  ;;  %v4826_v30 = vadd.f32 %v8835_v43, %v4787_v24  ;;  %v9203_v24 = vld [vmem:[#allocation9_spill] sm:$0xff]  ;;  %v9204_v32 = vld [vmem:[#allocation15_spill] sm:$0xff] }
 0x214   : > { %v4695_v17 = vpop.f32.mrf.mxu0  ;;  %v4853_v55 = vmax.f32 %v4821_v31, 0.0  ;;  %v4277_v61 = vadd.f32 %v4212_v46, %v3551_v27  ;;  %v6210_v9 = vpop.f32.mrf.mxu1  ;;  %v3200_v8 = vadd.f32 %v9204_v32, %v9203_v24  ;;  %v3561_v34 = vadd.f32 %v9205_v40, %v3202_v4 }
 0x215   : > { %5784 = vst [vmem:[%s8858_s21 + $0x48] sm:$0xff] %v5744_v6   ;;  %v4788_v7 = vmul.f32 %v8826_v45, %v4749_v28  ;;  %v4282_v51 = vadd.f32 %v6210_v9, %v8793_v36  ;;  %v4824_v10 = vadd.f32 %v8835_v43, %v4785_v50  ;;  %v4858_v15 = vmax.f32 %v4826_v30, 0.0  ;;  %v9206_v6 = vld [vmem:[#allocation13_spill] sm:$0xff] }
 0x216   : > { %v6245_v48 = vpop.f32.mrf.mxu0  ;;  %v5739_v39 = vpack.c.bf16 %v4853_v55, %v4852_v29  ;;  %v4747_v13 = vadd.f32 %v4682_v47, %v4277_v61  ;;  %v4225_v16 = vpop.f32.mrf.mxu1 }
 0x217   : > { %v4827_v49 = vadd.f32 %v8835_v43, %v4788_v7  ;;  %v4752_v14 = vadd.f32 %v6244_v20, %v4282_v51  ;;  %v4280_v35 = vadd.f32 %v4225_v16, %v9198_v0  ;;  %v4856_v26 = vmax.f32 %v4824_v10, 0.0 }
 0x218   : > { %v4698_v42 = vpop.f32.mrf.mxu0  ;;  %5783 = vst [vmem:[%s8858_s21 + $0x40] sm:$0xff] %v5739_v39   ;;  %v4786_v36 = vmul.f32 %v8826_v45, %v4747_v13  ;;  %v6211_v38 = vpop.f32.mrf.mxu1 }
 0x219   : > { %v4859_v1 = vmax.f32 %v4827_v49, 0.0  ;;  %v4791_v3 = vmul.f32 %v8826_v45, %v4752_v14  ;;  %v4750_v53 = vadd.f32 %v4695_v17, %v4280_v35  ;;  %v4283_v12 = vadd.f32 %v6211_v38, %v3557_v19 }
 0x21a   : > { %v6248_v37 = vpop.f32.mrf.mxu0  ;;  %v4825_v44 = vadd.f32 %v8835_v43, %v4786_v36  ;;  %v4228_v56 = vpop.f32.mrf.mxu1 }
 0x21b   : > { %v5754_v5 = vpack.c.bf16 %v4859_v1, %v4858_v15  ;;  %v4753_v60 = vadd.f32 %v6245_v48, %v4283_v12  ;;  %v4830_v54 = vadd.f32 %v8835_v43, %v4791_v3  ;;  %v4789_v18 = vmul.f32 %v8826_v45, %v4750_v53  ;;  %v9207_v48 = vld [vmem:[#allocation7_spill] sm:$0xff] }
 0x21c   : > { %v4857_v25 = vmax.f32 %v4825_v44, 0.0  ;;  %v4281_v47 = vadd.f32 %v4228_v56, %v3555_v58  ;;  %v6214_v2 = vpop.f32.mrf.mxu1  ;;  %v4711_v63 = vpop.f32.mrf.mxu0  ;;  %v3559_v52 = vadd.f32 %v9207_v48, %v3200_v8 }
 0x21d   : > { %5786 = vst [vmem:[%s8858_s21 + $0x58] sm:$0xff] %v5754_v5   ;;  %v4792_v23 = vmul.f32 %v8826_v45, %v4753_v60  ;;  %v4286_v57 = vadd.f32 %v6214_v2, %v9202_v62  ;;  %v4862_v28 = vmax.f32 %v4830_v54, 0.0  ;;  %v4828_v17 = vadd.f32 %v8835_v43, %v4789_v18 }
 0x21e   : > { %v5749_v20 = vpack.c.bf16 %v4857_v25, %v4856_v26  ;;  %v4751_v21 = vadd.f32 %v4698_v42, %v4281_v47  ;;  %v4241_v27 = vpop.f32.mrf.mxu1  ;;  %v6249_v51 = vpop.f32.mrf.mxu0 }
 0x21f   : > { %v4831_v31 = vadd.f32 %v8835_v43, %v4792_v23  ;;  %v4756_v46 = vadd.f32 %v6248_v37, %v4286_v57  ;;  %v4284_v50 = vadd.f32 %v4241_v27, %v9206_v6  ;;  %v4860_v13 = vmax.f32 %v4828_v17, 0.0 }
 0x220   : > { %5785 = vst [vmem:[%s8858_s21 + $0x50] sm:$0xff] %v5749_v20   ;;  %v4790_v29 = vmul.f32 %v8826_v45, %v4751_v21  ;;  %v6215_v55 = vpop.f32.mrf.mxu1  ;;  %v4714_v35 = vpop.f32.mrf.mxu0 }
 0x221   : > { %v4863_v30 = vmax.f32 %v4831_v31, 0.0  ;;  %v4795_v61 = vmul.f32 %v8826_v45, %v4756_v46  ;;  %v4754_v9 = vadd.f32 %v4711_v63, %v4284_v50  ;;  %v4287_v7 = vadd.f32 %v6215_v55, %v3561_v34 }
 0x222   : > { %v4829_v19 = vadd.f32 %v8835_v43, %v4790_v29  ;;  %v4244_v22 = vpop.f32.mrf.mxu1 }
 0x223   : > { %v5764_v59 = vpack.c.bf16 %v4863_v30, %v4862_v28  ;;  %v4757_v39 = vadd.f32 %v6249_v51, %v4287_v7  ;;  %v4793_v10 = vmul.f32 %v8826_v45, %v4754_v9  ;;  %v4285_v49 = vadd.f32 %v4244_v22, %v3559_v52 }
 0x224   : > { %v4861_v16 = vmax.f32 %v4829_v19, 0.0  ;;  %v4834_v14 = vadd.f32 %v8835_v43, %v4795_v61 }
 0x225   : > { %5788 = vst [vmem:[%s8858_s21 + $0x68] sm:$0xff] %v5764_v59   ;;  %v4796_v0 = vmul.f32 %v8826_v45, %v4757_v39  ;;  %v4755_v15 = vadd.f32 %v4714_v35, %v4285_v49  ;;  %v4832_v38 = vadd.f32 %v8835_v43, %v4793_v10 }
 0x226   : > { %v5759_v42 = vpack.c.bf16 %v4861_v16, %v4860_v13  ;;  %v4866_v3 = vmax.f32 %v4834_v14, 0.0 }
 0x227   : > { %v4835_v36 = vadd.f32 %v8835_v43, %v4796_v0  ;;  %v4794_v1 = vmul.f32 %v8826_v45, %v4755_v15  ;;  %v4864_v41 = vmax.f32 %v4832_v38, 0.0 }
 0x228   : > { %5787 = vst [vmem:[%s8858_s21 + $0x60] sm:$0xff] %v5759_v42  }
 0x229   : > { %v4867_v53 = vmax.f32 %v4835_v36, 0.0  ;;  %v4833_v12 = vadd.f32 %v8835_v43, %v4794_v1 }
 0x22b   : > { %v5774_v37 = vpack.c.bf16 %v4867_v53, %v4866_v3  ;;  %v4865_v58 = vmax.f32 %v4833_v12, 0.0 }
 0x22d   : > { %5790 = vst [vmem:[%s8858_s21 + $0x78] sm:$0xff] %v5774_v37   ;;  %v5769_v44 = vpack.c.bf16 %v4865_v58, %v4864_v41 }
 0x22f   : > { %5789 = vst [vmem:[%s8858_s21 + $0x70] sm:$0xff] %v5769_v44  }
 0x230 PF: > { %s14_s15 = sadd.s32 1, %s6327_s15  }
 0x231   : > { %p11_p4 = scmp.ge.s32.totalorder %s14_s15, 4  }
 0x233   :  { %13 = sbr.rel (!%p11_p4) target bundleno = 1 (0x1), region = 76 }

</bundles_post_ra>
